<compile_context>
chip_gen: v7x
topology: tpu7x:2x2x1
jax: 0.10.0
libtpu: 0.0.40
codegen_flags: <defaults>
</compile_context>

<pallas_src>
import functools

import jax
import jax.numpy as jnp
from jax.experimental import pallas as pl
from jax.experimental.pallas import tpu as pltpu

_BN_EPS = 1e-5


def _round_up(x, m):
    return (x + m - 1) // m * m


def _sublane_multiple(dtype):
    # 8 sublanes for 32-bit, 16 for 16-bit (packed), etc.
    return 8 * max(1, 4 // jnp.dtype(dtype).itemsize)


def _vmem_tile_bytes(shape, dtype):
    """VMEM footprint of one buffer, padded to the dtype's (sublane,128) tile."""
    itemsize = jnp.dtype(dtype).itemsize
    dims = [int(d) for d in shape]
    if len(dims) >= 1:
        dims[-1] = _round_up(dims[-1], 128)
    if len(dims) >= 2:
        dims[-2] = _round_up(dims[-2], _sublane_multiple(dtype))
    n = 1
    for d in dims:
        n *= d
    return n * itemsize


# ---------------------------------------------------------------------------
# Kernel
# ---------------------------------------------------------------------------
def srb_kernel(x_ref, skip_ref, wupx_ref, wups_ref, bup_ref, w3_ref,
               sh1_ref, w1_ref, sh2_ref, out_ref, tbuf_ref, *,
               H, W, Cp, compute_dtype):
    """One batch element per grid step.

    x_ref/skip_ref : (1, HW, C) un-padded activations (native dtype).
    tbuf_ref       : (2W + HW, 3*Cp) compute_dtype scratch.
        rows       = [W zero pad | HW image rows | W zero pad]
        lane block = [ow=-1 copy | ow=0 (t)      | ow=+1 copy]
    """
    HW = H * W
    f32 = jnp.float32
    cdt = compute_dtype

    # --- up-projection: ConvTranspose2d(2C->C, k=1) as two K=C matmuls on the
    #     un-concatenated x / skip blocks; f32 accumulation.
    xv = x_ref[0].astype(cdt)
    sv = skip_ref[0].astype(cdt)
    t = (jnp.dot(xv, wupx_ref[...], preferred_element_type=f32)
         + jnp.dot(sv, wups_ref[...], preferred_element_type=f32)
         + bup_ref[...])                                          # (HW, Cp) f32

    # --- scratch prologue.
    # Only the two W-row pad bands need zeros; the HW-row interior is fully
    # overwritten below every step.  Bands are re-zeroed every step (not under
    # `program_id == 0`) because the N axis is "parallel": on a megacore chip
    # the second TensorCore never sees program_id 0.
    zpad = jnp.zeros((W, 3 * Cp), cdt)
    tbuf_ref[0:W, :] = zpad
    tbuf_ref[W + HW:2 * W + HW, :] = zpad

    # center copy (ow = 0): sublane-aligned store (W % sublane == 0).
    tbuf_ref[W:W + HW, Cp:2 * Cp] = t.astype(cdt)

    # Horizontal-wrap mask column index, hoisted (computed once, used twice).
    col = jax.lax.broadcasted_iota(jnp.int32, (HW, 1), 0) % W

    # ow = -1 copy: value t[p-1]; zero where the destination column is 0 (left
    # image border).  pltpu.roll runs on the XLU slot and replaces the previous
    # sublane-misaligned scratch re-reads (and their store->load RAW hazard).
    tm = pltpu.roll(t, 1, 0)
    tbuf_ref[W:W + HW, 0:Cp] = jnp.where(col == 0, 0.0, tm).astype(cdt)

    # ow = +1 copy: value t[p+1] (roll by HW-1 == shift of -1); zero where the
    # destination column is W-1 (right image border).
    tp = pltpu.roll(t, HW - 1, 0)
    tbuf_ref[W:W + HW, 2 * Cp:3 * Cp] = jnp.where(col == W - 1, 0.0, tp).astype(cdt)

    # --- 3x3 conv: three sublane-ALIGNED (HW, 3Cp) windows (row offsets 0, W,
    #     2W), each one MXU matmul with K = 3*Cp.  No per-tap masks, no casts
    #     (scratch already in compute_dtype), BN1 scale pre-folded into w3.
    acc = None
    for kh in range(3):
        win = tbuf_ref[kh * W:kh * W + HW, :]
        d = jnp.dot(win, w3_ref[kh], preferred_element_type=f32)
        acc = d if acc is None else acc + d

    # --- epilogue in f32 (conv biases + BN shifts folded into sh1 / sh2,
    #     BN scales folded into w3 / w1 offline) — only add + ReLU on the VPU.
    y = jnp.maximum(acc + sh1_ref[...], 0.0)                         # BN1+ReLU
    z = jnp.dot(y.astype(cdt), w1_ref[...], preferred_element_type=f32)
    z = jnp.maximum(z + sh2_ref[...], 0.0)                           # BN2+ReLU

    # residual: re-read t from scratch (keeps the temporary's live range short).
    out_ref[0] = (z + tbuf_ref[W:W + HW, Cp:2 * Cp]).astype(out_ref.dtype)


# ---------------------------------------------------------------------------
# Parameter preparation (lane padding, BN folding into weights, dtype cast)
# ---------------------------------------------------------------------------
def _prepare_params(p, C, OD, Cp, ODp, compute_dtype):
    f32 = jnp.float32

    # ConvTranspose2d(2C->C, k=1) weight, split into x-half / skip-half so the
    # activations never need to be concatenated or padded in HBM.
    wup = p["wup"].astype(f32)                                      # (2C, C)
    wupx = jnp.zeros((C, Cp), f32).at[:, :C].set(wup[:C])
    wups = jnp.zeros((C, Cp), f32).at[:, :C].set(wup[C:])
    bup = jnp.zeros((1, Cp), f32).at[0, :C].set(p["bup"])

    # BN folding (eval mode), done in f32 BEFORE any bf16 cast.
    s1v = p["bn1_g"] / jnp.sqrt(p["bn1_v"] + _BN_EPS)               # (OD,)
    sh1v = (p["bn1_b"] - p["bn1_m"] * s1v) + s1v * p["b3"]
    s2v = p["bn2_g"] / jnp.sqrt(p["bn2_v"] + _BN_EPS)               # (C,)
    sh2v = (p["bn2_b"] - p["bn2_m"] * s2v) + s2v * p["b1"]

    # 3x3 conv weight -> (3, 3*Cp, ODp); lane block kw multiplies the ow=kw-1
    # shifted copy of t.  Output columns pre-scaled by the BN1 scale.
    w3 = jnp.zeros((3, 3 * Cp, ODp), f32)
    for kh in range(3):
        for kw in range(3):
            wk = p["w3"][:, :, kh, kw] * s1v[:, None]               # (OD, C)
            w3 = w3.at[kh, kw * Cp:kw * Cp + C, :OD].set(wk.T)
    sh1 = jnp.zeros((1, ODp), f32).at[0, :OD].set(sh1v)

    # 1x1 conv weight (OD -> C), output columns pre-scaled by the BN2 scale.
    w1 = jnp.zeros((ODp, Cp), f32).at[:OD, :C].set((p["w1"] * s2v[:, None]).T)
    sh2 = jnp.zeros((1, Cp), f32).at[0, :C].set(sh2v)

    return dict(wupx=wupx.astype(compute_dtype), wups=wups.astype(compute_dtype),
                bup=bup, w3=w3.astype(compute_dtype), sh1=sh1,
                w1=w1.astype(compute_dtype), sh2=sh2)


# ---------------------------------------------------------------------------
# Wrappers
# ---------------------------------------------------------------------------
@functools.partial(jax.jit, static_argnames=("compute_dtype",))
def srb_forward_nhwc(x, skip, params, *, compute_dtype=jnp.bfloat16):
    """NHWC-native entry point.

    Returns the lane-dense padded (N, H, W, Cp) activation, Cp = round_up(C,
    128).  Consumers should read the padded layout directly — slicing back to
    C costs an extra full HBM pass and lives only in the NCHW adapter.
    """
    N, H, W, C = x.shape
    assert skip.shape == x.shape
    OD = params["w3"].shape[0]
    Cp, ODp = _round_up(C, 128), _round_up(OD, 128)
    HW = H * W

    sub = _sublane_multiple(compute_dtype)
    assert W % sub == 0, (
        f"W must be a multiple of {sub} for {jnp.dtype(compute_dtype).name} scratch rows")

    kp = _prepare_params(params, C, OD, Cp, ODp, compute_dtype)

    # x / skip go to the kernel un-padded and un-concatenated, in their native
    # dtype (cast to compute_dtype happens in-kernel; no extra HBM pass).
    xf = x.reshape(N, HW, C)
    sf = skip.reshape(N, HW, C)

    def const_spec(shape):
        nd = len(shape)
        return pl.BlockSpec(shape, lambda n, _nd=nd: (0,) * _nd)

    scratch_shape = (HW + 2 * W, 3 * Cp)
    grid_spec = pltpu.PrefetchScalarGridSpec(
        num_scalar_prefetch=0,
        grid=(N,),
        in_specs=[
            pl.BlockSpec((1, HW, C), lambda n: (n, 0, 0)),         # x
            pl.BlockSpec((1, HW, C), lambda n: (n, 0, 0)),         # skip
            const_spec((C, Cp)), const_spec((C, Cp)),              # wup_x, wup_skip
            const_spec((1, Cp)),                                   # bup
            const_spec((3, 3 * Cp, ODp)),                          # w3 (BN1-scaled)
            const_spec((1, ODp)),                                  # sh1
            const_spec((ODp, Cp)),                                 # w1 (BN2-scaled)
            const_spec((1, Cp)),                                   # sh2
        ],
        out_specs=pl.BlockSpec((1, HW, Cp), lambda n: (n, 0, 0)),
        scratch_shapes=[pltpu.VMEM(scratch_shape, compute_dtype)],
    )

    # VMEM budget from (8,128)-tile-padded buffer sizes: double-buffered
    # activations + single-counted constant weights + scratch + headroom.
    # Capped at 56 MiB (< v7x's 64 MiB physical) to leave Mosaic internal
    # scratch headroom; large H*W configs rely on the row-block TODO above.
    act_bytes = (2 * _vmem_tile_bytes((HW, C), x.dtype)
                 + _vmem_tile_bytes((HW, Cp), compute_dtype))
    w_bytes = sum(_vmem_tile_bytes(a.shape, a.dtype) for a in kp.values())
    scratch_bytes = _vmem_tile_bytes(scratch_shape, compute_dtype)
    vmem_budget = 2 * act_bytes + w_bytes + scratch_bytes + (4 << 20)
    vmem_budget = int(min(56 << 20, max(32 << 20, vmem_budget)))

    # Advisory cost estimate so XLA schedules surrounding ops sensibly.
    flops = N * (4 * HW * C * Cp                # up-projection (two K=C matmuls)
                 + 2 * HW * (3 * Cp) * ODp * 3  # 3x3 conv as 3 matmuls
                 + 2 * HW * ODp * Cp)           # 1x1 conv
    bytes_accessed = (2 * N * HW * C * jnp.dtype(x.dtype).itemsize
                      + N * HW * Cp * jnp.dtype(compute_dtype).itemsize
                      + sum(a.size * a.dtype.itemsize for a in kp.values()))
    cost = pl.CostEstimate(flops=int(flops), transcendentals=0,
                           bytes_accessed=int(bytes_accessed))

    out = pl.pallas_call(
        functools.partial(srb_kernel, H=H, W=W, Cp=Cp,
                          compute_dtype=compute_dtype),
        out_shape=jax.ShapeDtypeStruct((N, HW, Cp), compute_dtype),
        grid_spec=grid_spec,
        compiler_params=pltpu.CompilerParams(
            dimension_semantics=("parallel",),
            vmem_limit_bytes=vmem_budget),
        cost_estimate=cost,
    )(xf, sf, kp["wupx"], kp["wups"], kp["bup"], kp["w3"], kp["sh1"],
      kp["w1"], kp["sh2"])

    return out.reshape(N, H, W, Cp)


def srb_forward(x_nchw, skip_nchw, params, **kwargs):
    """NCHW adapter matching the PyTorch interface.  The layout transposes and
    the channel slice back to C live only here; NHWC callers should consume the
    padded srb_forward_nhwc output directly (no extra HBM pass)."""
    C = x_nchw.shape[1]
    x = jnp.transpose(x_nchw, (0, 2, 3, 1))
    s = jnp.transpose(skip_nchw, (0, 2, 3, 1))
    out = srb_forward_nhwc(x, s, params, **kwargs)
    return jnp.transpose(out[..., :C], (0, 3, 1, 2))


# ---------------------------------------------------------------------------
# Parameters (torch-shaped) and pure-JAX reference
# ---------------------------------------------------------------------------
def init_params(key, dim, out_dim):
    ks = jax.random.split(key, 14)

    def rn(k, shape, scale=0.1):
        return scale * jax.random.normal(k, shape, jnp.float32)

    return dict(
        wup=rn(ks[0], (2 * dim, dim)),          # ConvTranspose2d(2C,C,1).weight
        bup=rn(ks[1], (dim,)),
        w3=rn(ks[2], (out_dim, dim, 3, 3)),     # Conv2d(C,OD,3).weight
        b3=rn(ks[3], (out_dim,)),
        bn1_g=1.0 + rn(ks[4], (out_dim,)), bn1_b=rn(ks[5], (out_dim,)),
        bn1_m=rn(ks[6], (out_dim,)), bn1_v=1.0 + jnp.abs(rn(ks[7], (out_dim,))),
        w1=rn(ks[8], (dim, out_dim)),           # Conv2d(OD,C,1).weight
        b1=rn(ks[9], (dim,)),
        bn2_g=1.0 + rn(ks[10], (dim,)), bn2_b=rn(ks[11], (dim,)),
        bn2_m=rn(ks[12], (dim,)), bn2_v=1.0 + jnp.abs(rn(ks[13], (dim,))),
    )


def srb_reference(x_nchw, skip_nchw, p):
    """Pure-JAX f32 reference (NHWC internally) for correctness checking."""
    x = jnp.transpose(x_nchw, (0, 2, 3, 1))
    s = jnp.transpose(skip_nchw, (0, 2, 3, 1))
    cat = jnp.concatenate([x, s], axis=-1)
    t = jnp.einsum("nhwi,io->nhwo", cat, p["wup"]) + p["bup"]
    w3 = jnp.transpose(p["w3"], (2, 3, 1, 0))                 # -> HWIO
    y = jax.lax.conv_general_dilated(
        t, w3, (1, 1), "SAME",
        dimension_numbers=("NHWC", "HWIO", "NHWC")) + p["b3"]
    s1 = p["bn1_g"] / jnp.sqrt(p["bn1_v"] + _BN_EPS)
    y = jnp.maximum(y * s1 + (p["bn1_b"] - p["bn1_m"] * s1), 0.0)
    z = jnp.einsum("nhwi,oi->nhwo", y, p["w1"]) + p["b1"]
    s2 = p["bn2_g"] / jnp.sqrt(p["bn2_v"] + _BN_EPS)
    z = jnp.maximum(z * s2 + (p["bn2_b"] - p["bn2_m"] * s2), 0.0)
    return jnp.transpose(z + t, (0, 3, 1, 2))


if __name__ == "__main__":
    N, dim, out_dim, H, W = 2, 4, 8, 16, 16

    key = jax.random.PRNGKey(0)
    kx, kskip, kparams = jax.random.split(key, 3)
    x = jax.random.normal(kx, (N, dim, H, W), jnp.float32)
    skip = jax.random.normal(kskip, (N, dim, H, W), jnp.float32)
    params = init_params(kparams, dim, out_dim)

    ref = srb_reference(x, skip, params)

    # f32 path: tight check of the kernel math.
    out_f32 = jax.block_until_ready(
        srb_forward(x, skip, params, compute_dtype=jnp.float32))
    assert out_f32.shape == (N, dim, H, W)
    assert jnp.allclose(out_f32.astype(jnp.float32), ref, atol=1e-3, rtol=1e-3), \
        "f32 kernel mismatch vs JAX reference"

    # bf16 fast path (default): looser tolerance for bf16 rounding.
    out_bf16 = jax.block_until_ready(srb_forward(x, skip, params))
    assert out_bf16.shape == (N, dim, H, W)
    assert out_bf16.dtype == jnp.bfloat16
    assert jnp.allclose(out_bf16.astype(jnp.float32), ref, atol=3e-2, rtol=3e-2), \
        "bf16 kernel mismatch vs JAX reference"

    print("KERNEL_OK")
</pallas_src>

<mosaic_0001>
module attributes {stable_mosaic.version = 11 : i64} {
  func.func @srb_kernel(%arg0: i32, %arg1: memref<1x256x4xf32, #tpu.memory_space<vmem>>, %arg2: memref<1x256x4xf32, #tpu.memory_space<vmem>>, %arg3: memref<4x128xf32, #tpu.memory_space<vmem>>, %arg4: memref<4x128xf32, #tpu.memory_space<vmem>>, %arg5: memref<1x128xf32, #tpu.memory_space<vmem>>, %arg6: memref<3x384x128xf32, #tpu.memory_space<vmem>>, %arg7: memref<1x128xf32, #tpu.memory_space<vmem>>, %arg8: memref<128x128xf32, #tpu.memory_space<vmem>>, %arg9: memref<1x128xf32, #tpu.memory_space<vmem>>, %arg10: memref<1x256x128xf32, #tpu.memory_space<vmem>>, %arg11: memref<288x384xf32, #tpu.memory_space<vmem>>) attributes {dimension_semantics = [#tpu.dimension_semantics<parallel>], iteration_bounds = array<i64: 2>, scalar_prefetch = 0 : i64, scratch_operands = 1 : i64, tpu.core_type = #tpu.core_type<tc>, window_params = [{transform_indices = @transform_0, window_bounds = array<i64: 1, 256, 4>}, {transform_indices = @transform_1, window_bounds = array<i64: 1, 256, 4>}, {pipeline_mode = #tpu.pipeline_mode<synchronous>, transform_indices = @transform_2, window_bounds = array<i64: 4, 128>}, {pipeline_mode = #tpu.pipeline_mode<synchronous>, transform_indices = @transform_3, window_bounds = array<i64: 4, 128>}, {pipeline_mode = #tpu.pipeline_mode<synchronous>, transform_indices = @transform_4, window_bounds = array<i64: 1, 128>}, {pipeline_mode = #tpu.pipeline_mode<synchronous>, transform_indices = @transform_5, window_bounds = array<i64: 3, 384, 128>}, {pipeline_mode = #tpu.pipeline_mode<synchronous>, transform_indices = @transform_6, window_bounds = array<i64: 1, 128>}, {pipeline_mode = #tpu.pipeline_mode<synchronous>, transform_indices = @transform_7, window_bounds = array<i64: 128, 128>}, {pipeline_mode = #tpu.pipeline_mode<synchronous>, transform_indices = @transform_8, window_bounds = array<i64: 1, 128>}, {transform_indices = @transform_9, window_bounds = array<i64: 1, 256, 128>}]} {
    %c0 = arith.constant 0 : index
    %c0_0 = arith.constant 0 : index
    %c0_1 = arith.constant 0 : index
    %0 = vector.load %arg1[%c0, %c0_0, %c0_1] : memref<1x256x4xf32, #tpu.memory_space<vmem>>, vector<1x256x4xf32>
    %1 = vector.shape_cast %0 : vector<1x256x4xf32> to vector<256x4xf32>
    %c0_2 = arith.constant 0 : index
    %c0_3 = arith.constant 0 : index
    %c0_4 = arith.constant 0 : index
    %2 = vector.load %arg2[%c0_2, %c0_3, %c0_4] : memref<1x256x4xf32, #tpu.memory_space<vmem>>, vector<1x256x4xf32>
    %3 = vector.shape_cast %2 : vector<1x256x4xf32> to vector<256x4xf32>
    %c0_5 = arith.constant 0 : index
    %c0_6 = arith.constant 0 : index
    %4 = vector.load %arg3[%c0_5, %c0_6] : memref<4x128xf32, #tpu.memory_space<vmem>>, vector<4x128xf32>
    %cst = arith.constant dense<0.000000e+00> : vector<256x128xf32>
    %5 = tpu.matmul %1, %4, %cst {dimension_numbers = #tpu.dot_dimension_numbers<[1], [0], [0], [1], [0, 0, 1, 1], [], []>} : vector<256x4xf32>, vector<4x128xf32>, vector<256x128xf32> -> vector<256x128xf32>
    %c0_7 = arith.constant 0 : index
    %c0_8 = arith.constant 0 : index
    %6 = vector.load %arg4[%c0_7, %c0_8] : memref<4x128xf32, #tpu.memory_space<vmem>>, vector<4x128xf32>
    %cst_9 = arith.constant dense<0.000000e+00> : vector<256x128xf32>
    %7 = tpu.matmul %3, %6, %cst_9 {dimension_numbers = #tpu.dot_dimension_numbers<[1], [0], [0], [1], [0, 0, 1, 1], [], []>} : vector<256x4xf32>, vector<4x128xf32>, vector<256x128xf32> -> vector<256x128xf32>
    %8 = arith.addf %5, %7 : vector<256x128xf32>
    %c0_10 = arith.constant 0 : index
    %c0_11 = arith.constant 0 : index
    %9 = vector.load %arg5[%c0_10, %c0_11] : memref<1x128xf32, #tpu.memory_space<vmem>>, vector<1x128xf32>
    %10 = vector.broadcast %9 : vector<1x128xf32> to vector<256x128xf32>
    %11 = arith.addf %8, %10 : vector<256x128xf32>
    %cst_12 = arith.constant 0.000000e+00 : f32
    %12 = vector.broadcast %cst_12 : f32 to vector<16x384xf32>
    %c0_13 = arith.constant 0 : index
    %c0_14 = arith.constant 0 : index
    %13 = vector.load %arg11[%c0_13, %c0_14] : memref<288x384xf32, #tpu.memory_space<vmem>>, vector<16x384xf32>
    tpu.vector_store %arg11[%c0_13, %c0_14], %12 {strides = array<i32>} : memref<288x384xf32, #tpu.memory_space<vmem>>, vector<16x384xf32>,
    %c272 = arith.constant 272 : index
    %c0_15 = arith.constant 0 : index
    %14 = vector.load %arg11[%c272, %c0_15] : memref<288x384xf32, #tpu.memory_space<vmem>>, vector<16x384xf32>
    tpu.vector_store %arg11[%c272, %c0_15], %12 {strides = array<i32>} : memref<288x384xf32, #tpu.memory_space<vmem>>, vector<16x384xf32>,
    %c16 = arith.constant 16 : index
    %c128 = arith.constant 128 : index
    %15 = vector.load %arg11[%c16, %c128] : memref<288x384xf32, #tpu.memory_space<vmem>>, vector<256x128xf32>
    tpu.vector_store %arg11[%c16, %c128], %11 {strides = array<i32>} : memref<288x384xf32, #tpu.memory_space<vmem>>, vector<256x128xf32>,
    %16 = tpu.iota {dimensions = array<i32: 0>} : vector<256x1xi32>
    %c16_i32 = arith.constant 16 : i32
    %c0_i32 = arith.constant 0 : i32
    %17 = arith.cmpi eq, %c16_i32, %c0_i32 : i32
    %c1_i32 = arith.constant 1 : i32
    %18 = arith.select %17, %c1_i32, %c16_i32 : i32
    %19 = vector.broadcast %18 : i32 to vector<256x1xi32>
    %20 = arith.remsi %16, %19 : vector<256x1xi32>
    %c0_i32_16 = arith.constant 0 : i32
    %21 = vector.broadcast %c0_i32_16 : i32 to vector<256x1xi32>
    %22 = arith.cmpi ne, %20, %21 : vector<256x1xi32>
    %c0_i32_17 = arith.constant 0 : i32
    %23 = vector.broadcast %c0_i32_17 : i32 to vector<256x1xi32>
    %24 = arith.cmpi slt, %20, %23 : vector<256x1xi32>
    %c0_i32_18 = arith.constant 0 : i32
    %25 = arith.cmpi slt, %18, %c0_i32_18 : i32
    %26 = vector.broadcast %25 : i1 to vector<256x1xi1>
    %27 = vector.broadcast %26 : vector<256x1xi1> to vector<256x1xi1>
    %28 = arith.xori %24, %27 : vector<256x1xi1>
    %29 = arith.andi %28, %22 : vector<256x1xi1>
    %30 = vector.broadcast %18 : i32 to vector<256x1xi32>
    %31 = arith.addi %20, %30 : vector<256x1xi32>
    %32 = arith.select %29, %31, %20 : vector<256x1xi1>, vector<256x1xi32>
    %c1_i32_19 = arith.constant 1 : i32
    %33 = tpu.dynamic_rotate %11 by %c1_i32_19 dim 0 : vector<256x128xf32>, i32 -> vector<256x128xf32>
    %c0_i32_20 = arith.constant 0 : i32
    %34 = vector.broadcast %c0_i32_20 : i32 to vector<256x1xi32>
    %35 = arith.cmpi eq, %32, %34 : vector<256x1xi32>
    %cst_21 = arith.constant 0.000000e+00 : f32
    %36 = vector.shape_cast %35 : vector<256x1xi1> to vector<256x1xi1>
    %37 = vector.broadcast %36 : vector<256x1xi1> to vector<256x128xi1>
    %38 = vector.broadcast %cst_21 : f32 to vector<256x128xf32>
    %39 = arith.select %37, %38, %33 : vector<256x128xi1>, vector<256x128xf32>
    %c16_22 = arith.constant 16 : index
    %c0_23 = arith.constant 0 : index
    %40 = vector.load %arg11[%c16_22, %c0_23] : memref<288x384xf32, #tpu.memory_space<vmem>>, vector<256x128xf32>
    tpu.vector_store %arg11[%c16_22, %c0_23], %39 {strides = array<i32>} : memref<288x384xf32, #tpu.memory_space<vmem>>, vector<256x128xf32>,
    %c255_i32 = arith.constant 255 : i32
    %41 = tpu.dynamic_rotate %11 by %c255_i32 dim 0 : vector<256x128xf32>, i32 -> vector<256x128xf32>
    %c15_i32 = arith.constant 15 : i32
    %42 = vector.broadcast %c15_i32 : i32 to vector<256x1xi32>
    %43 = arith.cmpi eq, %32, %42 : vector<256x1xi32>
    %cst_24 = arith.constant 0.000000e+00 : f32
    %44 = vector.shape_cast %43 : vector<256x1xi1> to vector<256x1xi1>
    %45 = vector.broadcast %44 : vector<256x1xi1> to vector<256x128xi1>
    %46 = vector.broadcast %cst_24 : f32 to vector<256x128xf32>
    %47 = arith.select %45, %46, %41 : vector<256x128xi1>, vector<256x128xf32>
    %c16_25 = arith.constant 16 : index
    %c256 = arith.constant 256 : index
    %48 = vector.load %arg11[%c16_25, %c256] : memref<288x384xf32, #tpu.memory_space<vmem>>, vector<256x128xf32>
    tpu.vector_store %arg11[%c16_25, %c256], %47 {strides = array<i32>} : memref<288x384xf32, #tpu.memory_space<vmem>>, vector<256x128xf32>,
    %c0_26 = arith.constant 0 : index
    %c0_27 = arith.constant 0 : index
    %49 = vector.load %arg11[%c0_26, %c0_27] : memref<288x384xf32, #tpu.memory_space<vmem>>, vector<256x384xf32>
    %c0_28 = arith.constant 0 : index
    %c0_29 = arith.constant 0 : index
    %c0_30 = arith.constant 0 : index
    %50 = vector.load %arg6[%c0_28, %c0_29, %c0_30] : memref<3x384x128xf32, #tpu.memory_space<vmem>>, vector<1x384x128xf32>
    %51 = vector.shape_cast %50 : vector<1x384x128xf32> to vector<384x128xf32>
    %cst_31 = arith.constant dense<0.000000e+00> : vector<256x128xf32>
    %52 = tpu.matmul %49, %51, %cst_31 {dimension_numbers = #tpu.dot_dimension_numbers<[1], [0], [0], [1], [0, 0, 1, 1], [], []>} : vector<256x384xf32>, vector<384x128xf32>, vector<256x128xf32> -> vector<256x128xf32>
    %c16_32 = arith.constant 16 : index
    %c0_33 = arith.constant 0 : index
    %53 = vector.load %arg11[%c16_32, %c0_33] : memref<288x384xf32, #tpu.memory_space<vmem>>, vector<256x384xf32>
    %c1 = arith.constant 1 : index
    %c0_34 = arith.constant 0 : index
    %c0_35 = arith.constant 0 : index
    %54 = vector.load %arg6[%c1, %c0_34, %c0_35] : memref<3x384x128xf32, #tpu.memory_space<vmem>>, vector<1x384x128xf32>
    %55 = vector.shape_cast %54 : vector<1x384x128xf32> to vector<384x128xf32>
    %cst_36 = arith.constant dense<0.000000e+00> : vector<256x128xf32>
    %56 = tpu.matmul %53, %55, %cst_36 {dimension_numbers = #tpu.dot_dimension_numbers<[1], [0], [0], [1], [0, 0, 1, 1], [], []>} : vector<256x384xf32>, vector<384x128xf32>, vector<256x128xf32> -> vector<256x128xf32>
    %57 = arith.addf %52, %56 : vector<256x128xf32>
    %c32 = arith.constant 32 : index
    %c0_37 = arith.constant 0 : index
    %58 = vector.load %arg11[%c32, %c0_37] : memref<288x384xf32, #tpu.memory_space<vmem>>, vector<256x384xf32>
    %c2 = arith.constant 2 : index
    %c0_38 = arith.constant 0 : index
    %c0_39 = arith.constant 0 : index
    %59 = vector.load %arg6[%c2, %c0_38, %c0_39] : memref<3x384x128xf32, #tpu.memory_space<vmem>>, vector<1x384x128xf32>
    %60 = vector.shape_cast %59 : vector<1x384x128xf32> to vector<384x128xf32>
    %cst_40 = arith.constant dense<0.000000e+00> : vector<256x128xf32>
    %61 = tpu.matmul %58, %60, %cst_40 {dimension_numbers = #tpu.dot_dimension_numbers<[1], [0], [0], [1], [0, 0, 1, 1], [], []>} : vector<256x384xf32>, vector<384x128xf32>, vector<256x128xf32> -> vector<256x128xf32>
    %62 = arith.addf %57, %61 : vector<256x128xf32>
    %c0_41 = arith.constant 0 : index
    %c0_42 = arith.constant 0 : index
    %63 = vector.load %arg7[%c0_41, %c0_42] : memref<1x128xf32, #tpu.memory_space<vmem>>, vector<1x128xf32>
    %64 = vector.broadcast %63 : vector<1x128xf32> to vector<256x128xf32>
    %65 = arith.addf %62, %64 : vector<256x128xf32>
    %cst_43 = arith.constant 0.000000e+00 : f32
    %66 = vector.broadcast %cst_43 : f32 to vector<256x128xf32>
    %67 = arith.maximumf %65, %66 : vector<256x128xf32>
    %c0_44 = arith.constant 0 : index
    %c0_45 = arith.constant 0 : index
    %68 = vector.load %arg8[%c0_44, %c0_45] : memref<128x128xf32, #tpu.memory_space<vmem>>, vector<128x128xf32>
    %cst_46 = arith.constant dense<0.000000e+00> : vector<256x128xf32>
    %69 = tpu.matmul %67, %68, %cst_46 {dimension_numbers = #tpu.dot_dimension_numbers<[1], [0], [0], [1], [0, 0, 1, 1], [], []>} : vector<256x128xf32>, vector<128x128xf32>, vector<256x128xf32> -> vector<256x128xf32>
    %c0_47 = arith.constant 0 : index
    %c0_48 = arith.constant 0 : index
    %70 = vector.load %arg9[%c0_47, %c0_48] : memref<1x128xf32, #tpu.memory_space<vmem>>, vector<1x128xf32>
    %71 = vector.broadcast %70 : vector<1x128xf32> to vector<256x128xf32>
    %72 = arith.addf %69, %71 : vector<256x128xf32>
    %cst_49 = arith.constant 0.000000e+00 : f32
    %73 = vector.broadcast %cst_49 : f32 to vector<256x128xf32>
    %74 = arith.maximumf %72, %73 : vector<256x128xf32>
    %c16_50 = arith.constant 16 : index
    %c128_51 = arith.constant 128 : index
    %75 = vector.load %arg11[%c16_50, %c128_51] : memref<288x384xf32, #tpu.memory_space<vmem>>, vector<256x128xf32>
    %76 = arith.addf %74, %75 : vector<256x128xf32>
    %c0_52 = arith.constant 0 : index
    %c0_53 = arith.constant 0 : index
    %c0_54 = arith.constant 0 : index
    %77 = vector.load %arg10[%c0_52, %c0_53, %c0_54] : memref<1x256x128xf32, #tpu.memory_space<vmem>>, vector<1x256x128xf32>
    %78 = vector.shape_cast %77 : vector<1x256x128xf32> to vector<256x128xf32>
    %79 = vector.shape_cast %76 : vector<256x128xf32> to vector<1x256x128xf32>
    tpu.vector_store %arg10[%c0_52, %c0_53, %c0_54], %79 {strides = array<i32>} : memref<1x256x128xf32, #tpu.memory_space<vmem>>, vector<1x256x128xf32>,
    return
  }
  func.func @transform_0(%arg0: i32) -> (i32, i32, i32) {
    %c0_i32 = arith.constant 0 : i32
    %c0_i32_0 = arith.constant 0 : i32
    %c0_i32_1 = arith.constant 0 : i32
    return %arg0, %c0_i32, %c0_i32_0 : i32, i32, i32
  }
  func.func @transform_1(%arg0: i32) -> (i32, i32, i32) {
    %c0_i32 = arith.constant 0 : i32
    %c0_i32_0 = arith.constant 0 : i32
    %c0_i32_1 = arith.constant 0 : i32
    return %arg0, %c0_i32, %c0_i32_0 : i32, i32, i32
  }
  func.func @transform_2(%arg0: i32) -> (i32, i32) {
    %c0_i32 = arith.constant 0 : i32
    %c0_i32_0 = arith.constant 0 : i32
    %c0_i32_1 = arith.constant 0 : i32
    return %c0_i32, %c0_i32_0 : i32, i32
  }
  func.func @transform_3(%arg0: i32) -> (i32, i32) {
    %c0_i32 = arith.constant 0 : i32
    %c0_i32_0 = arith.constant 0 : i32
    %c0_i32_1 = arith.constant 0 : i32
    return %c0_i32, %c0_i32_0 : i32, i32
  }
  func.func @transform_4(%arg0: i32) -> (i32, i32) {
    %c0_i32 = arith.constant 0 : i32
    %c0_i32_0 = arith.constant 0 : i32
    %c0_i32_1 = arith.constant 0 : i32
    return %c0_i32, %c0_i32_0 : i32, i32
  }
  func.func @transform_5(%arg0: i32) -> (i32, i32, i32) {
    %c0_i32 = arith.constant 0 : i32
    %c0_i32_0 = arith.constant 0 : i32
    %c0_i32_1 = arith.constant 0 : i32
    %c0_i32_2 = arith.constant 0 : i32
    return %c0_i32, %c0_i32_0, %c0_i32_1 : i32, i32, i32
  }
  func.func @transform_6(%arg0: i32) -> (i32, i32) {
    %c0_i32 = arith.constant 0 : i32
    %c0_i32_0 = arith.constant 0 : i32
    %c0_i32_1 = arith.constant 0 : i32
    return %c0_i32, %c0_i32_0 : i32, i32
  }
  func.func @transform_7(%arg0: i32) -> (i32, i32) {
    %c0_i32 = arith.constant 0 : i32
    %c0_i32_0 = arith.constant 0 : i32
    %c0_i32_1 = arith.constant 0 : i32
    return %c0_i32, %c0_i32_0 : i32, i32
  }
  func.func @transform_8(%arg0: i32) -> (i32, i32) {
    %c0_i32 = arith.constant 0 : i32
    %c0_i32_0 = arith.constant 0 : i32
    %c0_i32_1 = arith.constant 0 : i32
    return %c0_i32, %c0_i32_0 : i32, i32
  }
  func.func @transform_9(%arg0: i32) -> (i32, i32, i32) {
    %c0_i32 = arith.constant 0 : i32
    %c0_i32_0 = arith.constant 0 : i32
    %c0_i32_1 = arith.constant 0 : i32
    return %arg0, %c0_i32, %c0_i32_0 : i32, i32, i32
  }
}

</mosaic_0001>

<bundles_post_ra>
// kernel: srb_forward_nhwc.1
= control target key start
LH: loop header
LB: loop body
LE: loop exit
PB: predicated region body
PF: predicated region fallthrough
CT: control target
= control target key end

     0   :  { %14 = vsyncpa [#allocation4], 0  ;;  %s8522_s0 = inlined_call_operand.vmem [shape: f32[2,256,4], index: 0, kind: input, shape index: {}]   ;;  %s8523_s1 = inlined_call_operand.vmem [shape: f32[2,256,4], index: 1, kind: input, shape index: {}]   ;;  %s8524_s2 = inlined_call_operand.vmem [shape: f32[4,128], index: 2, kind: input, shape index: {}]   ;;  %s8525_s3 = inlined_call_operand.vmem [shape: f32[4,128], index: 3, kind: input, shape index: {}]   ;;  %s8526_s4 = inlined_call_operand.vmem [shape: f32[1,128], index: 4, kind: input, shape index: {}]   ;;  %s8527_s5 = inlined_call_operand.vmem [shape: f32[3,384,128], index: 5, kind: input, shape index: {}]   ;;  %s8528_s6 = inlined_call_operand.vmem [shape: f32[1,128], index: 6, kind: input, shape index: {}]   ;;  %s8529_s7 = inlined_call_operand.vmem [shape: f32[128,128], index: 7, kind: input, shape index: {}]   ;;  %s8530_s8 = inlined_call_operand.vmem [shape: f32[1,128], index: 8, kind: input, shape index: {}]   ;;  %s8531_s9 = inlined_call_operand.hbm [shape: f32[2,256,128], index: 9, kind: output, shape index: {}]  }
   0x1   :  { %16 = vsyncpa [#allocation4 + $0x1], 0  ;;  %s5836_s30 = smov 0   ;;  %s5838_s10 = smov 0  }
   0x2   :  { %s5840_s11 = smov 0   ;;  %s5842_s12 = smov 0  }
   0x3 LB: > { %s5857_s13 = sadd.s32 4294967295, %s5779_s12   ;;  %s4278_s14 = sadd.s32 4294967294, %s5779_s12   ;;  %s5779_s12 = sphi %s5842_s12, %s9192_s12   ;;  %s5775_s11 = sphi %s5840_s11, %s9191_s11   ;;  %s5771_s10 = sphi %s5838_s10, %s9190_s10   ;;  %s5767_s30 = sphi %s5836_s30, %s9189_s30  }
   0x4   : > { %s5861_s15 = sadd.s32 1, %s5779_s12   ;;  %s228_s16 = sadd.s32 1, %s5775_s11 }
   0x5   : > { %s225_s17 = ssub.s32 %s5779_s12, %s5861_s15  ;;  %p238_p0 = scmp.ne.s32.totalorder %s5775_s11, %s5771_s10 }
   0x6   : > { %p226_p1 = scmp.eq.s32.totalorder %s225_s17, 0  ;;  %p239_p2 = scmp.eq.s32.totalorder %s5857_s13, 1 }
   0x7   : > { %p244_p3 = scmp.ne.s32.totalorder %s5771_s10, %s5767_s30  ;;  %p245_p4 = scmp.eq.s32.totalorder %s4278_s14, 1 }
   0x8   : > { %s5872_s18 = scalar_select %p226_p1, %s5775_s11, %s228_s16  }
   0x9   : > { %p5874_p5 = por %p239_p2, %p238_p0  ;;  %p5878_p6 = por %p245_p4, %p244_p3 }
   0xa   : > { %p4281_p7 = scmp.ge.s32.totalorder %s5779_s12, 1  ;;  %p300_p8 = scmp.lt.s32.totalorder %s5779_s12, 3 }
   0xc   : > { %p301_p9 = pnand %p4281_p7, %p300_p8 }
   0xe   : > { %304 = sbr.rel (%p301_p9) target bundleno = 1111 (0x457), region = 56 }
  0x15   : > { %v416_v0 = vld [vmem:[%s8525_s3] sm:$0xf]  ;;  %vm514_vm0 = vcmask 1043456   ;;  %p341_p10 = scmp.lt.s32.totalorder %s5857_s13, 1  ;;  %vm417_vm1 = vcmask 31744   ;;  %v4387_v3 = vld [vmem:[%s8527_s5 + $0x288] sm:$0xff] }
  0x16   : > { %4902 = vmatprep.subr.msk.mxu0 %vm514_vm0, %v416_v0  ;;  %v415_v1 = vld [vmem:[%s8524_s2] sm:$0xf]  ;;  %v4388_v38 = vld [vmem:[%s8527_s5 + $0x290] sm:$0xff]  ;;  %v4389_v39 = vld [vmem:[%s8527_s5 + $0x298] sm:$0xff]  ;;  %s338_s22 = sand.u32 1, %s5771_s10   ;;  %s4459_s29 = sshll.u32 %s5857_s13, 12 }
  0x17   : > { %4903 = vmatpush3.msk.msra.mxu0 %vm514_vm0, %v416_v0  ;;  %s5894_s25 = scalar_select %p341_p10, %s5857_s13, 1  ;;  %v4386_v2 = vld [vmem:[%s8527_s5 + $0x280] sm:$0xff]  ;;  %v5374_v42 = vpack.c.bf16 %v4389_v39, %v4388_v38  ;;  %v4391_v44 = vld [vmem:[%s8527_s5 + $0x2a8] sm:$0xff]  ;;  %v4392_v48 = vld [vmem:[%s8527_s5 + $0x2b0] sm:$0xff] }
  0x18   : > { %4952 = vmatprep.subr.msk.mxu0 %vm514_vm0, %v415_v1  ;;  %v5914_v7 = vpack.c.bf16 %v4387_v3, %v4386_v2  ;;  %v4390_v43 = vld [vmem:[%s8527_s5 + $0x2a0] sm:$0xff]  ;;  %v4393_v49 = vld [vmem:[%s8527_s5 + $0x2b8] sm:$0xff]  ;;  %v4395_v54 = vld [vmem:[%s8527_s5 + $0x2c8] sm:$0xff]  ;;  %s4282_s28 = sshll.u32 %s338_s22, 8  ;;  %s8472_s16 = scalar_lea.hbm %s8531_s9, %s4459_s29 }
  0x19   : > { %s4457_s26 = sshll.u32 %s5894_s25, 8  ;;  %v5378_v47 = vpack.c.bf16 %v4391_v44, %v4390_v43  ;;  %v5382_v52 = vpack.c.bf16 %v4393_v49, %v4392_v48  ;;  %v4394_v53 = vld [vmem:[%s8527_s5 + $0x2c0] sm:$0xff]  ;;  %v4396_v58 = vld [vmem:[%s8527_s5 + $0x2d0] sm:$0xff]  ;;  %v4397_v59 = vld [vmem:[%s8527_s5 + $0x2d8] sm:$0xff]  ;;  %s8378_s25 = scalar_lea.vmem [#allocation3], %s4282_s28 }
  0x1a   : > { %s5909_s21 = scalar_lea.vmem %s8523_s1, %s4457_s26  ;;  %s5980_s24 = scalar_lea.vmem %s8522_s0, %s4457_s26  ;;  %v5386_v57 = vpack.c.bf16 %v4395_v54, %v4394_v53  ;;  %v5390_v62 = vpack.c.bf16 %v4397_v59, %v4396_v58 }
  0x1b   : > { %v383_v4 = vld [vmem:[%s5909_s21] sm:$0xff]  ;;  %v384_v5 = vld [vmem:[%s5909_s21 + $0x8] sm:$0xff]  ;;  %v385_v6 = vld [vmem:[%s5909_s21 + $0x10] sm:$0xff]  ;;  %s4204_s26 = sshll.u32 %s8378_s25, 4  ;;  %s8481_s13 = scalar_lea.sflag [#allocation4], %s338_s22  ;;  %s8474_s26 = int_to_ptr.vmem [resolvable:$true] %s4204_s26 }
  0x1c   : > { %4904 = vmatprep.mubr.msk.f32.mxu0 %vm417_vm1, %v383_v4  ;;  %v386_v8 = vld [vmem:[%s5909_s21 + $0x18] sm:$0xff]  ;;  %v387_v9 = vld [vmem:[%s5909_s21 + $0x20] sm:$0xff]  ;;  %v388_v10 = vld [vmem:[%s5909_s21 + $0x28] sm:$0xff]  ;;  %s5717_s17 = scalar_lea.vmem %s8474_s26, 4096 }
  0x1d   : > { %4905 = vmatmul.mubr.msk.f32.vlgmr.msra.gmra.mrb[0].mxu0 %vm417_vm1, %v384_v5  ;;  %v389_v11 = vld [vmem:[%s5909_s21 + $0x30] sm:$0xff]  ;;  %v390_v12 = vld [vmem:[%s5909_s21 + $0x38] sm:$0xff]  ;;  %v391_v13 = vld [vmem:[%s5909_s21 + $0x40] sm:$0xff]  ;;  %p5718_p11 = scmp.ne.s32.totalorder %s8474_s26, %s5717_s17 }
  0x1e   : > { %4953 = vmatpush3.msk.msra.mxu0 %vm514_vm0, %v415_v1  ;;  %4907 = vmatprep.mubr.msk.f32.mxu0 %vm417_vm1, %v385_v6  ;;  %v392_v14 = vld [vmem:[%s5909_s21 + $0x48] sm:$0xff]  ;;  %v393_v15 = vld [vmem:[%s5909_s21 + $0x50] sm:$0xff]  ;;  %v394_v16 = vld [vmem:[%s5909_s21 + $0x58] sm:$0xff] }
  0x1f   : > { %5371 = vmatprep.subr.bf16.mxu0 %v5914_v7  ;;  %v395_v17 = vld [vmem:[%s5909_s21 + $0x60] sm:$0xff]  ;;  %v396_v18 = vld [vmem:[%s5909_s21 + $0x68] sm:$0xff]  ;;  %v397_v19 = vld [vmem:[%s5909_s21 + $0x70] sm:$0xff]  ;;  %p5719_p12 = pnand %p5718_p11, %p5874_p5 }
  0x20   : > { %v398_v20 = vld [vmem:[%s5909_s21 + $0x78] sm:$0xff]  ;;  %v399_v21 = vld [vmem:[%s5909_s21 + $0x80] sm:$0xff]  ;;  %v400_v22 = vld [vmem:[%s5909_s21 + $0x88] sm:$0xff] }
  0x21   : > { %4908 = vmatmul.mubr.msk.f32.gmra.mrb[2].mxu0 %vm417_vm1, %v386_v8  ;;  %v401_v23 = vld [vmem:[%s5909_s21 + $0x90] sm:$0xff]  ;;  %v402_v24 = vld [vmem:[%s5909_s21 + $0x98] sm:$0xff]  ;;  %v403_v25 = vld [vmem:[%s5909_s21 + $0xa0] sm:$0xff]  ;;  %p5720_p13 = pneg %p5719_p12 }
  0x22   : > { %4910 = vmatprep.mubr.msk.f32.mxu0 %vm417_vm1, %v387_v9  ;;  %v404_v26 = vld [vmem:[%s5909_s21 + $0xa8] sm:$0xff]  ;;  %v405_v27 = vld [vmem:[%s5909_s21 + $0xb0] sm:$0xff]  ;;  %v406_v28 = vld [vmem:[%s5909_s21 + $0xb8] sm:$0xff] }
  0x23   : > { %v407_v29 = vld [vmem:[%s5909_s21 + $0xc0] sm:$0xff]  ;;  %v408_v30 = vld [vmem:[%s5909_s21 + $0xc8] sm:$0xff]  ;;  %v409_v31 = vld [vmem:[%s5909_s21 + $0xd0] sm:$0xff] }
  0x24   : > { %v410_v32 = vld [vmem:[%s5909_s21 + $0xd8] sm:$0xff]  ;;  %v411_v33 = vld [vmem:[%s5909_s21 + $0xe0] sm:$0xff]  ;;  %v412_v34 = vld [vmem:[%s5909_s21 + $0xe8] sm:$0xff] }
  0x25   : > { %4911 = vmatmul.mubr.msk.f32.gmra.mrb[4].mxu0 %vm417_vm1, %v388_v10  ;;  %v413_v35 = vld [vmem:[%s5909_s21 + $0xf0] sm:$0xff]  ;;  %v414_v36 = vld [vmem:[%s5909_s21 + $0xf8] sm:$0xff]  ;;  %v351_v37 = vld [vmem:[%s5980_s24] sm:$0xff]  ;;  %s5783_s21 = smov [#allocation3]  }
  0x26   : > { %4913 = vmatprep.mubr.msk.f32.mxu0 %vm417_vm1, %v389_v11  ;;  %v352_v40 = vld [vmem:[%s5980_s24 + $0x8] sm:$0xff]  ;;  %v353_v41 = vld [vmem:[%s5980_s24 + $0x10] sm:$0xff]  ;;  %v354_v45 = vld [vmem:[%s5980_s24 + $0x18] sm:$0xff]  ;;  %s5721_s23 = sshll.u32 %s5783_s21, 4  ;;  %s5722_s23 = int_to_ptr.vmem [resolvable:$false] %s5721_s23 }
  0x27   : > { %v355_v46 = vld [vmem:[%s5980_s24 + $0x20] sm:$0xff]  ;;  %v356_v50 = vld [vmem:[%s5980_s24 + $0x28] sm:$0xff]  ;;  %v357_v51 = vld [vmem:[%s5980_s24 + $0x30] sm:$0xff]  ;;  %s5723_s27 = scalar_lea.vmem %s5722_s23, 8192  ;;  %p5724_p0 = scmp.lt.s32.totalorder %s8474_s26, %s5722_s23 }
  0x28   : > { %v358_v55 = vld [vmem:[%s5980_s24 + $0x38] sm:$0xff]  ;;  %v359_v56 = vld [vmem:[%s5980_s24 + $0x40] sm:$0xff]  ;;  %v360_v60 = vld [vmem:[%s5980_s24 + $0x48] sm:$0xff]  ;;  %p5725_p1 = scmp.lt.s32.totalorder %s5723_s27, %s5717_s17 }
  0x29   : > { %4914 = vmatmul.mubr.msk.f32.gmra.mrb[6].mxu0 %vm417_vm1, %v390_v12  ;;  %v361_v61 = vld [vmem:[%s5980_s24 + $0x50] sm:$0xff]  ;;  %v362_v63 = vld [vmem:[%s5980_s24 + $0x58] sm:$0xff]  ;;  %v363_v0 = vld [vmem:[%s5980_s24 + $0x60] sm:$0xff] }
  0x2a   : > { %4916 = vmatprep.mubr.msk.f32.mxu0 %vm417_vm1, %v391_v13  ;;  %v364_v1 = vld [vmem:[%s5980_s24 + $0x68] sm:$0xff]  ;;  %v365_v2 = vld [vmem:[%s5980_s24 + $0x70] sm:$0xff]  ;;  %v366_v3 = vld [vmem:[%s5980_s24 + $0x78] sm:$0xff]  ;;  %p5726_p2 = por %p5725_p1, %p5724_p0 }
  0x2b   : > { %v367_v4 = vld [vmem:[%s5980_s24 + $0x80] sm:$0xff]  ;;  %v368_v5 = vld [vmem:[%s5980_s24 + $0x88] sm:$0xff]  ;;  %v369_v6 = vld [vmem:[%s5980_s24 + $0x90] sm:$0xff] }
  0x2c   : > { %v371_v8 = vld [vmem:[%s5980_s24 + $0xa0] sm:$0xff]  ;;  %v372_v9 = vld [vmem:[%s5980_s24 + $0xa8] sm:$0xff]  ;;  %v373_v10 = vld [vmem:[%s5980_s24 + $0xb0] sm:$0xff]  ;;  %p5727_p3 = pnand %p5726_p2, %p5720_p13 }
  0x2d   : > { %4917 = vmatmul.mubr.msk.f32.gmra.mrb[8].mxu0 %vm417_vm1, %v392_v14  ;;  %v374_v11 = vld [vmem:[%s5980_s24 + $0xb8] sm:$0xff]  ;;  %v375_v12 = vld [vmem:[%s5980_s24 + $0xc0] sm:$0xff]  ;;  %v376_v13 = vld [vmem:[%s5980_s24 + $0xc8] sm:$0xff] }
  0x2e   : > { %4919 = vmatprep.mubr.msk.f32.mxu0 %vm417_vm1, %v393_v15  ;;  %v377_v14 = vld [vmem:[%s5980_s24 + $0xd0] sm:$0xff]  ;;  %v378_v15 = vld [vmem:[%s5980_s24 + $0xd8] sm:$0xff] }
  0x31   : > { %4920 = vmatmul.mubr.msk.f32.gmra.mrb[10].mxu0 %vm417_vm1, %v394_v16  ;;  %v379_v16 = vld [vmem:[%s5980_s24 + $0xe0] sm:$0xff] }
  0x32   : > { %4922 = vmatprep.mubr.msk.f32.mxu0 %vm417_vm1, %v395_v17  ;;  %v380_v17 = vld [vmem:[%s5980_s24 + $0xe8] sm:$0xff] }
  0x35   : > { %4923 = vmatmul.mubr.msk.f32.gmra.mrb[12].mxu0 %vm417_vm1, %v396_v18  ;;  %v381_v18 = vld [vmem:[%s5980_s24 + $0xf0] sm:$0xff] }
  0x36   : > { %4925 = vmatprep.mubr.msk.f32.mxu0 %vm417_vm1, %v397_v19  ;;  %v382_v19 = vld [vmem:[%s5980_s24 + $0xf8] sm:$0xff] }
  0x39   : > { %4926 = vmatmul.mubr.msk.f32.gmra.mrb[14].mxu0 %vm417_vm1, %v398_v20  ;;  %v4354_v20 = vld [vmem:[%s8527_s5 + $0x180] sm:$0xff] }
  0x3a   : > { %4928 = vmatprep.mubr.msk.f32.mxu0 %vm417_vm1, %v399_v21  ;;  %v4355_v21 = vld [vmem:[%s8527_s5 + $0x188] sm:$0xff] }
  0x3d   : > { %4929 = vmatmul.mubr.msk.f32.gmra.mrb[16].mxu0 %vm417_vm1, %v400_v22  ;;  %v5323_v22 = vpack.c.bf16 %v4355_v21, %v4354_v20  ;;  %v4376_v20 = vld [vmem:[%s8527_s5 + $0x230] sm:$0xff]  ;;  %v4377_v21 = vld [vmem:[%s8527_s5 + $0x238] sm:$0xff] }
  0x3e   : > { %4931 = vmatprep.mubr.msk.f32.mxu0 %vm417_vm1, %v401_v23  ;;  %v4398_v23 = vld [vmem:[%s8527_s5 + $0x2e0] sm:$0xff] }
  0x41   : > { %4932 = vmatmul.mubr.msk.f32.gmra.mrb[18].mxu0 %vm417_vm1, %v402_v24  ;;  %v4399_v24 = vld [vmem:[%s8527_s5 + $0x2e8] sm:$0xff] }
  0x42   : > { %4934 = vmatprep.mubr.msk.f32.mxu0 %vm417_vm1, %v403_v25  ;;  %v1150_v25 = vlaneseq }
  0x45   : > { %4935 = vmatmul.mubr.msk.f32.gmra.mrb[20].mxu0 %vm417_vm1, %v404_v26  ;;  %v8533_v26 = vmov 0.0|0.0  }
  0x46   : > { %4937 = vmatprep.mubr.msk.f32.mxu0 %vm417_vm1, %v405_v27  ;;  %5322 = vmatprep.subr.bf16.mxu1 %v8533_v26  ;;  %v5394_v27 = vpack.c.bf16 %v4399_v24, %v4398_v23  ;;  %v5356_v23 = vpack.c.bf16 %v4377_v21, %v4376_v20  ;;  %v6313_v21 = vld [vmem:[%s8526_s4] ss:$0 sm:$0xff] }
  0x47   : > { %5324 = vmatpush1.bf16.msra.mxu1 %v5323_v22 }
  0x48   : > { %5325 = vmatprep.subr.bf16.mxu1 %v8533_v26 }
  0x49   : > { %4938 = vmatmul.mubr.msk.f32.gmra.mrb[22].mxu0 %vm417_vm1, %v406_v28  ;;  %v6094_v28 = vshrl.u32 %v1150_v25, 7  ;;  %v4378_v25 = vld [vmem:[%s8527_s5 + $0x240] sm:$0xff] }
  0x4a   : > { %4940 = vmatprep.mubr.msk.f32.mxu0 %vm417_vm1, %v407_v29  ;;  %v4356_v29 = vld [vmem:[%s8527_s5 + $0x190] sm:$0xff] }
  0x4b   : > { %v6229_v24 = vadd.s32 168, %v6094_v28  ;;  %vm8605_vm2 = vcmp.lt.s32.totalorder %v6094_v28, 7 }
  0x4d   : > { %4941 = vmatmul.mubr.msk.f32.gmra.mrb[24].mxu0 %vm417_vm1, %v408_v30  ;;  %v4357_v30 = vld [vmem:[%s8527_s5 + $0x198] sm:$0xff] }
  0x4e   : > { %4943 = vmatprep.mubr.msk.f32.mxu0 %vm417_vm1, %v409_v31  ;;  %v4400_v31 = vld [vmem:[%s8527_s5 + $0x2f0] sm:$0xff] }
  0x51   : > { %4944 = vmatmul.mubr.msk.f32.gmra.mrb[26].mxu0 %vm417_vm1, %v410_v32  ;;  %v5326_v32 = vpack.c.bf16 %v4357_v30, %v4356_v29  ;;  %v4379_v29 = vld [vmem:[%s8527_s5 + $0x248] sm:$0xff] }
  0x52   : > { %4946 = vmatprep.mubr.msk.f32.mxu0 %vm417_vm1, %v411_v33  ;;  %v4401_v33 = vld [vmem:[%s8527_s5 + $0x2f8] sm:$0xff]  ;;  %v5359_v30 = vpack.c.bf16 %v4379_v29, %v4378_v25 }
  0x53   : > { %5327 = vmatpush1.bf16.msra.mxu1 %v5326_v32  ;;  %v4380_v32 = vld [vmem:[%s8527_s5 + $0x250] sm:$0xff] }
  0x54   : > { %5328 = vmatprep.subr.bf16.mxu1 %v8533_v26 }
  0x55   : > { %4947 = vmatmul.mubr.msk.f32.gmra.mrb[28].mxu0 %vm417_vm1, %v412_v34  ;;  %v5398_v34 = vpack.c.bf16 %v4401_v33, %v4400_v31  ;;  %v6240_v31 = vadd.s32 184, %v6094_v28  ;;  %v4381_v33 = vld [vmem:[%s8527_s5 + $0x258] sm:$0xff] }
  0x56   : > { %4949 = vmatprep.mubr.msk.f32.mxu0 %vm417_vm1, %v413_v35  ;;  %v6110_v35 = vadd.s32 8, %v6094_v28 }
  0x58   : > { %v1194_v38 = vand.u32 15, %v6110_v35 }
  0x59   : > { %4950 = vmatmul.mubr.msk.f32.gmra.mrb[30].mxu0 %vm417_vm1, %v414_v36  ;;  %v4358_v36 = vld [vmem:[%s8527_s5 + $0x1a0] sm:$0xff] }
  0x5a   : > { %4954 = vmatprep.mubr.msk.f32.mxu0 %vm417_vm1, %v351_v37  ;;  %v4359_v37 = vld [vmem:[%s8527_s5 + $0x1a8] sm:$0xff]  ;;  %vm6355_vm3 = vcmp.ne.s32.totalorder %v1194_v38, 15  ;;  %v2149_v38 = vld [vmem:[%s8527_s5 + $0x120] sm:$0xff] }
  0x5b   : > { %v5329_v39 = vpack.c.bf16 %v4359_v37, %v4358_v36  ;;  %v5362_v36 = vpack.c.bf16 %v4381_v33, %v4380_v32  ;;  %v6251_v37 = vadd.s32 200, %v6094_v28 }
  0x5d   : > { %4955 = vmatmul.mubr.msk.f32.vlgmr.msra.gmra.mrb[0].mxu0 %vm417_vm1, %v352_v40  ;;  %v6121_v40 = vadd.s32 24, %v6094_v28  ;;  %5330 = vmatpush1.bf16.msra.mxu1 %v5329_v39  ;;  %v4382_v39 = vld [vmem:[%s8527_s5 + $0x260] sm:$0xff] }
  0x5e   : > { %4957 = vmatprep.mubr.msk.f32.mxu0 %vm417_vm1, %v353_v41  ;;  %5373 = vmatpush3.bf16.msra.mxu0 %v5914_v7  ;;  %v370_v7 = vld [vmem:[%s5980_s24 + $0x98] sm:$0xff]  ;;  %v4360_v41 = vld [vmem:[%s8527_s5 + $0x1b0] sm:$0xff] }
  0x5f   : > { %5375 = vmatprep.subr.bf16.mxu0 %v5374_v42  ;;  %5331 = vmatprep.subr.bf16.mxu1 %v8533_v26  ;;  %v1208_v43 = vand.u32 15, %v6121_v40 }
  0x61   : > { %4958 = vmatmul.mubr.msk.f32.gmra.mrb[2].mxu0 %vm417_vm1, %v354_v45  ;;  %v6132_v45 = vadd.s32 40, %v6094_v28  ;;  %vm6388_vm4 = vcmp.ne.s32.totalorder %v1208_v43, 15  ;;  %v2151_v43 = vld [vmem:[%s8527_s5 + $0x130] sm:$0xff] }
  0x62   : > { %4960 = vmatprep.mubr.msk.f32.mxu0 %vm417_vm1, %v355_v46  ;;  %5377 = vmatpush3.bf16.msra.mxu0 %v5374_v42  ;;  %v4361_v42 = vld [vmem:[%s8527_s5 + $0x1b8] sm:$0xff]  ;;  %v4362_v46 = vld [vmem:[%s8527_s5 + $0x1c0] sm:$0xff] }
  0x63   : > { %5379 = vmatprep.subr.bf16.mxu0 %v5378_v47  ;;  %v5332_v44 = vpack.c.bf16 %v4361_v42, %v4360_v41  ;;  %v1222_v48 = vand.u32 15, %v6132_v45  ;;  %v4383_v41 = vld [vmem:[%s8527_s5 + $0x268] sm:$0xff] }
  0x65   : > { %4961 = vmatmul.mubr.msk.f32.gmra.mrb[4].mxu0 %vm417_vm1, %v356_v50  ;;  %5333 = vmatpush1.bf16.msra.mxu1 %v5332_v44  ;;  %v6143_v50 = vadd.s32 56, %v6094_v28  ;;  %v5365_v44 = vpack.c.bf16 %v4383_v41, %v4382_v39  ;;  %vm6424_vm5 = vcmp.ne.s32.totalorder %v1222_v48, 15  ;;  %v2153_v48 = vld [vmem:[%s8527_s5 + $0x140] sm:$0xff] }
  0x66   : > { %4963 = vmatprep.mubr.msk.f32.mxu0 %vm417_vm1, %v357_v51  ;;  %5381 = vmatpush3.bf16.msra.mxu0 %v5378_v47  ;;  %v4363_v47 = vld [vmem:[%s8527_s5 + $0x1c8] sm:$0xff]  ;;  %v4364_v51 = vld [vmem:[%s8527_s5 + $0x1d0] sm:$0xff] }
  0x67   : > { %5383 = vmatprep.subr.bf16.mxu0 %v5382_v52  ;;  %5334 = vmatprep.subr.bf16.mxu1 %v8533_v26  ;;  %v5335_v49 = vpack.c.bf16 %v4363_v47, %v4362_v46  ;;  %v1236_v53 = vand.u32 15, %v6143_v50  ;;  %v6262_v46 = vadd.s32 216, %v6094_v28  ;;  %v4384_v47 = vld [vmem:[%s8527_s5 + $0x270] sm:$0xff] }
  0x69   : > { %4964 = vmatmul.mubr.msk.f32.gmra.mrb[6].mxu0 %vm417_vm1, %v358_v55  ;;  %5336 = vmatpush1.bf16.msra.mxu1 %v5335_v49  ;;  %v6154_v55 = vadd.s32 72, %v6094_v28  ;;  %v4385_v49 = vld [vmem:[%s8527_s5 + $0x278] sm:$0xff]  ;;  %vm6457_vm6 = vcmp.ne.s32.totalorder %v1236_v53, 15  ;;  %v2155_v53 = vld [vmem:[%s8527_s5 + $0x150] sm:$0xff] }
  0x6a   : > { %4966 = vmatprep.mubr.msk.f32.mxu0 %vm417_vm1, %v359_v56  ;;  %5385 = vmatpush3.bf16.msra.mxu0 %v5382_v52  ;;  %v4365_v52 = vld [vmem:[%s8527_s5 + $0x1d8] sm:$0xff]  ;;  %v4366_v56 = vld [vmem:[%s8527_s5 + $0x1e0] sm:$0xff] }
  0x6b   : > { %5387 = vmatprep.subr.bf16.mxu0 %v5386_v57  ;;  %5337 = vmatprep.subr.bf16.mxu1 %v8533_v26  ;;  %v5338_v54 = vpack.c.bf16 %v4365_v52, %v4364_v51  ;;  %v1250_v58 = vand.u32 15, %v6154_v55  ;;  %v5368_v52 = vpack.c.bf16 %v4385_v49, %v4384_v47 }
  0x6d   : > { %4967 = vmatmul.mubr.msk.f32.gmra.mrb[8].mxu0 %vm417_vm1, %v360_v60  ;;  %5339 = vmatpush1.bf16.msra.mxu1 %v5338_v54  ;;  %v6165_v60 = vadd.s32 88, %v6094_v28  ;;  %v6273_v54 = vadd.s32 232, %v6094_v28  ;;  %vm6492_vm7 = vcmp.ne.s32.totalorder %v1250_v58, 15  ;;  %v2157_v58 = vld [vmem:[%s8527_s5 + $0x160] sm:$0xff] }
  0x6e   : > { %4969 = vmatprep.mubr.msk.f32.mxu0 %vm417_vm1, %v361_v61  ;;  %5389 = vmatpush3.bf16.msra.mxu0 %v5386_v57  ;;  %v4367_v57 = vld [vmem:[%s8527_s5 + $0x1e8] sm:$0xff]  ;;  %v4368_v61 = vld [vmem:[%s8527_s5 + $0x1f0] sm:$0xff] }
  0x6f   : > { %5391 = vmatprep.subr.bf16.mxu0 %v5390_v62  ;;  %5340 = vmatprep.subr.bf16.mxu1 %v8533_v26  ;;  %v5341_v59 = vpack.c.bf16 %v4367_v57, %v4366_v56 }
  0x71   : > { %4970 = vmatmul.mubr.msk.f32.gmra.mrb[10].mxu0 %vm417_vm1, %v362_v63  ;;  %5342 = vmatpush1.bf16.msra.mxu1 %v5341_v59  ;;  %v6279_v59 = vadd.s32 248, %v6094_v28 }
  0x72   : > { %4972 = vmatprep.mubr.msk.f32.mxu0 %vm417_vm1, %v363_v0  ;;  %5393 = vmatpush3.bf16.msra.mxu0 %v5390_v62  ;;  %v4369_v62 = vld [vmem:[%s8527_s5 + $0x1f8] sm:$0xff] }
  0x73   : > { %5395 = vmatprep.subr.bf16.mxu0 %v5394_v27  ;;  %5343 = vmatprep.subr.bf16.mxu1 %v8533_v26  ;;  %v5344_v0 = vpack.c.bf16 %v4369_v62, %v4368_v61  ;;  %v6283_v62 = vadd.s32 16, %v6094_v28 }
  0x75   : > { %4973 = vmatmul.mubr.msk.f32.gmra.mrb[12].mxu0 %vm417_vm1, %v364_v1  ;;  %v6176_v1 = vadd.s32 104, %v6094_v28  ;;  %5345 = vmatpush1.bf16.msra.mxu1 %v5344_v0 }
  0x76   : > { %4975 = vmatprep.mubr.msk.f32.mxu0 %vm417_vm1, %v365_v2  ;;  %5397 = vmatpush3.bf16.msra.mxu0 %v5394_v27  ;;  %v4370_v2 = vld [vmem:[%s8527_s5 + $0x200] sm:$0xff] }
  0x77   : > { %5399 = vmatprep.subr.bf16.mxu0 %v5398_v34  ;;  %5346 = vmatprep.subr.bf16.mxu1 %v8533_v26 }
  0x79   : > { %4976 = vmatmul.mubr.msk.f32.gmra.mrb[14].mxu0 %vm417_vm1, %v366_v3  ;;  %v4371_v3 = vld [vmem:[%s8527_s5 + $0x208] sm:$0xff] }
  0x7a   : > { %4978 = vmatprep.mubr.msk.f32.mxu0 %vm417_vm1, %v367_v4  ;;  %5401 = vmatpush3.bf16.msra.mxu0 %v5398_v34 }
  0x7d   : > { %4979 = vmatmul.mubr.msk.f32.gmra.mrb[16].mxu0 %vm417_vm1, %v368_v5  ;;  %v5347_v5 = vpack.c.bf16 %v4371_v3, %v4370_v2  ;;  %v6287_v2 = vadd.s32 32, %v6094_v28 }
  0x7e   : > { %4981 = vmatprep.mubr.msk.f32.mxu0 %vm417_vm1, %v369_v6  ;;  %v2145_v6 = vld [vmem:[%s8527_s5 + $0x100] sm:$0xff] }
  0x7f   : > { %5348 = vmatpush1.bf16.msra.mxu1 %v5347_v5  ;;  %v6291_v5 = vadd.s32 48, %v6094_v28 }
  0x80   : > { %5349 = vmatprep.subr.bf16.mxu1 %v8533_v26 }
  0x81   : > { %4982 = vmatmul.mubr.msk.f32.gmra.mrb[18].mxu0 %vm417_vm1, %v370_v7  ;;  %v2146_v7 = vld [vmem:[%s8527_s5 + $0x108] sm:$0xff] }
  0x82   : > { %4984 = vmatprep.mubr.msk.f32.mxu0 %vm417_vm1, %v371_v8  ;;  %v6193_v8 = vadd.s32 120, %v6094_v28 }
  0x85   : > { %4985 = vmatmul.mubr.msk.f32.gmra.mrb[20].mxu0 %vm417_vm1, %v372_v9  ;;  %v6195_v9 = vpack.c.bf16 %v2146_v7, %v2145_v6  ;;  %v6295_v7 = vadd.s32 64, %v6094_v28 }
  0x86   : > { %4987 = vmatprep.mubr.msk.f32.mxu0 %vm417_vm1, %v373_v10  ;;  %v4372_v10 = vld [vmem:[%s8527_s5 + $0x210] sm:$0xff] }
  0x87   : > { %5451 = vmatprep.subr.bf16.mxu0 %v6195_v9 }
  0x89   : > { %4988 = vmatmul.mubr.msk.f32.gmra.mrb[22].mxu0 %vm417_vm1, %v374_v11  ;;  %v4373_v11 = vld [vmem:[%s8527_s5 + $0x218] sm:$0xff] }
  0x8a   : > { %4990 = vmatprep.mubr.msk.f32.mxu0 %vm417_vm1, %v375_v12 }
  0x8d   : > { %4991 = vmatmul.mubr.msk.f32.gmra.mrb[24].mxu0 %vm417_vm1, %v376_v13  ;;  %v5350_v13 = vpack.c.bf16 %v4373_v11, %v4372_v10  ;;  %v6299_v11 = vadd.s32 80, %v6094_v28 }
  0x8e   : > { %4993 = vmatprep.mubr.msk.f32.mxu0 %vm417_vm1, %v377_v14  ;;  %v6207_v14 = vadd.s32 136, %v6094_v28 }
  0x8f   : > { %5351 = vmatpush1.bf16.msra.mxu1 %v5350_v13 }
  0x90   : > { %5352 = vmatprep.subr.bf16.mxu1 %v8533_v26 }
  0x91   : > { %4994 = vmatmul.mubr.msk.f32.gmra.mrb[26].mxu0 %vm417_vm1, %v378_v15  ;;  %v4374_v15 = vld [vmem:[%s8527_s5 + $0x220] sm:$0xff] }
  0x92   : > { %4996 = vmatprep.mubr.msk.f32.mxu0 %vm417_vm1, %v379_v16  ;;  %v4375_v16 = vld [vmem:[%s8527_s5 + $0x228] sm:$0xff] }
  0x95   : > { %4997 = vmatmul.mubr.msk.f32.gmra.mrb[28].mxu0 %vm417_vm1, %v380_v17 }
  0x96   : > { %4999 = vmatprep.mubr.msk.f32.mxu0 %vm417_vm1, %v381_v18  ;;  %v5353_v18 = vpack.c.bf16 %v4375_v16, %v4374_v15  ;;  %v6303_v15 = vadd.s32 96, %v6094_v28  ;;  %v4408_v16 = vld [vmem:[%s8527_s5 + $0x330] sm:$0xff] }
  0x98   : > { %5354 = vmatpush1.bf16.msra.mxu1 %v5353_v18  ;;  %8732 = vst [vmem:[#allocation6_spill] sm:$0xff] %v6303_v15  ;;  %v6307_v18 = vadd.s32 112, %v6094_v28 }
  0x99   : > { %5000 = vmatmul.mubr.msk.f32.gmra.mrb[30].mxu0 %vm417_vm1, %v382_v19  ;;  %v6218_v19 = vadd.s32 152, %v6094_v28  ;;  %5355 = vmatprep.subr.bf16.mxu1 %v8533_v26 }
  0x9a   : > { %8733 = vst [vmem:[#allocation7_spill] sm:$0xff] %v6307_v18 }
  0x9c   : > { %5357 = vmatpush1.bf16.msra.mxu1 %v5356_v23  ;;  %v6316_v23 = vadd.s32 128, %v6094_v28 }
  0x9d   : > { %5358 = vmatprep.subr.bf16.mxu1 %v8533_v26 }
  0x9e   : > { %8734 = vst [vmem:[#allocation8_spill] sm:$0xff] %v6316_v23 }
  0xa0   : > { %5360 = vmatpush1.bf16.msra.mxu1 %v5359_v30 }
  0xa1   : > { %5361 = vmatprep.subr.bf16.mxu1 %v8533_v26 }
  0xa4   : > { %5363 = vmatpush1.bf16.msra.mxu1 %v5362_v36 }
  0xa5   : > { %5364 = vmatprep.subr.bf16.mxu1 %v8533_v26 }
  0xa8   : > { %5366 = vmatpush1.bf16.msra.mxu1 %v5365_v44 }
  0xa9   : > { %5367 = vmatprep.subr.bf16.mxu1 %v8533_v26 }
  0xac   : > { %5369 = vmatpush1.bf16.msra.mxu1 %v5368_v52 }
  0xad   : > { %5402 = vmatprep.subr.bf16.mxu1 %v8533_v26 }
 0x130   : > { %v4956_v25 = vpop.f32.mrb[0].mxu0 }
 0x131   : > { %v6320_v30 = vadd.f32 %v4956_v25, %v6313_v21  ;;  %v908_v32 = vpop.f32.mrb[1].mxu0  ;;  %v2147_v25 = vld [vmem:[%s8527_s5 + $0x110] sm:$0xff] }
 0x132   : > { %v6323_v33 = vadd.f32 %v6313_v21, %v908_v32  ;;  %v2148_v32 = vld [vmem:[%s8527_s5 + $0x118] sm:$0xff] }
 0x133   : > { %8735 = vst [vmem:[#allocation9_spill] sm:$0xff] %v6320_v30  ;;  %v1793_v36 = vrot.slane %v6320_v30, 1  ;;  %v5454_v6 = vpack.c.bf16 %v2148_v32, %v2147_v25  ;;  %v8745_v25 = vmov 0 }
 0x134   : > { %8736 = vst [vmem:[#allocation10_spill] sm:$0xff] %v6323_v33  ;;  %v4959_v39 = vpop.f32.mrb[2].mxu0  ;;  %2280 = vmatprep.mubr.f32.mxu1 %v6323_v33  ;;  %v8532_v41 = vrot.slane %v6323_v33, 1  ;;  %v8746_v25 = vsel %vm6388_vm4, 4294967295, %v8745_v25 }
 0x135   : > { %v6330_v44 = vadd.f32 %v4959_v39, %v6313_v21  ;;  %v918_v47 = vpop.f32.mrb[3].mxu0  ;;  %v6348_v39 = vadd.s32 144, %v6094_v28  ;;  %8747 = vst [vmem:[#allocation17_spill] sm:$0xff] %v8746_v25 }
 0x136   : > { %v6333_v49 = vadd.f32 %v6313_v21, %v918_v47  ;;  %v6339_v52 = vsel %vm8605_vm2, %v8532_v41, %v1793_v36 }
 0x137   : > { %8737 = vst [vmem:[#allocation11_spill] sm:$0xff] %v6330_v44  ;;  %8739 = vst [vmem:[#allocation13_spill] sm:$0xff] %v6348_v39  ;;  %5034 = vmatprep.mubr.f32.mxu0 %v6339_v52  ;;  %v1795_v47 = vrot.slane %v6330_v44, 1 }
 0x138   : > { %8738 = vst [vmem:[#allocation12_spill] sm:$0xff] %v6333_v49  ;;  %v4962_v29 = vpop.f32.mrb[4].mxu0  ;;  %v1794_v20 = vrot.slane %v6333_v49, 1 }
 0x139   : > { %v6360_v13 = vadd.f32 %v4962_v29, %v6313_v21  ;;  %v928_v10 = vpop.f32.mrb[5].mxu0  ;;  %v2150_v29 = vld [vmem:[%s8527_s5 + $0x128] sm:$0xff] }
 0x13a   : > { %v6364_v0 = vadd.f32 %v6313_v21, %v928_v10  ;;  %v6368_v61 = vsel %vm8605_vm2, %v1793_v36, %v1794_v20  ;;  %v6372_v35 = vsel %vm8605_vm2, %v1794_v20, %v1795_v47  ;;  %v5458_v41 = vpack.c.bf16 %v2150_v29, %v2149_v38 }
 0x13b   : > { %8742 = vst [vmem:[#allocation14_spill] sm:$0xff] %v6360_v13  ;;  %8744 = vst [vmem:[#allocation16_spill] sm:$0xff] %v6372_v35  ;;  %5035 = vmatmul.mubr.msk.f32.vlgmr.msra.gmra.mrb[32].mxu0 %vm6355_vm3, %v6368_v61  ;;  %v1797_v10 = vrot.slane %v6360_v13, 1 }
 0x13c   : > { %8743 = vst [vmem:[#allocation15_spill] sm:$0xff] %v6364_v0  ;;  %v4965_v36 = vpop.f32.mrb[6].mxu0  ;;  %5037 = vmatprep.mubr.f32.mxu0 %v6372_v35  ;;  %v1796_v20 = vrot.slane %v6364_v0, 1  ;;  %5453 = vmatpush3.bf16.msra.mxu0 %v6195_v9  ;;  %v2152_v9 = vld [vmem:[%s8527_s5 + $0x138] sm:$0xff] }
 0x13d   : > { %v6394_v32 = vadd.f32 %v4965_v36, %v6313_v21  ;;  %v938_v3 = vpop.f32.mrb[7].mxu0  ;;  %5455 = vmatprep.subr.bf16.mxu0 %v5454_v6  ;;  %v8753_v36 = vmov 0  ;;  %v5462_v42 = vpack.c.bf16 %v2152_v9, %v2151_v43  ;;  %v8760_v9 = vmov 0 }
 0x13e   : > { %v6397_v57 = vadd.f32 %v6313_v21, %v938_v3  ;;  %v6401_v56 = vsel %vm8605_vm2, %v1795_v47, %v1796_v20  ;;  %v6405_v40 = vsel %vm8605_vm2, %v1796_v20, %v1797_v10  ;;  %v6418_v47 = vadd.s32 160, %v6094_v28  ;;  %v8950_v25 = vld [vmem:[#allocation13_spill] sm:$0xff] }
 0x13f   : > { %8748 = vst [vmem:[#allocation18_spill] sm:$0xff] %v6394_v32  ;;  %8750 = vst [vmem:[#allocation20_spill] sm:$0xff] %v6401_v56  ;;  %5038 = vmatmul.mubr.msk.f32.gmra.mrb[34].mxu0 %vm6388_vm4, %v6401_v56  ;;  %v1799_v3 = vrot.slane %v6394_v32, 1  ;;  %v8754_v36 = vsel %vm6424_vm5, 4294967295, %v8753_v36  ;;  %v8761_v9 = vsel %vm6457_vm6, 4294967295, %v8760_v9 }
 0x140   : > { %8749 = vst [vmem:[#allocation19_spill] sm:$0xff] %v6397_v57  ;;  %8751 = vst [vmem:[#allocation21_spill] sm:$0xff] %v6405_v40  ;;  %v4968_v38 = vpop.f32.mrb[8].mxu0  ;;  %5040 = vmatprep.mubr.f32.mxu0 %v6405_v40  ;;  %v1798_v29 = vrot.slane %v6397_v57, 1  ;;  %5457 = vmatpush3.bf16.msra.mxu0 %v5454_v6  ;;  %v2154_v6 = vld [vmem:[%s8527_s5 + $0x148] sm:$0xff] }
 0x141   : > { %8752 = vst [vmem:[#allocation22_spill] sm:$0xff] %v6418_v47  ;;  %8755 = vst [vmem:[#allocation23_spill] sm:$0xff] %v8754_v36  ;;  %v6429_v20 = vadd.f32 %v4968_v38, %v6313_v21  ;;  %v948_v51 = vpop.f32.mrb[9].mxu0  ;;  %5459 = vmatprep.subr.bf16.mxu0 %v5458_v41  ;;  %v5466_v34 = vpack.c.bf16 %v2154_v6, %v2153_v48 }
 0x142   : > { %v6433_v27 = vadd.f32 %v6313_v21, %v948_v51  ;;  %v6437_v22 = vsel %vm8605_vm2, %v1797_v10, %v1798_v29  ;;  %v6441_v45 = vsel %vm8605_vm2, %v1798_v29, %v1799_v3  ;;  %8762 = vst [vmem:[#allocation28_spill] sm:$0xff] %v8761_v9 }
 0x143   : > { %8756 = vst [vmem:[#allocation24_spill] sm:$0xff] %v6429_v20  ;;  %8758 = vst [vmem:[#allocation26_spill] sm:$0xff] %v6437_v22  ;;  %5041 = vmatmul.mubr.msk.f32.gmra.mrb[36].mxu0 %vm6424_vm5, %v6437_v22  ;;  %v1801_v51 = vrot.slane %v6429_v20, 1 }
 0x144   : > { %8757 = vst [vmem:[#allocation25_spill] sm:$0xff] %v6433_v27  ;;  %8759 = vst [vmem:[#allocation27_spill] sm:$0xff] %v6441_v45  ;;  %v4971_v10 = vpop.f32.mrb[10].mxu0  ;;  %5043 = vmatprep.mubr.f32.mxu0 %v6441_v45  ;;  %v1800_v43 = vrot.slane %v6433_v27, 1  ;;  %5461 = vmatpush3.bf16.msra.mxu0 %v5458_v41  ;;  %v2156_v41 = vld [vmem:[%s8527_s5 + $0x158] sm:$0xff] }
 0x145   : > { %v6462_v38 = vadd.f32 %v4971_v10, %v6313_v21  ;;  %v958_v29 = vpop.f32.mrb[11].mxu0  ;;  %5463 = vmatprep.subr.bf16.mxu0 %v5462_v42  ;;  %v5470_v4 = vpack.c.bf16 %v2156_v41, %v2155_v53  ;;  %v8775_v41 = vand.u32 15, %v6165_v60 }
 0x146   : > { %v6465_v26 = vadd.f32 %v6313_v21, %v958_v29  ;;  %v6469_v17 = vsel %vm8605_vm2, %v1799_v3, %v1800_v43  ;;  %v6473_v50 = vsel %vm8605_vm2, %v1800_v43, %v1801_v51  ;;  %v6486_v3 = vadd.s32 176, %v6094_v28 }
 0x147   : > { %8763 = vst [vmem:[#allocation29_spill] sm:$0xff] %v6462_v38  ;;  %8765 = vst [vmem:[#allocation31_spill] sm:$0xff] %v6469_v17  ;;  %5044 = vmatmul.mubr.msk.f32.gmra.mrb[38].mxu0 %vm6457_vm6, %v6469_v17  ;;  %v1803_v48 = vrot.slane %v6462_v38, 1  ;;  %v8768_v43 = vmov 0  ;;  %vm6525_vm8 = vcmp.ne.s32.totalorder %v8775_v41, 15  ;;  %v8785_v41 = vmov 0 }
 0x148   : > { %8764 = vst [vmem:[#allocation30_spill] sm:$0xff] %v6465_v26  ;;  %8766 = vst [vmem:[#allocation32_spill] sm:$0xff] %v6473_v50  ;;  %v4974_v6 = vpop.f32.mrb[12].mxu0  ;;  %5046 = vmatprep.mubr.f32.mxu0 %v6473_v50  ;;  %v1802_v10 = vrot.slane %v6465_v26, 1  ;;  %v8769_v43 = vsel %vm6492_vm7, 4294967295, %v8768_v43  ;;  %5465 = vmatpush3.bf16.msra.mxu0 %v5462_v42  ;;  %v2158_v42 = vld [vmem:[%s8527_s5 + $0x168] sm:$0xff] }
 0x149   : > { %8767 = vst [vmem:[#allocation33_spill] sm:$0xff] %v6486_v3  ;;  %8770 = vst [vmem:[#allocation34_spill] sm:$0xff] %v8769_v43  ;;  %v6497_v29 = vadd.f32 %v4974_v6, %v6313_v21  ;;  %v968_v12 = vpop.f32.mrb[13].mxu0  ;;  %5467 = vmatprep.subr.bf16.mxu0 %v5466_v34  ;;  %v8776_v6 = vmov 0  ;;  %v5474_v3 = vpack.c.bf16 %v2158_v42, %v2157_v58 }
 0x14a   : > { %v6501_v47 = vadd.f32 %v6313_v21, %v968_v12  ;;  %v6505_v39 = vsel %vm8605_vm2, %v1801_v51, %v1802_v10  ;;  %v6509_v55 = vsel %vm8605_vm2, %v1802_v10, %v1803_v48  ;;  %v8777_v6 = vsel %vm6525_vm8, 4294967295, %v8776_v6 }
 0x14b   : > { %8771 = vst [vmem:[#allocation35_spill] sm:$0xff] %v6497_v29  ;;  %8773 = vst [vmem:[#allocation37_spill] sm:$0xff] %v6505_v39  ;;  %5047 = vmatmul.mubr.msk.f32.gmra.mrb[40].mxu0 %vm6492_vm7, %v6505_v39  ;;  %v1805_v12 = vrot.slane %v6497_v29, 1 }
 0x14c   : > { %8772 = vst [vmem:[#allocation36_spill] sm:$0xff] %v6501_v47  ;;  %8774 = vst [vmem:[#allocation38_spill] sm:$0xff] %v6509_v55  ;;  %v4977_v51 = vpop.f32.mrb[14].mxu0  ;;  %5049 = vmatprep.mubr.f32.mxu0 %v6509_v55  ;;  %v1804_v53 = vrot.slane %v6501_v47, 1  ;;  %5469 = vmatpush3.bf16.msra.mxu0 %v5466_v34  ;;  %v2159_v34 = vld [vmem:[%s8527_s5 + $0x170] sm:$0xff] }
 0x14d   : > { %8778 = vst [vmem:[#allocation39_spill] sm:$0xff] %v8777_v6  ;;  %v6530_v10 = vadd.f32 %v4977_v51, %v6313_v21  ;;  %v978_v63 = vpop.f32.mrb[15].mxu0  ;;  %5471 = vmatprep.subr.bf16.mxu0 %v5470_v4  ;;  %v2160_v51 = vld [vmem:[%s8527_s5 + $0x178] sm:$0xff]  ;;  %v4418_v6 = vld [vmem:[%s8527_s5 + $0x380] sm:$0xff] }
 0x14e   : > { %v6533_v23 = vadd.f32 %v6313_v21, %v978_v63  ;;  %v6537_v18 = vsel %vm8605_vm2, %v1803_v48, %v1804_v53  ;;  %v6541_v60 = vsel %vm8605_vm2, %v1804_v53, %v1805_v12  ;;  %v6554_v48 = vadd.s32 192, %v6094_v28 }
 0x14f   : > { %8779 = vst [vmem:[#allocation40_spill] sm:$0xff] %v6530_v10  ;;  %8781 = vst [vmem:[#allocation42_spill] sm:$0xff] %v6537_v18  ;;  %5050 = vmatmul.mubr.msk.f32.gmra.mrb[42].mxu0 %vm6525_vm8, %v6537_v18  ;;  %v1807_v63 = vrot.slane %v6530_v10, 1  ;;  %v8784_v53 = vand.u32 15, %v6176_v1  ;;  %v5478_v10 = vpack.c.bf16 %v2160_v51, %v2159_v34  ;;  %v8793_v51 = vmov 0 }
 0x150   : > { %8780 = vst [vmem:[#allocation41_spill] sm:$0xff] %v6533_v23  ;;  %8782 = vst [vmem:[#allocation43_spill] sm:$0xff] %v6541_v60  ;;  %v4980_v58 = vpop.f32.mrb[16].mxu0  ;;  %5052 = vmatprep.mubr.f32.mxu0 %v6541_v60  ;;  %v1806_v42 = vrot.slane %v6533_v23, 1  ;;  %5473 = vmatpush3.bf16.msra.mxu0 %v5470_v4 }
 0x151   : > { %8783 = vst [vmem:[#allocation44_spill] sm:$0xff] %v6554_v48  ;;  %vm6560_vm9 = vcmp.ne.s32.totalorder %v8784_v53, 15  ;;  %v6565_v29 = vadd.f32 %v4980_v58, %v6313_v21  ;;  %v988_v15 = vpop.f32.mrb[17].mxu0  ;;  %5475 = vmatprep.subr.bf16.mxu0 %v5474_v3 }
 0x152   : > { %v8786_v41 = vsel %vm6560_vm9, 4294967295, %v8785_v41  ;;  %v6568_v47 = vadd.f32 %v6313_v21, %v988_v15  ;;  %v6572_v38 = vsel %vm8605_vm2, %v1805_v12, %v1806_v42  ;;  %v6576_v1 = vsel %vm8605_vm2, %v1806_v42, %v1807_v63 }
 0x153   : > { %8787 = vst [vmem:[#allocation45_spill] sm:$0xff] %v8786_v41  ;;  %8788 = vst [vmem:[#allocation46_spill] sm:$0xff] %v6565_v29  ;;  %5053 = vmatmul.mubr.msk.f32.gmra.mrb[44].mxu0 %vm6560_vm9, %v6572_v38  ;;  %v1809_v4 = vrot.slane %v6565_v29, 1  ;;  %v8792_v12 = vand.u32 15, %v6193_v8  ;;  %v8802_v29 = vmov 0  ;;  %v4420_v41 = vld [vmem:[%s8527_s5 + $0x390] sm:$0xff] }
 0x154   : > { %8789 = vst [vmem:[#allocation47_spill] sm:$0xff] %v6568_v47  ;;  %8790 = vst [vmem:[#allocation48_spill] sm:$0xff] %v6572_v38  ;;  %v4983_v34 = vpop.f32.mrb[18].mxu0  ;;  %5055 = vmatprep.mubr.f32.mxu0 %v6576_v1  ;;  %v1808_v15 = vrot.slane %v6568_v47, 1  ;;  %5477 = vmatpush3.bf16.msra.mxu0 %v5474_v3 }
 0x155   : > { %8791 = vst [vmem:[#allocation49_spill] sm:$0xff] %v6576_v1  ;;  %vm6587_vm10 = vcmp.ne.s32.totalorder %v8792_v12, 15  ;;  %v6592_v58 = vadd.f32 %v4983_v34, %v6313_v21  ;;  %v998_v42 = vpop.f32.mrb[19].mxu0  ;;  %5479 = vmatprep.subr.bf16.mxu0 %v5478_v10  ;;  %v6610_v34 = vadd.s32 208, %v6094_v28 }
 0x156   : > { %v8794_v51 = vsel %vm6587_vm10, 4294967295, %v8793_v51  ;;  %v6595_v53 = vadd.f32 %v6313_v21, %v998_v42  ;;  %v6599_v48 = vsel %vm8605_vm2, %v1807_v63, %v1808_v15  ;;  %v6603_v8 = vsel %vm8605_vm2, %v1808_v15, %v1809_v4 }
 0x157   : > { %8795 = vst [vmem:[#allocation50_spill] sm:$0xff] %v8794_v51  ;;  %8796 = vst [vmem:[#allocation51_spill] sm:$0xff] %v6592_v58  ;;  %5056 = vmatmul.mubr.msk.f32.gmra.mrb[46].mxu0 %vm6587_vm10, %v6599_v48  ;;  %v1811_v3 = vrot.slane %v6592_v58, 1  ;;  %v8801_v63 = vand.u32 15, %v6207_v14  ;;  %v8806_v58 = vmov 0.0|0.0  }
 0x158   : > { %8797 = vst [vmem:[#allocation52_spill] sm:$0xff] %v6595_v53  ;;  %8798 = vst [vmem:[#allocation53_spill] sm:$0xff] %v6599_v48  ;;  %v4986_v12 = vpop.f32.mrb[20].mxu0  ;;  %5058 = vmatprep.mubr.f32.mxu0 %v6603_v8  ;;  %v1810_v42 = vrot.slane %v6595_v53, 1  ;;  %5481 = vmatpush3.bf16.msra.mxu0 %v5478_v10 }
 0x159   : > { %8799 = vst [vmem:[#allocation54_spill] sm:$0xff] %v6603_v8  ;;  %8800 = vst [vmem:[#allocation55_spill] sm:$0xff] %v6610_v34  ;;  %vm6616_vm11 = vcmp.ne.s32.totalorder %v8801_v63, 15  ;;  %v6621_v15 = vadd.f32 %v4986_v12, %v6313_v21  ;;  %v1008_v47 = vpop.f32.mrb[21].mxu0  ;;  %5482 = vmatprep.subr.bf16.mxu0 %v8806_v58  ;;  %v8810_v63 = vand.u32 15, %v6218_v19 }
 0x15a   : > { %v8803_v29 = vsel %vm6616_vm11, 4294967295, %v8802_v29  ;;  %v6626_v51 = vadd.f32 %v6313_v21, %v1008_v47  ;;  %v6630_v53 = vsel %vm8605_vm2, %v1809_v4, %v1810_v42  ;;  %v6634_v14 = vsel %vm8605_vm2, %v1810_v42, %v1811_v3 }
 0x15b   : > { %8804 = vst [vmem:[#allocation56_spill] sm:$0xff] %v8803_v29  ;;  %8805 = vst [vmem:[#allocation57_spill] sm:$0xff] %v6621_v15  ;;  %5059 = vmatmul.mubr.msk.f32.gmra.mrb[48].mxu0 %vm6616_vm11, %v6630_v53  ;;  %v1813_v10 = vrot.slane %v6621_v15, 1  ;;  %vm6644_vm12 = vcmp.ne.s32.totalorder %v8810_v63, 15  ;;  %v8811_v4 = vmov 0 }
 0x15c   : > { %8807 = vst [vmem:[#allocation58_spill] sm:$0xff] %v6626_v51  ;;  %8808 = vst [vmem:[#allocation59_spill] sm:$0xff] %v6630_v53  ;;  %v4989_v12 = vpop.f32.mrb[22].mxu0  ;;  %5061 = vmatprep.mubr.f32.mxu0 %v6634_v14  ;;  %v1812_v47 = vrot.slane %v6626_v51, 1  ;;  %v8812_v4 = vsel %vm6644_vm12, 4294967295, %v8811_v4 }
 0x15d   : > { %8809 = vst [vmem:[#allocation60_spill] sm:$0xff] %v6634_v14  ;;  %8813 = vst [vmem:[#allocation61_spill] sm:$0xff] %v8812_v4  ;;  %v6649_v42 = vadd.f32 %v4989_v12, %v6313_v21  ;;  %v1018_v23 = vpop.f32.mrb[23].mxu0  ;;  %v6667_v12 = vadd.s32 224, %v6094_v28  ;;  %v8820_v14 = vmov 0 }
 0x15e   : > { %v6652_v34 = vadd.f32 %v6313_v21, %v1018_v23  ;;  %v6656_v15 = vsel %vm8605_vm2, %v1811_v3, %v1812_v47  ;;  %v6660_v51 = vsel %vm8605_vm2, %v1812_v47, %v1813_v10  ;;  %v8819_v3 = vand.u32 15, %v6229_v24 }
 0x15f   : > { %8814 = vst [vmem:[#allocation62_spill] sm:$0xff] %v6649_v42  ;;  %8816 = vst [vmem:[#allocation64_spill] sm:$0xff] %v6656_v15  ;;  %5062 = vmatmul.mubr.msk.f32.gmra.mrb[50].mxu0 %vm6644_vm12, %v6656_v15  ;;  %v1815_v19 = vrot.slane %v6649_v42, 1 }
 0x160   : > { %8815 = vst [vmem:[#allocation63_spill] sm:$0xff] %v6652_v34  ;;  %8817 = vst [vmem:[#allocation65_spill] sm:$0xff] %v6660_v51  ;;  %v4992_v63 = vpop.f32.mrb[24].mxu0  ;;  %5064 = vmatprep.mubr.f32.mxu0 %v6660_v51  ;;  %v1814_v23 = vrot.slane %v6652_v34, 1  ;;  %vm6673_vm13 = vcmp.ne.s32.totalorder %v8819_v3, 15  ;;  %v8828_v51 = vmov 0 }
 0x161   : > { %8818 = vst [vmem:[#allocation66_spill] sm:$0xff] %v6667_v12  ;;  %v8821_v14 = vsel %vm6673_vm13, 4294967295, %v8820_v14  ;;  %v6678_v47 = vadd.f32 %v4992_v63, %v6313_v21  ;;  %v1028_v4 = vpop.f32.mrb[25].mxu0 }
 0x162   : > { %8822 = vst [vmem:[#allocation67_spill] sm:$0xff] %v8821_v14  ;;  %v6681_v42 = vadd.f32 %v6313_v21, %v1028_v4  ;;  %v6685_v15 = vsel %vm8605_vm2, %v1813_v10, %v1814_v23  ;;  %v6689_v34 = vsel %vm8605_vm2, %v1814_v23, %v1815_v19  ;;  %v8827_v10 = vand.u32 15, %v6240_v31 }
 0x163   : > { %8823 = vst [vmem:[#allocation68_spill] sm:$0xff] %v6678_v47  ;;  %8825 = vst [vmem:[#allocation70_spill] sm:$0xff] %v6685_v15  ;;  %5065 = vmatmul.mubr.msk.f32.gmra.mrb[52].mxu0 %vm6673_vm13, %v6685_v15  ;;  %v1817_v63 = vrot.slane %v6678_v47, 1  ;;  %vm8867_vm13 = vcmp.lt.s32.totalorder %v6094_v28, 1 }
 0x164   : > { %8824 = vst [vmem:[#allocation69_spill] sm:$0xff] %v6681_v42  ;;  %8826 = vst [vmem:[#allocation71_spill] sm:$0xff] %v6689_v34  ;;  %v4995_v3 = vpop.f32.mrb[26].mxu0  ;;  %5067 = vmatprep.mubr.f32.mxu0 %v6689_v34  ;;  %v1816_v4 = vrot.slane %v6681_v42, 1  ;;  %vm6700_vm14 = vcmp.ne.s32.totalorder %v8827_v10, 15  ;;  %v8837_v34 = vmov 0 }
 0x165   : > { %v8829_v51 = vsel %vm6700_vm14, 4294967295, %v8828_v51  ;;  %v6705_v23 = vadd.f32 %v4995_v3, %v6313_v21  ;;  %v1038_v24 = vpop.f32.mrb[27].mxu0  ;;  %v6723_v3 = vadd.s32 240, %v6094_v28 }
 0x166   : > { %8830 = vst [vmem:[#allocation72_spill] sm:$0xff] %v8829_v51  ;;  %v6708_v12 = vadd.f32 %v6313_v21, %v1038_v24  ;;  %v6712_v47 = vsel %vm8605_vm2, %v1815_v19, %v1816_v4  ;;  %v6716_v42 = vsel %vm8605_vm2, %v1816_v4, %v1817_v63  ;;  %v8836_v19 = vand.u32 15, %v6251_v37 }
 0x167   : > { %8831 = vst [vmem:[#allocation73_spill] sm:$0xff] %v6705_v23  ;;  %8833 = vst [vmem:[#allocation75_spill] sm:$0xff] %v6712_v47  ;;  %5068 = vmatmul.mubr.msk.f32.gmra.mrb[54].mxu0 %vm6700_vm14, %v6712_v47  ;;  %v1819_v31 = vrot.slane %v6705_v23, 1  ;;  %v8844_v23 = vand.u32 15, %v6262_v46 }
 0x168   : > { %8832 = vst [vmem:[#allocation74_spill] sm:$0xff] %v6708_v12  ;;  %8834 = vst [vmem:[#allocation76_spill] sm:$0xff] %v6716_v42  ;;  %v4998_v10 = vpop.f32.mrb[28].mxu0  ;;  %5070 = vmatprep.mubr.f32.mxu0 %v6716_v42  ;;  %v1818_v24 = vrot.slane %v6708_v12, 1  ;;  %vm6729_vm15 = vcmp.ne.s32.totalorder %v8836_v19, 15 }
 0x169   : > { %8835 = vst [vmem:[#allocation77_spill] sm:$0xff] %v6723_v3  ;;  %v8838_v34 = vsel %vm6729_vm15, 4294967295, %v8837_v34  ;;  %v6734_v4 = vadd.f32 %v4998_v10, %v6313_v21  ;;  %v1048_v51 = vpop.f32.mrb[29].mxu0  ;;  %vm6756_vm0 = vcmp.ne.s32.totalorder %v8844_v23, 15  ;;  %v2114_v3 = vld [vmem:[%s8527_s5 + $0x8] sm:$0xff] }
 0x16a   : > { %8839 = vst [vmem:[#allocation78_spill] sm:$0xff] %v8838_v34  ;;  %v6738_v47 = vadd.f32 %v6313_v21, %v1048_v51  ;;  %v6742_v42 = vsel %vm8605_vm2, %v1817_v63, %v1818_v24  ;;  %v6746_v37 = vsel %vm8605_vm2, %v1818_v24, %v1819_v31  ;;  %v8845_v63 = vmov 0  ;;  %v2113_v24 = vld [vmem:[%s8527_s5] sm:$0xff]  ;;  %v8923_v43 = vld [vmem:[#allocation67_spill] sm:$0xff]  ;;  %v8999_v34 = vld [vmem:[#allocation57_spill] sm:$0xff] }
 0x16b   : > { %8840 = vst [vmem:[#allocation79_spill] sm:$0xff] %v6734_v4  ;;  %8842 = vst [vmem:[#allocation81_spill] sm:$0xff] %v6742_v42  ;;  %5071 = vmatmul.mubr.msk.f32.gmra.mrb[56].mxu0 %vm6729_vm15, %v6742_v42  ;;  %v1821_v10 = vrot.slane %v6734_v4, 1  ;;  %v8846_v63 = vsel %vm6756_vm0, 4294967295, %v8845_v63  ;;  %v8859_v42 = vrot.slane %v6323_v33, 1  ;;  %vm8860_vm15 = vcmp.lt.s32.totalorder %v6094_v28, 7 }
 0x16c   : > { %8841 = vst [vmem:[#allocation80_spill] sm:$0xff] %v6738_v47  ;;  %8843 = vst [vmem:[#allocation82_spill] sm:$0xff] %v6746_v37  ;;  %v5001_v19 = vpop.f32.mrb[30].mxu0  ;;  %5073 = vmatprep.mubr.f32.mxu0 %v6746_v37  ;;  %v1820_v51 = vrot.slane %v6738_v47, 1  ;;  %v8852_v37 = vand.u32 15, %v6094_v28 }
 0x16d   : > { %8847 = vst [vmem:[#allocation83_spill] sm:$0xff] %v8846_v63  ;;  %v6767_v4 = vadd.f32 %v5001_v19, %v6313_v21  ;;  %v1058_v12 = vpop.f32.mrb[31].mxu0  ;;  %v2116_v63 = vld [vmem:[%s8527_s5 + $0x18] sm:$0xff]  ;;  %v8929_v9 = vld [vmem:[#allocation72_spill] sm:$0xff] }
 0x16e   : > { %v6770_v47 = vadd.f32 %v6313_v21, %v1058_v12  ;;  %v6774_v46 = vsel %vm8605_vm2, %v1819_v31, %v1820_v51  ;;  %v6778_v23 = vsel %vm8605_vm2, %v1820_v51, %v1821_v10  ;;  %vm6782_vm1 = vcmp.ne.s32.totalorder %v8852_v37, 0  ;;  %v2115_v51 = vld [vmem:[%s8527_s5 + $0x10] sm:$0xff] }
 0x16f   : > { %8848 = vst [vmem:[#allocation84_spill] sm:$0xff] %v6767_v4  ;;  %8850 = vst [vmem:[#allocation86_spill] sm:$0xff] %v6774_v46  ;;  %5074 = vmatmul.mubr.msk.f32.gmra.mrb[58].mxu0 %vm6756_vm0, %v6774_v46  ;;  %v1567_v21 = vrot.slane %v6323_v33, 7  ;;  %v1598_v12 = vrot.slane %v6767_v4, 7  ;;  %v5403_v31 = vpack.c.bf16 %v2114_v3, %v2113_v24  ;;  %v1823_v19 = vrot.slane %v6767_v4, 1 }
 0x170   : > { %8849 = vst [vmem:[#allocation85_spill] sm:$0xff] %v6770_v47  ;;  %8851 = vst [vmem:[#allocation87_spill] sm:$0xff] %v6778_v23  ;;  %5076 = vmatprep.mubr.f32.mxu0 %v6778_v23  ;;  %vm8622_vm2 = vcmp.lt.s32.totalorder %v6094_v28, 1  ;;  %v1822_v37 = vrot.slane %v6770_v47, 1  ;;  %v8855_v24 = vand.u32 15, %v6273_v54  ;;  %v8856_v4 = vmov 0 }
 0x171   : > { %v6804_v3 = vsel %vm8622_vm2, %v1598_v12, %v1567_v21  ;;  %v1568_v23 = vrot.slane %v6320_v30, 7  ;;  %v6817_v14 = vsel %vm8860_vm15, %v1823_v19, %v8859_v42  ;;  %vm8862_vm2 = vmmov %vm8860_vm15  ;;  %v5406_v42 = vpack.c.bf16 %v2116_v63, %v2115_v51  ;;  %v4402_v51 = vld [vmem:[%s8527_s5 + $0x300] sm:$0xff] }
 0x172   : > { %vm6808_vm0 = vcmp.ne.s32.totalorder %v8855_v24, 15  ;;  %8861 = vst [vmem:[#allocation89_spill] sm:$0xff] %v6817_v14  ;;  %4461 = vmatmul.mubr.msk.f32.vlgmr.msra.gmra.mrb[0].mxu1 %vm6782_vm1, %v6804_v3  ;;  %v6824_v46 = vsel %vm8862_vm2, %v1821_v10, %v1822_v37  ;;  %vm8864_vm14 = vmmov %vm8862_vm2  ;;  %v8866_v24 = vrot.slane %v6770_v47, 7  ;;  %v2117_v10 = vld [vmem:[%s8527_s5 + $0x20] sm:$0xff]  ;;  %v8870_v63 = vand.u32 15, %v6279_v59 }
 0x173   : > { %v8857_v4 = vsel %vm6808_vm0, 4294967295, %v8856_v4  ;;  %8863 = vst [vmem:[#allocation90_spill] sm:$0xff] %v6824_v46  ;;  %v6828_v54 = vsel %vm8864_vm14, %v1822_v37, %v1823_v19  ;;  %5404 = vmatpush1.bf16.msra.mxu1 %v5403_v31  ;;  %2285 = vmatprep.mubr.f32.mxu1 %v6320_v30  ;;  %v2118_v19 = vld [vmem:[%s8527_s5 + $0x28] sm:$0xff]  ;;  %vm8868_vm2 = vmmov %vm8867_vm13  ;;  %v8871_v31 = vmov 0  ;;  %v1569_v37 = vrot.slane %v6333_v49, 7 }
 0x174   : > { %8858 = vst [vmem:[#allocation88_spill] sm:$0xff] %v8857_v4  ;;  %8865 = vst [vmem:[#allocation91_spill] sm:$0xff] %v6828_v54  ;;  %v6834_v33 = vsel %vm8867_vm13, %v8866_v24, %v1598_v12  ;;  %5077 = vmatmul.mubr.msk.f32.gmra.mrb[60].mxu0 %vm6808_vm0, %v6824_v46  ;;  %5405 = vmatprep.subr.bf16.mxu1 %v8806_v58  ;;  %v6850_v12 = vsel %vm8868_vm2, %v1567_v21, %v1568_v23  ;;  %vm6854_vm13 = vcmp.ne.s32.totalorder %v8870_v63, 15  ;;  %v4403_v24 = vld [vmem:[%s8527_s5 + $0x308] sm:$0xff] }
 0x175   : > { %5079 = vmatprep.mubr.f32.mxu0 %v6828_v54  ;;  %8869 = vst [vmem:[#allocation92_spill] sm:$0xff] %v6850_v12  ;;  %v8872_v31 = vsel %vm6854_vm13, 4294967295, %v8871_v31  ;;  %v8874_v59 = vand.u32 15, %v6283_v62  ;;  %v5409_v63 = vpack.c.bf16 %v2118_v19, %v2117_v10  ;;  %v2119_v54 = vld [vmem:[%s8527_s5 + $0x30] sm:$0xff]  ;;  %v2120_v62 = vld [vmem:[%s8527_s5 + $0x38] sm:$0xff]  ;;  %vm8877_vm15 = vmmov %vm8868_vm2  ;;  %v5483_v10 = vpack.c.bf16 %v4403_v24, %v4402_v51 }
 0x176   : > { %8873 = vst [vmem:[#allocation93_spill] sm:$0xff] %v8872_v31  ;;  %2286 = vmatmul.mubr.f32.gmra.mrb[2].mxu1 %v6850_v12  ;;  %v1570_v19 = vrot.slane %v6330_v44, 7  ;;  %v4404_v31 = vld [vmem:[%s8527_s5 + $0x310] sm:$0xff]  ;;  %v2121_v51 = vld [vmem:[%s8527_s5 + $0x40] sm:$0xff]  ;;  %v2122_v24 = vld [vmem:[%s8527_s5 + $0x48] sm:$0xff] }
 0x177   : > { %2290 = vmatprep.mubr.f32.mxu1 %v6333_v49  ;;  %vm6869_vm14 = vcmp.ne.s32.totalorder %v8874_v59, 0  ;;  %5407 = vmatpush1.bf16.msra.mxu1 %v5406_v42  ;;  %v6885_v59 = vsel %vm8877_vm15, %v1568_v23, %v1569_v37  ;;  %v8633_v42 = vmov 0.0   ;;  %v5412_v23 = vpack.c.bf16 %v2120_v62, %v2119_v54  ;;  %v4406_v62 = vld [vmem:[%s8527_s5 + $0x320] sm:$0xff] }
 0x178   : > { %5080 = vmatmul.mubr.msk.f32.gmra.mrb[62].mxu0 %vm6854_vm13, %v6817_v14  ;;  %5408 = vmatprep.subr.bf16.mxu1 %v8806_v58  ;;  %v4405_v14 = vld [vmem:[%s8527_s5 + $0x318] sm:$0xff]  ;;  %v6910_v12 = vsel %vm8868_vm2, %v1569_v37, %v1570_v19  ;;  %v8879_v37 = vand.u32 15, %v6287_v2  ;;  %vm8896_vm13 = vcmp.lt.s32.totalorder %v6094_v28, 1 }
 0x179   : > { %5114 = vmatprep.mubr.f32.mxu0 %v8633_v42  ;;  %8878 = vst [vmem:[#allocation94_spill] sm:$0xff] %v6910_v12  ;;  %v5486_v54 = vpack.c.bf16 %v4405_v14, %v4404_v31  ;;  %v8880_v14 = vmov 0  ;;  %v5415_v31 = vpack.c.bf16 %v2122_v24, %v2121_v51  ;;  %v2124_v2 = vld [vmem:[%s8527_s5 + $0x58] sm:$0xff] }
 0x17a   : > { %4463 = vmatmul.mubr.msk.f32.gmra.mrb[4].mxu1 %vm6869_vm14, %v6885_v59  ;;  %vm6924_vm15 = vcmp.ne.s32.totalorder %v8879_v37, 0  ;;  %v4409_v24 = vld [vmem:[%s8527_s5 + $0x338] sm:$0xff] }
 0x17b   : > { %2295 = vmatprep.mubr.f32.mxu1 %v6330_v44  ;;  %5410 = vmatpush1.bf16.msra.mxu1 %v5409_v63  ;;  %v1571_v63 = vrot.slane %v6364_v0, 7  ;;  %v8881_v14 = vsel %vm6924_vm15, 4294967295, %v8880_v14  ;;  %v5492_v37 = vpack.c.bf16 %v4409_v24, %v4408_v16  ;;  %v2127_v24 = vld [vmem:[%s8527_s5 + $0x70] sm:$0xff] }
 0x17c   : > { %5115 = vmatmul.mubr.f32.vlgmr.msra.gmra.mrb[64].mxu0 %v8633_v42  ;;  %5411 = vmatprep.subr.bf16.mxu1 %v8806_v58  ;;  %8882 = vst [vmem:[#allocation95_spill] sm:$0xff] %v8881_v14  ;;  %v4414_v42 = vld [vmem:[%s8527_s5 + $0x360] sm:$0xff]  ;;  %v8963_v14 = vld [vmem:[#allocation33_spill] sm:$0xff] }
 0x17d   : > { %5117 = vmatprep.mubr.f32.mxu0 %v6339_v52  ;;  %5484 = vmatpush1.bf16.msra.mxu0 %v5483_v10  ;;  %v4407_v52 = vld [vmem:[%s8527_s5 + $0x328] sm:$0xff]  ;;  %v2123_v10 = vld [vmem:[%s8527_s5 + $0x50] sm:$0xff] }
 0x17e   : > { %2296 = vmatmul.mubr.f32.gmra.mrb[6].mxu1 %v6910_v12  ;;  %5485 = vmatprep.subr.bf16.mxu0 %v8806_v58  ;;  %v5489_v51 = vpack.c.bf16 %v4407_v52, %v4406_v62  ;;  %v2126_v62 = vld [vmem:[%s8527_s5 + $0x68] sm:$0xff] }
 0x17f   : > { %2300 = vmatprep.mubr.f32.mxu1 %v6364_v0  ;;  %5413 = vmatpush1.bf16.msra.mxu1 %v5412_v23  ;;  %v6941_v23 = vsel %vm8868_vm2, %v1570_v19, %v1571_v63  ;;  %v5418_v19 = vpack.c.bf16 %v2124_v2, %v2123_v10  ;;  %v4410_v10 = vld [vmem:[%s8527_s5 + $0x340] sm:$0xff]  ;;  %v4411_v2 = vld [vmem:[%s8527_s5 + $0x348] sm:$0xff] }
 0x180   : > { %5118 = vmatmul.mubr.msk.f32.gmra.mrb[66].mxu0 %vm6355_vm3, %v6368_v61  ;;  %5414 = vmatprep.subr.bf16.mxu1 %v8806_v58  ;;  %8883 = vst [vmem:[#allocation96_spill] sm:$0xff] %v6941_v23  ;;  %v1572_v61 = vrot.slane %v6360_v13, 7  ;;  %vm8884_vm3 = vmmov %vm8868_vm2 }
 0x181   : > { %5120 = vmatprep.mubr.f32.mxu0 %v6372_v35  ;;  %5487 = vmatpush1.bf16.msra.mxu0 %v5486_v54  ;;  %v2125_v54 = vld [vmem:[%s8527_s5 + $0x60] sm:$0xff]  ;;  %v4441_v35 = vld [vmem:[%s8527_s5 + $0x438] sm:$0xff] }
 0x182   : > { %4465 = vmatmul.mubr.msk.f32.gmra.mrb[8].mxu1 %vm6924_vm15, %v6941_v23  ;;  %5488 = vmatprep.subr.bf16.mxu0 %v8806_v58  ;;  %v6968_v52 = vsel %vm8884_vm3, %v1571_v63, %v1572_v61  ;;  %v8886_v63 = vand.u32 15, %v6291_v5  ;;  %v5421_v16 = vpack.c.bf16 %v2126_v62, %v2125_v54  ;;  %v2128_v5 = vld [vmem:[%s8527_s5 + $0x78] sm:$0xff]  ;;  %v5495_v54 = vpack.c.bf16 %v4411_v2, %v4410_v10  ;;  %v2129_v10 = vld [vmem:[%s8527_s5 + $0x80] sm:$0xff]  ;;  %v2130_v2 = vld [vmem:[%s8527_s5 + $0x88] sm:$0xff] }
 0x183   : > { %2305 = vmatprep.mubr.f32.mxu1 %v6360_v13  ;;  %5416 = vmatpush1.bf16.msra.mxu1 %v5415_v31  ;;  %8885 = vst [vmem:[#allocation97_spill] sm:$0xff] %v6968_v52  ;;  %v1573_v31 = vrot.slane %v6397_v57, 7  ;;  %v1574_v62 = vrot.slane %v6394_v32, 7 }
 0x184   : > { %5121 = vmatmul.mubr.msk.f32.gmra.mrb[68].mxu0 %vm6388_vm4, %v6401_v56  ;;  %5417 = vmatprep.subr.bf16.mxu1 %v8806_v58  ;;  %vm6982_vm2 = vcmp.ne.s32.totalorder %v8886_v63, 0  ;;  %v4412_v63 = vld [vmem:[%s8527_s5 + $0x350] sm:$0xff]  ;;  %v8951_v56 = vand.u32 15, %v8950_v25  ;;  %v8954_v25 = vld [vmem:[#allocation51_spill] sm:$0xff] }
 0x185   : > { %5123 = vmatprep.mubr.f32.mxu0 %v6405_v40  ;;  %5490 = vmatpush1.bf16.msra.mxu0 %v5489_v51  ;;  %v8887_v51 = vmov 0 }
 0x186   : > { %2306 = vmatmul.mubr.f32.gmra.mrb[10].mxu1 %v6968_v52  ;;  %5491 = vmatprep.subr.bf16.mxu0 %v8806_v58  ;;  %v8888_v51 = vsel %vm6982_vm2, 4294967295, %v8887_v51 }
 0x187   : > { %2310 = vmatprep.mubr.f32.mxu1 %v6397_v57  ;;  %8889 = vst [vmem:[#allocation98_spill] sm:$0xff] %v8888_v51  ;;  %5419 = vmatpush1.bf16.msra.mxu1 %v5418_v19  ;;  %v6999_v19 = vsel %vm8884_vm3, %v1572_v61, %v1573_v31  ;;  %v5424_v61 = vpack.c.bf16 %v2128_v5, %v2127_v24  ;;  %v1575_v5 = vrot.slane %v6433_v27, 7  ;;  %v8970_v51 = vld [vmem:[#allocation44_spill] sm:$0xff] }
 0x188   : > { %5124 = vmatmul.mubr.msk.f32.gmra.mrb[70].mxu0 %vm6424_vm5, %v6437_v22  ;;  %5420 = vmatprep.subr.bf16.mxu1 %v8806_v58  ;;  %8890 = vst [vmem:[#allocation99_spill] sm:$0xff] %v6999_v19  ;;  %v8933_v22 = vld [vmem:[#allocation47_spill] sm:$0xff] }
 0x189   : > { %5126 = vmatprep.mubr.f32.mxu0 %v6441_v45  ;;  %5493 = vmatpush1.bf16.msra.mxu0 %v5492_v37  ;;  %v4413_v37 = vld [vmem:[%s8527_s5 + $0x358] sm:$0xff]  ;;  %v1583_v40 = vrot.slane %v8933_v22, 7 }
 0x18a   : > { %4467 = vmatmul.mubr.msk.f32.gmra.mrb[12].mxu1 %vm6982_vm2, %v6999_v19  ;;  %5494 = vmatprep.subr.bf16.mxu0 %v8806_v58  ;;  %v5498_v24 = vpack.c.bf16 %v4413_v37, %v4412_v63  ;;  %v5427_v63 = vpack.c.bf16 %v2130_v2, %v2129_v10  ;;  %v2131_v37 = vld [vmem:[%s8527_s5 + $0x90] sm:$0xff]  ;;  %v1576_v2 = vrot.slane %v6429_v20, 7 }
 0x18b   : > { %2315 = vmatprep.mubr.f32.mxu1 %v6394_v32  ;;  %5422 = vmatpush1.bf16.msra.mxu1 %v5421_v16  ;;  %v7026_v16 = vsel %vm8884_vm3, %v1573_v31, %v1574_v62  ;;  %v8892_v31 = vand.u32 15, %v6295_v7  ;;  %v2132_v7 = vld [vmem:[%s8527_s5 + $0x98] sm:$0xff] }
 0x18c   : > { %5127 = vmatmul.mubr.msk.f32.gmra.mrb[72].mxu0 %vm6457_vm6, %v6469_v17  ;;  %5423 = vmatprep.subr.bf16.mxu1 %v8806_v58  ;;  %8891 = vst [vmem:[#allocation100_spill] sm:$0xff] %v7026_v16  ;;  %v8931_v17 = vld [vmem:[#allocation76_spill] sm:$0xff] }
 0x18d   : > { %5129 = vmatprep.mubr.f32.mxu0 %v6473_v50  ;;  %5496 = vmatpush1.bf16.msra.mxu0 %v5495_v54  ;;  %v4415_v50 = vld [vmem:[%s8527_s5 + $0x368] sm:$0xff]  ;;  %vm7040_vm3 = vcmp.ne.s32.totalorder %v8892_v31, 0  ;;  %v8893_v54 = vmov 0  ;;  %v4416_v31 = vld [vmem:[%s8527_s5 + $0x370] sm:$0xff] }
 0x18e   : > { %2316 = vmatmul.mubr.f32.gmra.mrb[14].mxu1 %v7026_v16  ;;  %5497 = vmatprep.subr.bf16.mxu0 %v8806_v58  ;;  %v8894_v54 = vsel %vm7040_vm3, 4294967295, %v8893_v54  ;;  %v5501_v10 = vpack.c.bf16 %v4415_v50, %v4414_v42  ;;  %v5430_v50 = vpack.c.bf16 %v2132_v7, %v2131_v37  ;;  %v2133_v42 = vld [vmem:[%s8527_s5 + $0xa0] sm:$0xff]  ;;  %v1577_v7 = vrot.slane %v6465_v26, 7 }
 0x18f   : > { %2320 = vmatprep.mubr.f32.mxu1 %v6433_v27  ;;  %8895 = vst [vmem:[#allocation101_spill] sm:$0xff] %v8894_v54  ;;  %5425 = vmatpush1.bf16.msra.mxu1 %v5424_v61  ;;  %v7057_v61 = vsel %vm8896_vm13, %v1574_v62, %v1575_v5  ;;  %v2134_v62 = vld [vmem:[%s8527_s5 + $0xa8] sm:$0xff] }
 0x190   : > { %5130 = vmatmul.mubr.msk.f32.gmra.mrb[74].mxu0 %vm6492_vm7, %v6505_v39  ;;  %5426 = vmatprep.subr.bf16.mxu1 %v8806_v58  ;;  %8897 = vst [vmem:[#allocation102_spill] sm:$0xff] %v7057_v61  ;;  %v2143_v39 = vld [vmem:[%s8527_s5 + $0xf0] sm:$0xff]  ;;  %vm7313_vm7 = vcmp.ne.s32.totalorder %v8951_v56, 0 }
 0x191   : > { %5132 = vmatprep.mubr.f32.mxu0 %v6509_v55  ;;  %5499 = vmatpush1.bf16.msra.mxu0 %v5498_v24  ;;  %v4417_v24 = vld [vmem:[%s8527_s5 + $0x378] sm:$0xff] }
 0x192   : > { %4469 = vmatmul.mubr.msk.f32.gmra.mrb[16].mxu1 %vm7040_vm3, %v7057_v61  ;;  %5500 = vmatprep.subr.bf16.mxu0 %v8806_v58  ;;  %v5504_v37 = vpack.c.bf16 %v4417_v24, %v4416_v31  ;;  %v5433_v31 = vpack.c.bf16 %v2134_v62, %v2133_v42  ;;  %v2135_v24 = vld [vmem:[%s8527_s5 + $0xb0] sm:$0xff]  ;;  %v8904_v62 = vld [vmem:[#allocation29_spill] sm:$0xff] }
 0x193   : > { %2325 = vmatprep.mubr.f32.mxu1 %v6429_v20  ;;  %5428 = vmatpush1.bf16.msra.mxu1 %v5427_v63  ;;  %v7084_v63 = vsel %vm8896_vm13, %v1575_v5, %v1576_v2  ;;  %v8899_v5 = vand.u32 15, %v6299_v11  ;;  %v2136_v11 = vld [vmem:[%s8527_s5 + $0xb8] sm:$0xff] }
 0x194   : > { %5133 = vmatmul.mubr.msk.f32.gmra.mrb[76].mxu0 %vm6525_vm8, %v6537_v18  ;;  %5429 = vmatprep.subr.bf16.mxu1 %v8806_v58  ;;  %8898 = vst [vmem:[#allocation103_spill] sm:$0xff] %v7084_v63  ;;  %vm8903_vm8 = vcmp.lt.s32.totalorder %v6094_v28, 1  ;;  %v2142_v18 = vld [vmem:[%s8527_s5 + $0xe8] sm:$0xff]  ;;  %v8917_v55 = vld [vmem:[#allocation65_spill] sm:$0xff] }
 0x195   : > { %5135 = vmatprep.mubr.f32.mxu0 %v6541_v60  ;;  %5502 = vmatpush1.bf16.msra.mxu0 %v5501_v10  ;;  %v4419_v60 = vld [vmem:[%s8527_s5 + $0x388] sm:$0xff]  ;;  %vm7098_vm13 = vcmp.ne.s32.totalorder %v8899_v5, 0  ;;  %v8900_v10 = vmov 0  ;;  %v1578_v5 = vrot.slane %v8904_v62, 7 }
 0x196   : > { %2326 = vmatmul.mubr.f32.gmra.mrb[18].mxu1 %v7084_v63  ;;  %5503 = vmatprep.subr.bf16.mxu0 %v8806_v58  ;;  %v8901_v10 = vsel %vm7098_vm13, 4294967295, %v8900_v10  ;;  %v5507_v42 = vpack.c.bf16 %v4419_v60, %v4418_v6  ;;  %v5436_v6 = vpack.c.bf16 %v2136_v11, %v2135_v24  ;;  %v8906_v11 = vld [vmem:[#allocation36_spill] sm:$0xff] }
 0x197   : > { %2330 = vmatprep.mubr.f32.mxu1 %v6465_v26  ;;  %8902 = vst [vmem:[#allocation104_spill] sm:$0xff] %v8901_v10  ;;  %5431 = vmatpush1.bf16.msra.mxu1 %v5430_v50  ;;  %v7115_v50 = vsel %vm8903_vm8, %v1576_v2, %v1577_v7  ;;  %v2137_v2 = vld [vmem:[%s8527_s5 + $0xc0] sm:$0xff]  ;;  %v1579_v60 = vrot.slane %v8906_v11, 7 }
 0x198   : > { %5136 = vmatmul.mubr.msk.f32.gmra.mrb[78].mxu0 %vm6560_vm9, %v6572_v38  ;;  %5432 = vmatprep.subr.bf16.mxu1 %v8806_v58  ;;  %v2139_v38 = vld [vmem:[%s8527_s5 + $0xd0] sm:$0xff]  ;;  %vm8942_vm9 = vcmp.lt.s32.totalorder %v6094_v28, 1 }
 0x199   : > { %5138 = vmatprep.mubr.f32.mxu0 %v6576_v1  ;;  %5505 = vmatpush1.bf16.msra.mxu0 %v5504_v37  ;;  %v4421_v37 = vld [vmem:[%s8527_s5 + $0x398] sm:$0xff]  ;;  %v2138_v1 = vld [vmem:[%s8527_s5 + $0xc8] sm:$0xff] }
 0x19a   : > { %4471 = vmatmul.mubr.msk.f32.gmra.mrb[20].mxu1 %vm7098_vm13, %v7115_v50  ;;  %5506 = vmatprep.subr.bf16.mxu0 %v8806_v58  ;;  %v5510_v24 = vpack.c.bf16 %v4421_v37, %v4420_v41  ;;  %v8909_v41 = vmov 0  ;;  %v5439_v37 = vpack.c.bf16 %v2138_v1, %v2137_v2  ;;  %v8914_v2 = vld [vmem:[#allocation35_spill] sm:$0xff] }
 0x19b   : > { %2335 = vmatprep.mubr.f32.mxu1 %v8904_v62  ;;  %5434 = vmatpush1.bf16.msra.mxu1 %v5433_v31  ;;  %v7142_v31 = vsel %vm8903_vm8, %v1577_v7, %v1578_v5  ;;  %v1580_v29 = vrot.slane %v8914_v2, 7 }
 0x19c   : > { %5139 = vmatmul.mubr.msk.f32.gmra.mrb[80].mxu0 %vm6587_vm10, %v6599_v48  ;;  %5435 = vmatprep.subr.bf16.mxu1 %v8806_v58  ;;  %v4422_v48 = vld [vmem:[%s8527_s5 + $0x3a0] sm:$0xff]  ;;  %vm8913_vm10 = vcmp.lt.s32.totalorder %v6094_v28, 1 }
 0x19d   : > { %5141 = vmatprep.mubr.f32.mxu0 %v6603_v8  ;;  %5508 = vmatpush1.bf16.msra.mxu0 %v5507_v42  ;;  %v4423_v8 = vld [vmem:[%s8527_s5 + $0x3a8] sm:$0xff]  ;;  %v8907_v42 = vld [vmem:[#allocation6_spill] sm:$0xff]  ;;  %v7173_v1 = vsel %vm8913_vm10, %v1578_v5, %v1579_v60 }
 0x19e   : > { %2336 = vmatmul.mubr.f32.gmra.mrb[22].mxu1 %v7142_v31  ;;  %5509 = vmatprep.subr.bf16.mxu0 %v8806_v58  ;;  %v8908_v7 = vand.u32 15, %v8907_v42  ;;  %v2140_v42 = vld [vmem:[%s8527_s5 + $0xd8] sm:$0xff] }
 0x19f   : > { %2340 = vmatprep.mubr.f32.mxu1 %v8906_v11  ;;  %5437 = vmatpush1.bf16.msra.mxu1 %v5436_v6  ;;  %v5513_v6 = vpack.c.bf16 %v4423_v8, %v4422_v48  ;;  %v5442_v48 = vpack.c.bf16 %v2140_v42, %v2139_v38  ;;  %v8915_v8 = vld [vmem:[#allocation64_spill] sm:$0xff]  ;;  %v7200_v38 = vsel %vm8913_vm10, %v1579_v60, %v1580_v29  ;;  %v8918_v42 = vld [vmem:[#allocation41_spill] sm:$0xff] }
 0x1a0   : > { %vm7156_vm8 = vcmp.ne.s32.totalorder %v8908_v7, 0  ;;  %5142 = vmatmul.mubr.msk.f32.gmra.mrb[82].mxu0 %vm6616_vm11, %v6630_v53  ;;  %5438 = vmatprep.subr.bf16.mxu1 %v8806_v58  ;;  %v8912_v7 = vld [vmem:[#allocation60_spill] sm:$0xff]  ;;  %v1581_v5 = vrot.slane %v8918_v42, 7  ;;  %vm8926_vm11 = vcmp.lt.s32.totalorder %v6094_v28, 1 }
 0x1a1   : > { %v8910_v41 = vsel %vm7156_vm8, 4294967295, %v8909_v41  ;;  %5144 = vmatprep.mubr.f32.mxu0 %v8912_v7  ;;  %5511 = vmatpush1.bf16.msra.mxu0 %v5510_v24  ;;  %v4424_v53 = vld [vmem:[%s8527_s5 + $0x3b0] sm:$0xff]  ;;  %v4425_v24 = vld [vmem:[%s8527_s5 + $0x3b8] sm:$0xff]  ;;  %v2141_v7 = vld [vmem:[%s8527_s5 + $0xe0] sm:$0xff] }
 0x1a2   : > { %8911 = vst [vmem:[#allocation6_spill] sm:$0xff] %v8910_v41  ;;  %4473 = vmatmul.mubr.msk.f32.gmra.mrb[24].mxu1 %vm7156_vm8, %v7173_v1  ;;  %5512 = vmatprep.subr.bf16.mxu0 %v8806_v58  ;;  %v8995_v41 = vld [vmem:[#allocation84_spill] sm:$0xff] }
 0x1a3   : > { %2345 = vmatprep.mubr.f32.mxu1 %v8914_v2  ;;  %5440 = vmatpush1.bf16.msra.mxu1 %v5439_v37  ;;  %v5516_v37 = vpack.c.bf16 %v4425_v24, %v4424_v53  ;;  %v5445_v24 = vpack.c.bf16 %v2142_v18, %v2141_v7  ;;  %v7231_v18 = vsel %vm8926_vm11, %v1580_v29, %v1581_v5  ;;  %v4434_v29 = vld [vmem:[%s8527_s5 + $0x400] sm:$0xff]  ;;  %v9031_v53 = vld [vmem:[#allocation16_spill] sm:$0xff] }
 0x1a4   : > { %5145 = vmatmul.mubr.msk.f32.gmra.mrb[84].mxu0 %vm6644_vm12, %v8915_v8  ;;  %5441 = vmatprep.subr.bf16.mxu1 %v8806_v58  ;;  %v4426_v8 = vld [vmem:[%s8527_s5 + $0x3c0] sm:$0xff]  ;;  %vm8924_vm12 = vnez %v8923_v43  ;;  %vm8930_vm11 = vnez %v8929_v9 }
 0x1a5   : > { %5147 = vmatprep.mubr.f32.mxu0 %v8917_v55  ;;  %5514 = vmatpush1.bf16.msra.mxu0 %v5513_v6  ;;  %v4427_v55 = vld [vmem:[%s8527_s5 + $0x3c8] sm:$0xff]  ;;  %v8941_v9 = vld [vmem:[#allocation82_spill] sm:$0xff] }
 0x1a6   : > { %2346 = vmatmul.mubr.f32.gmra.mrb[26].mxu1 %v7200_v38  ;;  %5515 = vmatprep.subr.bf16.mxu0 %v8806_v58  ;;  %v8919_v6 = vld [vmem:[#allocation7_spill] sm:$0xff]  ;;  %v5519_v7 = vpack.c.bf16 %v4427_v55, %v4426_v8 }
 0x1a7   : > { %2350 = vmatprep.mubr.f32.mxu1 %v8918_v42  ;;  %v8920_v60 = vand.u32 15, %v8919_v6  ;;  %5443 = vmatpush1.bf16.msra.mxu1 %v5442_v48  ;;  %v2144_v6 = vld [vmem:[%s8527_s5 + $0xf8] sm:$0xff]  ;;  %v8927_v48 = vld [vmem:[#allocation40_spill] sm:$0xff]  ;;  %v4435_v55 = vld [vmem:[%s8527_s5 + $0x408] sm:$0xff] }
 0x1a8   : > { %5148 = vmatmul.mubr.msk.f32.gmra.mrb[86].mxu0 %vm8924_vm12, %v6685_v15  ;;  %5444 = vmatprep.subr.bf16.mxu1 %v8806_v58  ;;  %v1582_v43 = vrot.slane %v8927_v48, 7  ;;  %v4428_v15 = vld [vmem:[%s8527_s5 + $0x3d0] sm:$0xff]  ;;  %v5448_v8 = vpack.c.bf16 %v2144_v6, %v2143_v39  ;;  %vm8932_vm12 = vcmp.lt.s32.totalorder %v6094_v28, 1  ;;  %v4430_v39 = vld [vmem:[%s8527_s5 + $0x3e0] sm:$0xff]  ;;  %v7269_v6 = vpack.c.bf16 %v4435_v55, %v4434_v29 }
 0x1a9   : > { %vm7214_vm10 = vcmp.ne.s32.totalorder %v8920_v60, 0  ;;  %v8925_v60 = vld [vmem:[#allocation71_spill] sm:$0xff]  ;;  %5517 = vmatpush1.bf16.msra.mxu0 %v5516_v37  ;;  %v4429_v37 = vld [vmem:[%s8527_s5 + $0x3d8] sm:$0xff] }
 0x1aa   : > { %5150 = vmatprep.mubr.f32.mxu0 %v8925_v60  ;;  %4475 = vmatmul.mubr.msk.f32.gmra.mrb[28].mxu1 %vm7214_vm10, %v7231_v18  ;;  %v8928_v60 = vld [vmem:[#allocation75_spill] sm:$0xff]  ;;  %v7258_v45 = vsel %vm8932_vm12, %v1581_v5, %v1582_v43  ;;  %v5522_v36 = vpack.c.bf16 %v4429_v37, %v4428_v15  ;;  %v8934_v5 = vld [vmem:[#allocation8_spill] sm:$0xff]  ;;  %v8938_v37 = vld [vmem:[#allocation81_spill] sm:$0xff]  ;;  %v7285_v29 = vsel %vm8942_vm9, %v1582_v43, %v1583_v40 }
 0x1ab   : > { %5518 = vmatprep.subr.bf16.mxu0 %v8806_v58  ;;  %2355 = vmatprep.mubr.f32.mxu1 %v8927_v48  ;;  %v8935_v15 = vand.u32 15, %v8934_v5  ;;  %v8943_v5 = vld [vmem:[#allocation46_spill] sm:$0xff] }
 0x1ac   : > { %5446 = vmatpush1.bf16.msra.mxu1 %v5445_v24  ;;  %5151 = vmatmul.mubr.msk.f32.gmra.mrb[88].mxu0 %vm8930_vm11, %v8928_v60  ;;  %v4431_v24 = vld [vmem:[%s8527_s5 + $0x3e8] sm:$0xff]  ;;  %v8944_v43 = vld [vmem:[#allocation86_spill] sm:$0xff] }
 0x1ad   : > { %5447 = vmatprep.subr.bf16.mxu1 %v8806_v58  ;;  %5153 = vmatprep.mubr.f32.mxu0 %v8931_v17  ;;  %vm7274_vm12 = vcmp.ne.s32.totalorder %v8935_v15, 0  ;;  %v8939_v17 = vld [vmem:[#allocation78_spill] sm:$0xff]  ;;  %v5525_v55 = vpack.c.bf16 %v4431_v24, %v4430_v39  ;;  %v1584_v15 = vrot.slane %v8943_v5, 7  ;;  %v8945_v39 = vld [vmem:[#allocation83_spill] sm:$0xff] }
 0x1ae   : > { %5520 = vmatpush1.bf16.msra.mxu0 %v5519_v7  ;;  %2356 = vmatmul.mubr.f32.gmra.mrb[30].mxu1 %v7258_v45  ;;  %vm8940_vm11 = vnez %v8939_v17  ;;  %vm8946_vm9 = vnez %v8945_v39  ;;  %v8947_v24 = vld [vmem:[#allocation87_spill] sm:$0xff]  ;;  %v9036_v7 = vld [vmem:[#allocation26_spill] sm:$0xff] }
 0x1af   : > { %5521 = vmatprep.subr.bf16.mxu0 %v8806_v58  ;;  %2360 = vmatprep.mubr.f32.mxu1 %v8933_v22 }
 0x1b0   : > { %5449 = vmatpush1.bf16.msra.mxu1 %v5448_v8  ;;  %5154 = vmatmul.mubr.msk.f32.gmra.mrb[90].mxu0 %vm8940_vm11, %v8938_v37  ;;  %v4432_v8 = vld [vmem:[%s8527_s5 + $0x3f0] sm:$0xff]  ;;  %vm8948_vm11 = vcmp.lt.s32.totalorder %v6094_v28, 1  ;;  %v8997_v28 = vld [vmem:[#allocation10_spill] sm:$0xff] }
 0x1b1   : > { %5594 = vmatprep.subr.bf16.mxu1 %v7269_v6  ;;  %5156 = vmatprep.mubr.f32.mxu0 %v8941_v9  ;;  %v7305_v9 = vsel %vm8948_vm11, %v1583_v40, %v1584_v15  ;;  %v8949_v37 = vld [vmem:[#allocation52_spill] sm:$0xff]  ;;  %vm8981_vm4 = vmmov %vm8948_vm11 }
 0x1b2   : > { %5523 = vmatpush1.bf16.msra.mxu0 %v5522_v36  ;;  %4477 = vmatmul.mubr.msk.f32.gmra.mrb[32].mxu1 %vm7274_vm12, %v7285_v29  ;;  %v4433_v36 = vld [vmem:[%s8527_s5 + $0x3f8] sm:$0xff]  ;;  %v1585_v60 = vrot.slane %v8949_v37, 7  ;;  %v4436_v40 = vld [vmem:[%s8527_s5 + $0x410] sm:$0xff] }
 0x1b3   : > { %5524 = vmatprep.subr.bf16.mxu0 %v8806_v58  ;;  %2365 = vmatprep.mubr.f32.mxu1 %v8943_v5  ;;  %v5528_v17 = vpack.c.bf16 %v4433_v36, %v4432_v8 }
 0x1b4   : > { %5157 = vmatmul.mubr.msk.f32.gmra.mrb[92].mxu0 %vm8946_vm9, %v8944_v43  ;;  %v7329_v56 = vsel %vm8948_vm11, %v1584_v15, %v1585_v60  ;;  %v4439_v15 = vld [vmem:[%s8527_s5 + $0x428] sm:$0xff] }
 0x1b5   : > { %5159 = vmatprep.mubr.f32.mxu0 %v8947_v24 }
 0x1b6   : > { %5526 = vmatpush1.bf16.msra.mxu0 %v5525_v55  ;;  %2366 = vmatmul.mubr.f32.gmra.mrb[34].mxu1 %v7305_v9  ;;  %v4437_v55 = vld [vmem:[%s8527_s5 + $0x418] sm:$0xff] }
 0x1b7   : > { %5527 = vmatprep.subr.bf16.mxu0 %v8806_v58  ;;  %2370 = vmatprep.mubr.f32.mxu1 %v8949_v37  ;;  %v1586_v58 = vrot.slane %v8954_v25, 7  ;;  %v7336_v8 = vpack.c.bf16 %v4437_v55, %v4436_v40  ;;  %v8955_v40 = vld [vmem:[#allocation58_spill] sm:$0xff] }
 0x1b8   : > { %5160 = vmatmul.mubr.msk.f32.gmra.mrb[94].mxu0 %vm6808_vm0, %v6824_v46  ;;  %v1587_v55 = vrot.slane %v8955_v40, 7  ;;  %v8956_v46 = vld [vmem:[#allocation22_spill] sm:$0xff] }
 0x1b9   : > { %3325 = vmatprep.mubr.f32.mxu0 %v6333_v49  ;;  %v7351_v36 = vsel %vm8948_vm11, %v1585_v60, %v1586_v58  ;;  %v8957_v24 = vand.u32 15, %v8956_v46  ;;  %v4440_v60 = vld [vmem:[%s8527_s5 + $0x430] sm:$0xff]  ;;  %v8960_v46 = vld [vmem:[#allocation57_spill] sm:$0xff] }
 0x1ba   : > { %5529 = vmatpush1.bf16.msra.mxu0 %v5528_v17  ;;  %4479 = vmatmul.mubr.msk.f32.gmra.mrb[36].mxu1 %vm7313_vm7, %v7329_v56  ;;  %v4438_v17 = vld [vmem:[%s8527_s5 + $0x420] sm:$0xff] }
 0x1bb   : > { %5531 = vmatprep.subr.bf16.mxu0 %v7269_v6  ;;  %2375 = vmatprep.mubr.f32.mxu1 %v8954_v25  ;;  %v7357_v4 = vpack.c.bf16 %v4439_v15, %v4438_v17  ;;  %vm7362_vm0 = vcmp.ne.s32.totalorder %v8957_v24, 0  ;;  %v7376_v17 = vsel %vm8948_vm11, %v1586_v58, %v1587_v55  ;;  %v1588_v24 = vrot.slane %v8960_v46, 7  ;;  %v4443_v58 = vld [vmem:[%s8527_s5 + $0x448] sm:$0xff] }
 0x1bc   : > { %v7384_v15 = vpack.c.bf16 %v4441_v35, %v4440_v60  ;;  %v8962_v60 = vld [vmem:[#allocation63_spill] sm:$0xff] }
 0x1bd   : > { %4585 = vmatmul.mubr.msk.f32.vlgmr.msra.gmra.mrb[96].mxu0 %vm6869_vm14, %v6885_v59  ;;  %v7399_v35 = vsel %vm8948_vm11, %v1587_v55, %v1588_v24  ;;  %v4444_v55 = vld [vmem:[%s8527_s5 + $0x450] sm:$0xff] }
 0x1be   : > { %3330 = vmatprep.mubr.f32.mxu0 %v6330_v44  ;;  %5533 = vmatpush3.bf16.msra.mxu0 %v7269_v6  ;;  %8961 = vst [vmem:[#allocation7_spill] sm:$0xff] %v7399_v35 }
 0x1bf   : > { %2376 = vmatmul.mubr.f32.gmra.mrb[38].mxu1 %v7351_v36  ;;  %5535 = vmatprep.subr.bf16.mxu0 %v7336_v8 }
 0x1c0   : > { %2380 = vmatprep.mubr.f32.mxu1 %v8955_v40 }
 0x1c1   : > { %3331 = vmatmul.mubr.f32.gmra.mrb[98].mxu0 %v6910_v12  ;;  %v1589_v12 = vrot.slane %v8962_v60, 7 }
 0x1c2   : > { %3335 = vmatprep.mubr.f32.mxu0 %v6364_v0  ;;  %5537 = vmatpush3.bf16.msra.mxu0 %v7336_v8  ;;  %v4442_v0 = vld [vmem:[%s8527_s5 + $0x440] sm:$0xff] }
 0x1c3   : > { %4481 = vmatmul.mubr.msk.f32.gmra.mrb[40].mxu1 %vm7362_vm0, %v7376_v17  ;;  %5539 = vmatprep.subr.bf16.mxu0 %v7357_v4 }
 0x1c4   : > { %2385 = vmatprep.mubr.f32.mxu1 %v8960_v46  ;;  %v7405_v46 = vpack.c.bf16 %v4443_v58, %v4442_v0  ;;  %v7424_v0 = vsel %vm8948_vm11, %v1588_v24, %v1589_v12  ;;  %v4447_v24 = vld [vmem:[%s8527_s5 + $0x468] sm:$0xff] }
 0x1c5   : > { %4587 = vmatmul.mubr.msk.f32.gmra.mrb[100].mxu0 %vm6924_vm15, %v6941_v23  ;;  %v8964_v23 = vand.u32 15, %v8963_v14  ;;  %v8967_v14 = vld [vmem:[#allocation62_spill] sm:$0xff]  ;;  %v9002_v21 = vld [vmem:[#allocation7_spill] sm:$0xff] }
 0x1c6   : > { %3340 = vmatprep.mubr.f32.mxu0 %v6360_v13  ;;  %5541 = vmatpush3.bf16.msra.mxu0 %v7357_v4 }
 0x1c7   : > { %2386 = vmatmul.mubr.f32.gmra.mrb[42].mxu1 %v7399_v35  ;;  %5543 = vmatprep.subr.bf16.mxu0 %v7384_v15  ;;  %vm7410_vm9 = vcmp.ne.s32.totalorder %v8964_v23, 0  ;;  %v4445_v35 = vld [vmem:[%s8527_s5 + $0x458] sm:$0xff]  ;;  %v1590_v23 = vrot.slane %v8967_v14, 7 }
 0x1c8   : > { %2390 = vmatprep.mubr.f32.mxu1 %v8962_v60  ;;  %v7432_v58 = vpack.c.bf16 %v4445_v35, %v4444_v55  ;;  %v8969_v55 = vld [vmem:[#allocation69_spill] sm:$0xff] }
 0x1c9   : > { %3341 = vmatmul.mubr.f32.gmra.mrb[102].mxu0 %v6968_v52  ;;  %v7447_v35 = vsel %vm8948_vm11, %v1589_v12, %v1590_v23  ;;  %v1591_v52 = vrot.slane %v8969_v55, 7  ;;  %v4448_v12 = vld [vmem:[%s8527_s5 + $0x470] sm:$0xff] }
 0x1ca   : > { %3345 = vmatprep.mubr.f32.mxu0 %v6397_v57  ;;  %5545 = vmatpush3.bf16.msra.mxu0 %v7384_v15  ;;  %v4446_v57 = vld [vmem:[%s8527_s5 + $0x460] sm:$0xff]  ;;  %8968 = vst [vmem:[#allocation8_spill] sm:$0xff] %v7447_v35 }
 0x1cb   : > { %4483 = vmatmul.mubr.msk.f32.gmra.mrb[44].mxu1 %vm7410_vm9, %v7424_v0  ;;  %5547 = vmatprep.subr.bf16.mxu0 %v7405_v46 }
 0x1cc   : > { %2395 = vmatprep.mubr.f32.mxu1 %v8967_v14  ;;  %v7453_v14 = vpack.c.bf16 %v4447_v24, %v4446_v57  ;;  %v7472_v57 = vsel %vm8948_vm11, %v1590_v23, %v1591_v52 }
 0x1cd   : > { %4589 = vmatmul.mubr.msk.f32.gmra.mrb[104].mxu0 %vm6982_vm2, %v6999_v19  ;;  %v8971_v19 = vand.u32 15, %v8970_v51  ;;  %v8974_v51 = vld [vmem:[#allocation68_spill] sm:$0xff] }
 0x1ce   : > { %3350 = vmatprep.mubr.f32.mxu0 %v6394_v32  ;;  %5549 = vmatpush3.bf16.msra.mxu0 %v7405_v46 }
 0x1cf   : > { %2396 = vmatmul.mubr.f32.gmra.mrb[46].mxu1 %v7447_v35  ;;  %5551 = vmatprep.subr.bf16.mxu0 %v7432_v58  ;;  %vm7458_vm6 = vcmp.ne.s32.totalorder %v8971_v19, 0  ;;  %v4449_v35 = vld [vmem:[%s8527_s5 + $0x478] sm:$0xff]  ;;  %v1592_v19 = vrot.slane %v8974_v51, 7 }
 0x1d0   : > { %2400 = vmatprep.mubr.f32.mxu1 %v8969_v55  ;;  %v7480_v24 = vpack.c.bf16 %v4449_v35, %v4448_v12  ;;  %v8976_v35 = vld [vmem:[#allocation55_spill] sm:$0xff] }
 0x1d1   : > { %3351 = vmatmul.mubr.f32.gmra.mrb[106].mxu0 %v7026_v16  ;;  %v7489_v23 = vsel %vm8948_vm11, %v1591_v52, %v1592_v19  ;;  %v8977_v12 = vand.u32 15, %v8976_v35  ;;  %v8982_v35 = vld [vmem:[#allocation80_spill] sm:$0xff] }
 0x1d2   : > { %3355 = vmatprep.mubr.f32.mxu0 %v6433_v27  ;;  %5553 = vmatpush3.bf16.msra.mxu0 %v7432_v58  ;;  %v8975_v27 = vld [vmem:[#allocation74_spill] sm:$0xff] }
 0x1d3   : > { %4485 = vmatmul.mubr.msk.f32.gmra.mrb[48].mxu1 %vm7458_vm6, %v7472_v57  ;;  %5555 = vmatprep.subr.bf16.mxu0 %v7453_v14  ;;  %v1593_v16 = vrot.slane %v8975_v27, 7  ;;  %vm7498_vm5 = vcmp.ne.s32.totalorder %v8977_v12, 0  ;;  %v1595_v12 = vrot.slane %v8982_v35, 7 }
 0x1d4   : > { %2405 = vmatprep.mubr.f32.mxu1 %v8974_v51 }
 0x1d5   : > { %4591 = vmatmul.mubr.msk.f32.gmra.mrb[108].mxu0 %vm7040_vm3, %v7057_v61  ;;  %v7506_v52 = vsel %vm8948_vm11, %v1592_v19, %v1593_v16 }
 0x1d6   : > { %3360 = vmatprep.mubr.f32.mxu0 %v6429_v20  ;;  %5557 = vmatpush3.bf16.msra.mxu0 %v7453_v14  ;;  %v8980_v20 = vld [vmem:[#allocation73_spill] sm:$0xff] }
 0x1d7   : > { %2406 = vmatmul.mubr.f32.gmra.mrb[50].mxu1 %v7489_v23  ;;  %5559 = vmatprep.subr.bf16.mxu0 %v7480_v24  ;;  %v1594_v61 = vrot.slane %v8980_v20, 7 }
 0x1d8   : > { %2410 = vmatprep.mubr.f32.mxu1 %v8975_v27 }
 0x1d9   : > { %3361 = vmatmul.mubr.f32.gmra.mrb[110].mxu0 %v7084_v63  ;;  %v7520_v19 = vsel %vm8981_vm4, %v1593_v16, %v1594_v61 }
 0x1da   : > { %3365 = vmatprep.mubr.f32.mxu0 %v6465_v26  ;;  %5561 = vmatpush3.bf16.msra.mxu0 %v7480_v24  ;;  %v8983_v26 = vld [vmem:[#allocation66_spill] sm:$0xff] }
 0x1db   : > { %4487 = vmatmul.mubr.msk.f32.gmra.mrb[52].mxu1 %vm7498_vm5, %v7506_v52  ;;  %v8984_v63 = vand.u32 15, %v8983_v26 }
 0x1dc   : > { %2415 = vmatprep.mubr.f32.mxu1 %v8980_v20 }
 0x1dd   : > { %4593 = vmatmul.mubr.msk.f32.gmra.mrb[112].mxu0 %vm7098_vm13, %v7115_v50  ;;  %vm7527_vm11 = vcmp.ne.s32.totalorder %v8984_v63, 0  ;;  %vm8987_vm13 = vmmov %vm8981_vm4 }
 0x1de   : > { %3370 = vmatprep.mubr.f32.mxu0 %v8904_v62  ;;  %v7535_v16 = vsel %vm8987_vm13, %v1594_v61, %v1595_v12  ;;  %v8988_v62 = vld [vmem:[#allocation79_spill] sm:$0xff]  ;;  %v8989_v61 = vld [vmem:[#allocation77_spill] sm:$0xff] }
 0x1df   : > { %2416 = vmatmul.mubr.f32.gmra.mrb[54].mxu1 %v7520_v19  ;;  %v1596_v10 = vrot.slane %v8988_v62, 7  ;;  %v8990_v63 = vand.u32 15, %v8989_v61  ;;  %v8996_v61 = vmov 0.0  }
 0x1e0   : > { %2420 = vmatprep.mubr.f32.mxu1 %v8982_v35 }
 0x1e1   : > { %3371 = vmatmul.mubr.f32.gmra.mrb[114].mxu0 %v7142_v31  ;;  %v7548_v26 = vsel %vm8981_vm4, %v1595_v12, %v1596_v10  ;;  %vm7554_vm13 = vcmp.ne.s32.totalorder %v8990_v63, 0  ;;  %v9008_v63 = vld [vmem:[#allocation19_spill] sm:$0xff] }
 0x1e2   : > { %3375 = vmatprep.mubr.f32.mxu0 %v8906_v11 }
 0x1e3   : > { %4489 = vmatmul.mubr.msk.f32.gmra.mrb[56].mxu1 %vm7527_vm11, %v7535_v16 }
 0x1e4   : > { %2425 = vmatprep.mubr.f32.mxu1 %v8988_v62 }
 0x1e5   : > { %4595 = vmatmul.mubr.msk.f32.gmra.mrb[116].mxu0 %vm7156_vm8, %v7173_v1  ;;  %vm8994_vm8 = vmmov %vm8981_vm4 }
 0x1e6   : > { %3380 = vmatprep.mubr.f32.mxu0 %v8914_v2  ;;  %v8993_v2 = vrot.slane %v6770_v47, 7 }
 0x1e7   : > { %2426 = vmatmul.mubr.f32.gmra.mrb[58].mxu1 %v7548_v26 }
 0x1e8   : > { %2430 = vmatprep.mubr.f32.mxu1 %v6770_v47  ;;  %v7564_v12 = vsel %vm8994_vm8, %v1596_v10, %v8993_v2  ;;  %v8998_v10 = vld [vmem:[#allocation92_spill] sm:$0xff] }
 0x1e9   : > { %3381 = vmatmul.mubr.f32.gmra.mrb[118].mxu0 %v7200_v38 }
 0x1ea   : > { %3385 = vmatprep.mubr.f32.mxu0 %v8918_v42 }
 0x1eb   : > { %4491 = vmatmul.mubr.msk.f32.gmra.mrb[60].mxu1 %vm7554_vm13, %v7564_v12 }
 0x1ec   : > { %2435 = vmatprep.mubr.f32.mxu1 %v8995_v41 }
 0x1ed   : > { %4597 = vmatmul.mubr.msk.f32.gmra.mrb[120].mxu0 %vm7214_vm10, %v7231_v18 }
 0x1ee   : > { %3390 = vmatprep.mubr.f32.mxu0 %v8927_v48 }
 0x1ef   : > { %2436 = vmatmul.mubr.f32.gmra.mrb[62].mxu1 %v6834_v33 }
 0x1f0   : > { %2730 = vmatprep.mubr.f32.mxu1 %v8996_v61 }
 0x1f1   : > { %3391 = vmatmul.mubr.f32.gmra.mrb[122].mxu0 %v7258_v45 }
 0x1f2   : > { %3395 = vmatprep.mubr.f32.mxu0 %v8933_v22 }
 0x1f3   : > { %2731 = vmatmul.mubr.f32.vlgmr.msra.gmra.mrb[64].mxu1 %v8996_v61 }
 0x1f4   : > { %5602 = vmatpush3.bf16.msra.mxu1 %v7269_v6  ;;  %2735 = vmatprep.mubr.f32.mxu1 %v8996_v61  ;;  %v9005_v6 = vld [vmem:[#allocation14_spill] sm:$0xff] }
 0x1f5   : > { %4599 = vmatmul.mubr.msk.f32.gmra.mrb[124].mxu0 %vm7274_vm12, %v7285_v29  ;;  %5595 = vmatprep.subr.bf16.mxu1 %v7336_v8 }
 0x1f6   : > { %3400 = vmatprep.mubr.f32.mxu0 %v8943_v5 }
 0x1f7   : > { %2736 = vmatmul.mubr.f32.gmra.mrb[66].mxu1 %v8996_v61 }
 0x1f8   : > { %2740 = vmatprep.mubr.f32.mxu1 %v8997_v28  ;;  %5603 = vmatpush3.bf16.msra.mxu1 %v7336_v8  ;;  %v9006_v8 = vld [vmem:[#allocation62_spill] sm:$0xff]  ;;  %v9020_v28 = vld [vmem:[#allocation103_spill] sm:$0xff] }
 0x1f9   : > { %3401 = vmatmul.mubr.f32.gmra.mrb[126].mxu0 %v7305_v9  ;;  %5596 = vmatprep.subr.bf16.mxu1 %v7357_v4 }
 0x1fa   : > { %3405 = vmatprep.mubr.f32.mxu0 %v8949_v37 }
 0x1fb   : > { %4525 = vmatmul.mubr.msk.f32.gmra.mrb[68].mxu1 %vm6782_vm1, %v6804_v3  ;;  %v9001_v3 = vld [vmem:[#allocation15_spill] sm:$0xff] }
 0x1fc   : > { %2745 = vmatprep.mubr.f32.mxu1 %v6320_v30  ;;  %5604 = vmatpush3.bf16.msra.mxu1 %v7357_v4  ;;  %v9000_v4 = vld [vmem:[#allocation94_spill] sm:$0xff] }
 0x1fd   : > { %4601 = vmatmul.mubr.msk.f32.gmra.mrb[128].mxu0 %vm7313_vm7, %v7329_v56  ;;  %5597 = vmatprep.subr.bf16.mxu1 %v7384_v15 }
 0x1fe   : > { %3410 = vmatprep.mubr.f32.mxu0 %v8954_v25 }
 0x1ff   : > { %2746 = vmatmul.mubr.f32.gmra.mrb[70].mxu1 %v8998_v10  ;;  %v9009_v10 = vld [vmem:[#allocation8_spill] sm:$0xff] }
 0x200   : > { %2750 = vmatprep.mubr.f32.mxu1 %v6333_v49  ;;  %5605 = vmatpush3.bf16.msra.mxu1 %v7384_v15  ;;  %v9007_v15 = vld [vmem:[#allocation97_spill] sm:$0xff] }
 0x201   : > { %3411 = vmatmul.mubr.f32.gmra.mrb[130].mxu0 %v7351_v36  ;;  %5598 = vmatprep.subr.bf16.mxu1 %v7405_v46 }
 0x202   : > { %3415 = vmatprep.mubr.f32.mxu0 %v8955_v40 }
 0x203   : > { %4527 = vmatmul.mubr.msk.f32.gmra.mrb[72].mxu1 %vm6869_vm14, %v6885_v59  ;;  %v9003_v59 = vld [vmem:[#allocation96_spill] sm:$0xff] }
 0x204   : > { %2755 = vmatprep.mubr.f32.mxu1 %v6330_v44  ;;  %5606 = vmatpush3.bf16.msra.mxu1 %v7405_v46  ;;  %v9018_v44 = vld [vmem:[#allocation24_spill] sm:$0xff] }
 0x205   : > { %4603 = vmatmul.mubr.msk.f32.gmra.mrb[132].mxu0 %vm7362_vm0, %v7376_v17  ;;  %5599 = vmatprep.subr.bf16.mxu1 %v7432_v58 }
 0x206   : > { %3420 = vmatprep.mubr.f32.mxu0 %v8999_v34 }
 0x207   : > { %2756 = vmatmul.mubr.f32.gmra.mrb[74].mxu1 %v9000_v4  ;;  %v9010_v4 = vld [vmem:[#allocation99_spill] sm:$0xff] }
 0x208   : > { %2760 = vmatprep.mubr.f32.mxu1 %v9001_v3  ;;  %5607 = vmatpush3.bf16.msra.mxu1 %v7432_v58  ;;  %v9012_v3 = vld [vmem:[#allocation18_spill] sm:$0xff] }
 0x209   : > { %3421 = vmatmul.mubr.f32.gmra.mrb[134].mxu0 %v9002_v21  ;;  %5600 = vmatprep.subr.bf16.mxu1 %v7453_v14 }
 0x20a   : > { %3425 = vmatprep.mubr.f32.mxu0 %v8962_v60 }
 0x20b   : > { %4529 = vmatmul.mubr.msk.f32.gmra.mrb[76].mxu1 %vm6924_vm15, %v9003_v59  ;;  %v9016_v59 = vld [vmem:[#allocation102_spill] sm:$0xff] }
 0x20c   : > { %2765 = vmatprep.mubr.f32.mxu1 %v9005_v6  ;;  %5608 = vmatpush3.bf16.msra.mxu1 %v7453_v14  ;;  %v9014_v6 = vld [vmem:[#allocation25_spill] sm:$0xff] }
 0x20d   : > { %4605 = vmatmul.mubr.msk.f32.gmra.mrb[136].mxu0 %vm7410_vm9, %v7424_v0  ;;  %5601 = vmatprep.subr.bf16.mxu1 %v7480_v24 }
 0x20e   : > { %3430 = vmatprep.mubr.f32.mxu0 %v9006_v8  ;;  %v7634_v46 = vpop.f32.mrb[32].mxu0 }
 0x20f   : > { %2766 = vmatmul.mubr.f32.gmra.mrb[78].mxu1 %v9007_v15  ;;  %v7637_v58 = vpop.f32.mrb[33].mxu0  ;;  %v9013_v15 = vld [vmem:[#allocation100_spill] sm:$0xff] }
 0x210   : > { %2770 = vmatprep.mubr.f32.mxu1 %v9008_v63  ;;  %5609 = vmatpush3.bf16.msra.mxu1 %v7480_v24 }
 0x211   : > { %3431 = vmatmul.mubr.f32.gmra.mrb[138].mxu0 %v9009_v10 }
 0x212   : > { %3435 = vmatprep.mubr.f32.mxu0 %v8969_v55  ;;  %v7643_v14 = vpop.f32.mrb[34].mxu0 }
 0x213   : > { %4531 = vmatmul.mubr.msk.f32.gmra.mrb[80].mxu1 %vm6982_vm2, %v9010_v4  ;;  %v7648_v2 = vpop.f32.mrb[35].mxu0 }
 0x214   : > { %2775 = vmatprep.mubr.f32.mxu1 %v9012_v3 }
 0x215   : > { %4607 = vmatmul.mubr.msk.f32.gmra.mrb[140].mxu0 %vm7458_vm6, %v7472_v57 }
 0x216   : > { %3440 = vmatprep.mubr.f32.mxu0 %v8974_v51  ;;  %v7655_v24 = vpop.f32.mrb[36].mxu0 }
 0x217   : > { %2776 = vmatmul.mubr.f32.gmra.mrb[82].mxu1 %v9013_v15  ;;  %v7658_v63 = vpop.f32.mrb[37].mxu0  ;;  %v9019_v15 = vld [vmem:[#allocation73_spill] sm:$0xff] }
 0x218   : > { %2780 = vmatprep.mubr.f32.mxu1 %v9014_v6 }
 0x219   : > { %3441 = vmatmul.mubr.f32.gmra.mrb[142].mxu0 %v7489_v23 }
 0x21a   : > { %3445 = vmatprep.mubr.f32.mxu0 %v8975_v27  ;;  %v7663_v4 = vpop.f32.mrb[38].mxu0 }
 0x21b   : > { %9015 = vst [vmem:[#allocation13_spill] sm:$0xff] %v7663_v4  ;;  %4533 = vmatmul.mubr.msk.f32.gmra.mrb[84].mxu1 %vm7040_vm3, %v9016_v59  ;;  %v7668_v49 = vpop.f32.mrb[39].mxu0  ;;  %v9021_v4 = vld [vmem:[#allocation30_spill] sm:$0xff]  ;;  %v9023_v59 = vld [vmem:[#allocation104_spill] sm:$0xff] }
 0x21c   : > { %2785 = vmatprep.mubr.f32.mxu1 %v9018_v44  ;;  %vm9024_vm1 = vnez %v9023_v59  ;;  %v9028_v59 = vld [vmem:[#allocation6_spill] sm:$0xff] }
 0x21d   : > { %4609 = vmatmul.mubr.msk.f32.gmra.mrb[144].mxu0 %vm7498_vm5, %v7506_v52  ;;  %vm9029_vm14 = vnez %v9028_v59  ;;  %v9032_v59 = vld [vmem:[#allocation20_spill] sm:$0xff] }
 0x21e   : > { %3450 = vmatprep.mubr.f32.mxu0 %v9019_v15  ;;  %v7675_v6 = vpop.f32.mrb[40].mxu0  ;;  %v9026_v15 = vld [vmem:[#allocation29_spill] sm:$0xff] }
 0x21f   : > { %2786 = vmatmul.mubr.f32.gmra.mrb[86].mxu1 %v9020_v28  ;;  %v7678_v30 = vpop.f32.mrb[41].mxu0 }
 0x220   : > { %2790 = vmatprep.mubr.f32.mxu1 %v9021_v4 }
 0x221   : > { %3451 = vmatmul.mubr.f32.gmra.mrb[146].mxu0 %v7520_v19 }
 0x222   : > { %3455 = vmatprep.mubr.f32.mxu0 %v8982_v35  ;;  %v7683_v3 = vpop.f32.mrb[42].mxu0 }
 0x223   : > { %9022 = vst [vmem:[#allocation22_spill] sm:$0xff] %v7683_v3  ;;  %4535 = vmatmul.mubr.msk.f32.gmra.mrb[88].mxu1 %vm9024_vm1, %v7115_v50  ;;  %v7688_v44 = vpop.f32.mrb[43].mxu0  ;;  %v9027_v3 = vld [vmem:[#allocation36_spill] sm:$0xff] }
 0x224   : > { %9025 = vst [vmem:[#allocation33_spill] sm:$0xff] %v7688_v44  ;;  %2795 = vmatprep.mubr.f32.mxu1 %v9026_v15  ;;  %v9030_v44 = vld [vmem:[#allocation35_spill] sm:$0xff] }
 0x225   : > { %4611 = vmatmul.mubr.msk.f32.gmra.mrb[148].mxu0 %vm7527_vm11, %v7535_v16 }
 0x226   : > { %3460 = vmatprep.mubr.f32.mxu0 %v8988_v62  ;;  %v7695_v28 = vpop.f32.mrb[44].mxu0 }
 0x227   : > { %2796 = vmatmul.mubr.f32.gmra.mrb[90].mxu1 %v7142_v31  ;;  %v7698_v4 = vpop.f32.mrb[45].mxu0 }
 0x228   : > { %2800 = vmatprep.mubr.f32.mxu1 %v9027_v3  ;;  %v9073_v3 = vld [vmem:[#allocation70_spill] sm:$0xff] }
 0x229   : > { %3461 = vmatmul.mubr.f32.gmra.mrb[150].mxu0 %v7548_v26 }
 0x22a   : > { %3465 = vmatprep.mubr.f32.mxu0 %v6770_v47  ;;  %v7703_v50 = vpop.f32.mrb[46].mxu0 }
 0x22b   : > { %4537 = vmatmul.mubr.msk.f32.gmra.mrb[92].mxu1 %vm9029_vm14, %v7173_v1  ;;  %v7708_v15 = vpop.f32.mrb[47].mxu0 }
 0x22c   : > { %2805 = vmatprep.mubr.f32.mxu1 %v9030_v44  ;;  %v9074_v44 = vld [vmem:[#allocation67_spill] sm:$0xff] }
 0x22d   : > { %4613 = vmatmul.mubr.msk.f32.gmra.mrb[152].mxu0 %vm7554_vm13, %v7564_v12 }
 0x22e   : > { %3470 = vmatprep.mubr.f32.mxu0 %v8995_v41  ;;  %v7715_v31 = vpop.f32.mrb[48].mxu0  ;;  %v9035_v41 = vld [vmem:[#allocation21_spill] sm:$0xff] }
 0x22f   : > { %2806 = vmatmul.mubr.f32.gmra.mrb[94].mxu1 %v7200_v38  ;;  %v7718_v47 = vpop.f32.mrb[49].mxu0 }
 0x230   : > { %2810 = vmatprep.mubr.f32.mxu1 %v8918_v42  ;;  %v9039_v42 = vld [vmem:[#allocation27_spill] sm:$0xff] }
 0x231   : > { %3471 = vmatmul.mubr.f32.gmra.mrb[154].mxu0 %v6834_v33 }
 0x232   : > { %3475 = vmatprep.mubr.f32.mxu0 %v8996_v61  ;;  %v7723_v1 = vpop.f32.mrb[50].mxu0 }
 0x233   : > { %4539 = vmatmul.mubr.msk.f32.gmra.mrb[96].mxu1 %vm7214_vm10, %v7231_v18  ;;  %v7728_v11 = vpop.f32.mrb[51].mxu0 }
 0x234   : > { %2815 = vmatprep.mubr.f32.mxu1 %v8927_v48 }
 0x235   : > { %3476 = vmatmul.mubr.f32.gmra.mrb[156].mxu0 %v8996_v61 }
 0x236   : > { %3480 = vmatprep.mubr.f32.mxu0 %v8996_v61  ;;  %v7733_v38 = vpop.f32.mrb[52].mxu0 }
 0x237   : > { %2816 = vmatmul.mubr.f32.gmra.mrb[98].mxu1 %v7258_v45  ;;  %v7736_v33 = vpop.f32.mrb[53].mxu0  ;;  %v9033_v45 = vld [vmem:[#allocation17_spill] sm:$0xff] }
 0x238   : > { %2820 = vmatprep.mubr.f32.mxu1 %v8933_v22  ;;  %vm9034_vm15 = vnez %v9033_v45  ;;  %v9043_v45 = vld [vmem:[#allocation32_spill] sm:$0xff] }
 0x239   : > { %3481 = vmatmul.mubr.f32.gmra.mrb[158].mxu0 %v8996_v61 }
 0x23a   : > { %5194 = vmatprep.mubr.f32.mxu0 %v9031_v53  ;;  %v7741_v18 = vpop.f32.mrb[54].mxu0 }
 0x23b   : > { %4541 = vmatmul.mubr.msk.f32.gmra.mrb[100].mxu1 %vm7274_vm12, %v7285_v29  ;;  %v7746_v12 = vpop.f32.mrb[55].mxu0  ;;  %v9037_v29 = vld [vmem:[#allocation23_spill] sm:$0xff] }
 0x23c   : > { %2825 = vmatprep.mubr.f32.mxu1 %v8943_v5  ;;  %vm9038_vm2 = vnez %v9037_v29 }
 0x23d   : > { %5195 = vmatmul.mubr.msk.f32.vlgmr.msra.gmra.mrb[160].mxu0 %vm9034_vm15, %v9032_v59  ;;  %v9041_v59 = vld [vmem:[#allocation28_spill] sm:$0xff] }
 0x23e   : > { %5197 = vmatprep.mubr.f32.mxu0 %v9035_v41  ;;  %v7753_v22 = vpop.f32.mrb[56].mxu0  ;;  %vm9042_vm3 = vnez %v9041_v59 }
 0x23f   : > { %2826 = vmatmul.mubr.f32.gmra.mrb[102].mxu1 %v7305_v9  ;;  %v7756_v53 = vpop.f32.mrb[57].mxu0  ;;  %v9040_v9 = vld [vmem:[#allocation31_spill] sm:$0xff] }
 0x240   : > { %2830 = vmatprep.mubr.f32.mxu1 %v8949_v37 }
 0x241   : > { %5198 = vmatmul.mubr.msk.f32.gmra.mrb[162].mxu0 %vm9038_vm2, %v9036_v7 }
 0x242   : > { %5200 = vmatprep.mubr.f32.mxu0 %v9039_v42  ;;  %v7763_v5 = vpop.f32.mrb[58].mxu0 }
 0x243   : > { %4543 = vmatmul.mubr.msk.f32.gmra.mrb[104].mxu1 %vm7313_vm7, %v7329_v56  ;;  %v7768_v41 = vpop.f32.mrb[59].mxu0  ;;  %v9044_v56 = vld [vmem:[#allocation37_spill] sm:$0xff] }
 0x244   : > { %2835 = vmatprep.mubr.f32.mxu1 %v8954_v25  ;;  %v9045_v25 = vld [vmem:[#allocation34_spill] sm:$0xff] }
 0x245   : > { %5201 = vmatmul.mubr.msk.f32.gmra.mrb[164].mxu0 %vm9042_vm3, %v9040_v9  ;;  %v2282_v29 = vpop.f32.mrb[0].mxu1  ;;  %vm9046_vm7 = vnez %v9045_v25  ;;  %v9047_v9 = vld [vmem:[#allocation38_spill] sm:$0xff]  ;;  %v9049_v25 = vld [vmem:[#allocation39_spill] sm:$0xff] }
 0x246   : > { %5203 = vmatprep.mubr.f32.mxu0 %v9043_v45  ;;  %v7776_v7 = vadd.f32 %v7637_v58, %v2282_v29  ;;  %v2284_v42 = vpop.f32.mrb[1].mxu1  ;;  %vm9050_vm8 = vnez %v9049_v25 }
 0x247   : > { %2836 = vmatmul.mubr.f32.gmra.mrb[106].mxu1 %v7351_v36  ;;  %v7779_v37 = vpop.f32.mrb[60].mxu0  ;;  %v9048_v42 = vld [vmem:[#allocation42_spill] sm:$0xff] }
 0x248   : > { %2840 = vmatprep.mubr.f32.mxu1 %v8955_v40  ;;  %v7782_v39 = vpop.f32.mrb[61].mxu0 }
 0x249   : > { %5204 = vmatmul.mubr.msk.f32.gmra.mrb[166].mxu0 %vm9046_vm7, %v9044_v56  ;;  %v2287_v59 = vpop.f32.mrb[2].mxu1  ;;  %v9051_v56 = vld [vmem:[#allocation43_spill] sm:$0xff] }
 0x24a   : > { %5206 = vmatprep.mubr.f32.mxu0 %v9047_v9  ;;  %v7789_v45 = vadd.f32 %v7634_v46, %v2287_v59  ;;  %v2289_v58 = vpop.f32.mrb[3].mxu1 }
 0x24b   : > { %4545 = vmatmul.mubr.msk.f32.gmra.mrb[108].mxu1 %vm7362_vm0, %v7376_v17  ;;  %v7794_v36 = vpop.f32.mrb[62].mxu0  ;;  %v9052_v17 = vld [vmem:[#allocation48_spill] sm:$0xff]  ;;  %v9053_v58 = vld [vmem:[#allocation45_spill] sm:$0xff] }
 0x24c   : > { %2845 = vmatprep.mubr.f32.mxu1 %v8999_v34  ;;  %v7797_v29 = vpop.f32.mrb[63].mxu0  ;;  %vm9054_vm0 = vnez %v9053_v58  ;;  %v9059_v58 = vld [vmem:[#allocation54_spill] sm:$0xff]  ;;  %v9069_v34 = vld [vmem:[#allocation61_spill] sm:$0xff] }
 0x24d   : > { %5207 = vmatmul.mubr.msk.f32.gmra.mrb[168].mxu0 %vm9050_vm8, %v9048_v42  ;;  %v2292_v9 = vpop.f32.mrb[4].mxu1  ;;  %v9055_v42 = vld [vmem:[#allocation49_spill] sm:$0xff] }
 0x24e   : > { %5209 = vmatprep.mubr.f32.mxu0 %v9051_v56  ;;  %v7804_v46 = vadd.f32 %v7648_v2, %v2292_v9  ;;  %v2294_v59 = vpop.f32.mrb[5].mxu1 }
 0x24f   : > { %2846 = vmatmul.mubr.f32.gmra.mrb[110].mxu1 %v9002_v21  ;;  %v7808_v43 = vpop.f32.mrb[64].mxu0  ;;  %v9056_v59 = vld [vmem:[#allocation53_spill] sm:$0xff] }
 0x250   : > { %2850 = vmatprep.mubr.f32.mxu1 %v8962_v60  ;;  %v7813_v40 = vpop.f32.mrb[65].mxu0  ;;  %v9061_v60 = vld [vmem:[#allocation56_spill] sm:$0xff] }
 0x251   : > { %5210 = vmatmul.mubr.msk.f32.gmra.mrb[170].mxu0 %vm9054_vm0, %v9052_v17  ;;  %v2297_v25 = vpop.f32.mrb[6].mxu1  ;;  %v9057_v17 = vld [vmem:[#allocation50_spill] sm:$0xff]  ;;  %vm9062_vm12 = vnez %v9061_v60 }
 0x252   : > { %5212 = vmatprep.mubr.f32.mxu0 %v9055_v42  ;;  %v7817_v56 = vadd.f32 %v7643_v14, %v2297_v25  ;;  %v2299_v2 = vpop.f32.mrb[7].mxu1  ;;  %vm9058_vm10 = vnez %v9057_v17 }
 0x253   : > { %4547 = vmatmul.mubr.msk.f32.gmra.mrb[112].mxu1 %vm7410_vm9, %v7424_v0  ;;  %v7822_v21 = vpop.f32.mrb[66].mxu0  ;;  %v9060_v2 = vld [vmem:[#allocation59_spill] sm:$0xff] }
 0x254   : > { %2855 = vmatprep.mubr.f32.mxu1 %v9006_v8  ;;  %v7825_v9 = vpop.f32.mrb[67].mxu0  ;;  %v9068_v8 = vld [vmem:[#allocation64_spill] sm:$0xff] }
 0x255   : > { %5213 = vmatmul.mubr.msk.f32.gmra.mrb[172].mxu0 %vm9058_vm10, %v9056_v59  ;;  %v2302_v42 = vpop.f32.mrb[8].mxu1 }
 0x256   : > { %5215 = vmatprep.mubr.f32.mxu0 %v9059_v58  ;;  %v7832_v14 = vadd.f32 %v7658_v63, %v2302_v42  ;;  %v2304_v25 = vpop.f32.mrb[9].mxu1 }
 0x257   : > { %2856 = vmatmul.mubr.f32.gmra.mrb[114].mxu1 %v9009_v10  ;;  %v7835_v13 = vpop.f32.mrb[68].mxu0 }
 0x258   : > { %2860 = vmatprep.mubr.f32.mxu1 %v8969_v55  ;;  %v7838_v0 = vpop.f32.mrb[69].mxu0 }
 0x259   : > { %5216 = vmatmul.mubr.msk.f32.gmra.mrb[174].mxu0 %vm9062_vm12, %v9060_v2  ;;  %v2307_v59 = vpop.f32.mrb[10].mxu1 }
 0x25a   : > { %v7844_v17 = vadd.f32 %v7655_v24, %v2307_v59  ;;  %v2309_v58 = vpop.f32.mrb[11].mxu1 }
 0x25b   : > { %4549 = vmatmul.mubr.msk.f32.gmra.mrb[116].mxu1 %vm7458_vm6, %v7472_v57  ;;  %v7849_v63 = vpop.f32.mrb[70].mxu0  ;;  %v9063_v57 = vld [vmem:[#allocation13_spill] sm:$0xff]  ;;  %vm9075_vm6 = vnez %v9074_v44 }
 0x25c   : > { %2865 = vmatprep.mubr.f32.mxu1 %v8974_v51  ;;  %v7852_v10 = vpop.f32.mrb[71].mxu0 }
 0x25d   : > { %v2312_v42 = vpop.f32.mrb[12].mxu1 }
 0x25e   : > { %v7855_v25 = vadd.f32 %v7668_v49, %v2312_v42  ;;  %v2314_v60 = vpop.f32.mrb[13].mxu1  ;;  %v9064_v42 = vld [vmem:[#allocation73_spill] sm:$0xff] }
 0x25f   : > { %2866 = vmatmul.mubr.f32.gmra.mrb[118].mxu1 %v7489_v23  ;;  %v7858_v24 = vpop.f32.mrb[72].mxu0 }
 0x260   : > { %2870 = vmatprep.mubr.f32.mxu1 %v8975_v27  ;;  %v7861_v2 = vpop.f32.mrb[73].mxu0 }
 0x261   : > { %v2317_v32 = vpop.f32.mrb[14].mxu1 }
 0x262   : > { %v7864_v59 = vadd.f32 %v9063_v57, %v2317_v32  ;;  %v2319_v58 = vpop.f32.mrb[15].mxu1 }
 0x263   : > { %4551 = vmatmul.mubr.msk.f32.gmra.mrb[120].mxu1 %vm7498_vm5, %v7506_v52  ;;  %v7869_v49 = vpop.f32.mrb[74].mxu0  ;;  %vm9070_vm5 = vnez %v9069_v34  ;;  %v3814_v34 = vld [vmem:[%s8529_s7] sm:$0xff] }
 0x264   : > { %2875 = vmatprep.mubr.f32.mxu1 %v9064_v42  ;;  %v7872_v23 = vpop.f32.mrb[75].mxu0 }
 0x265   : > { %v2322_v60 = vpop.f32.mrb[16].mxu1 }
 0x266   : > { %v7875_v27 = vadd.f32 %v7678_v30, %v2322_v60  ;;  %v2324_v55 = vpop.f32.mrb[17].mxu1  ;;  %v9065_v60 = vld [vmem:[#allocation33_spill] sm:$0xff] }
 0x267   : > { %2876 = vmatmul.mubr.f32.gmra.mrb[122].mxu1 %v7520_v19  ;;  %v7878_v32 = vpop.f32.mrb[76].mxu0 }
 0x268   : > { %2880 = vmatprep.mubr.f32.mxu1 %v8982_v35  ;;  %v7881_v57 = vpop.f32.mrb[77].mxu0 }
 0x269   : > { %v2327_v54 = vpop.f32.mrb[18].mxu1 }
 0x26a   : > { %v7884_v52 = vadd.f32 %v7675_v6, %v2327_v54  ;;  %v2329_v58 = vpop.f32.mrb[19].mxu1  ;;  %v9066_v54 = vld [vmem:[#allocation60_spill] sm:$0xff] }
 0x26b   : > { %4553 = vmatmul.mubr.msk.f32.gmra.mrb[124].mxu1 %vm7527_vm11, %v7535_v16  ;;  %v7889_v30 = vpop.f32.mrb[78].mxu0  ;;  %v9067_v16 = vld [vmem:[#allocation22_spill] sm:$0xff] }
 0x26c   : > { %2885 = vmatprep.mubr.f32.mxu1 %v8988_v62  ;;  %v7892_v55 = vpop.f32.mrb[79].mxu0 }
 0x26d   : > { %v2332_v19 = vpop.f32.mrb[20].mxu1 }
 0x26e   : > { %v7895_v35 = vadd.f32 %v9065_v60, %v2332_v19  ;;  %v2334_v42 = vpop.f32.mrb[21].mxu1 }
 0x26f   : > { %2886 = vmatmul.mubr.f32.gmra.mrb[126].mxu1 %v7548_v26  ;;  %v7898_v6 = vpop.f32.mrb[80].mxu0  ;;  %v9072_v42 = vld [vmem:[#allocation65_spill] sm:$0xff] }
 0x270   : > { %5218 = vmatprep.mubr.f32.mxu1 %v9066_v54  ;;  %v7901_v58 = vpop.f32.mrb[81].mxu0 }
 0x271   : > { %v2337_v20 = vpop.f32.mrb[22].mxu1 }
 0x272   : > { %v7904_v51 = vadd.f32 %v9067_v16, %v2337_v20  ;;  %v2339_v62 = vpop.f32.mrb[23].mxu1  ;;  %v9077_v20 = vld [vmem:[#allocation71_spill] sm:$0xff] }
 0x273   : > { %5219 = vmatmul.mubr.msk.f32.vlgmr.msra.gmra.mrb[128].mxu1 %vm9070_vm5, %v9068_v8  ;;  %v7909_v19 = vpop.f32.mrb[82].mxu0  ;;  %v3815_v8 = vld [vmem:[%s8529_s7 + $0x8] sm:$0xff] }
 0x274   : > { %9071 = vst [vmem:[#allocation44_spill] sm:$0xff] %v7909_v19  ;;  %5221 = vmatprep.mubr.f32.mxu1 %v9072_v42  ;;  %v7912_v26 = vpop.f32.mrb[83].mxu0 }
 0x275   : > { %v2342_v60 = vpop.f32.mrb[24].mxu1 }
 0x276   : > { %v7915_v54 = vadd.f32 %v7698_v4, %v2342_v60  ;;  %v2344_v48 = vpop.f32.mrb[25].mxu1  ;;  %v5562_v4 = vpack.c.bf16 %v3815_v8, %v3814_v34  ;;  %v9080_v60 = vld [vmem:[#allocation72_spill] sm:$0xff] }
 0x277   : > { %5222 = vmatmul.mubr.msk.f32.gmra.mrb[130].mxu1 %vm9075_vm6, %v9073_v3  ;;  %v7920_v62 = vpop.f32.mrb[84].mxu0  ;;  %v9079_v3 = vld [vmem:[#allocation75_spill] sm:$0xff]  ;;  %vm9081_vm9 = vnez %v9080_v60  ;;  %v9085_v60 = vld [vmem:[#allocation81_spill] sm:$0xff] }
 0x278   : > { %9076 = vst [vmem:[#allocation55_spill] sm:$0xff] %v7920_v62  ;;  %5224 = vmatprep.mubr.f32.mxu1 %v9077_v20  ;;  %v7929_v16 = vpop.f32.mrb[85].mxu0  ;;  %5563 = vmatprep.subr.bf16.mxu1 %v5562_v4  ;;  %v9083_v62 = vld [vmem:[#allocation76_spill] sm:$0xff] }
 0x279   : > { %9078 = vst [vmem:[#allocation66_spill] sm:$0xff] %v7929_v16  ;;  %v2347_v48 = vpop.f32.mrb[26].mxu1  ;;  %5565 = vmatpush3.bf16.msra.mxu1 %v5562_v4  ;;  %v3816_v16 = vld [vmem:[%s8529_s7 + $0x10] sm:$0xff]  ;;  %v9089_v4 = vld [vmem:[#allocation82_spill] sm:$0xff] }
 0x27a   : > { %v7932_v42 = vadd.f32 %v7695_v28, %v2347_v48  ;;  %v2349_v44 = vpop.f32.mrb[27].mxu1  ;;  %v3817_v28 = vld [vmem:[%s8529_s7 + $0x18] sm:$0xff] }
 0x27b   : > { %5225 = vmatmul.mubr.msk.f32.gmra.mrb[132].mxu1 %vm9081_vm9, %v9079_v3  ;;  %v7937_v20 = vpop.f32.mrb[86].mxu0  ;;  %v5566_v8 = vpack.c.bf16 %v3817_v28, %v3816_v16 }
 0x27c   : > { %9082 = vst [vmem:[#allocation77_spill] sm:$0xff] %v7937_v20  ;;  %5227 = vmatprep.mubr.f32.mxu1 %v9083_v62  ;;  %v7946_v34 = vpop.f32.mrb[87].mxu0  ;;  %v9086_v20 = vld [vmem:[#allocation78_spill] sm:$0xff] }
 0x27d   : > { %9084 = vst [vmem:[#allocation92_spill] sm:$0xff] %v7946_v34  ;;  %v2352_v48 = vpop.f32.mrb[28].mxu1  ;;  %vm9087_vm11 = vnez %v9086_v20  ;;  %5567 = vmatprep.subr.bf16.mxu1 %v5566_v8  ;;  %v3818_v34 = vld [vmem:[%s8529_s7 + $0x20] sm:$0xff] }
 0x27e   : > { %v7949_v44 = vadd.f32 %v7708_v15, %v2352_v48  ;;  %v2354_v3 = vpop.f32.mrb[29].mxu1  ;;  %5569 = vmatpush3.bf16.msra.mxu1 %v5566_v8  ;;  %v3819_v15 = vld [vmem:[%s8529_s7 + $0x28] sm:$0xff] }
 0x27f   : > { %5228 = vmatmul.mubr.msk.f32.gmra.mrb[134].mxu1 %vm9087_vm11, %v9085_v60  ;;  %v7954_v62 = vpop.f32.mrb[88].mxu0  ;;  %v5570_v28 = vpack.c.bf16 %v3819_v15, %v3818_v34  ;;  %v9091_v60 = vld [vmem:[#allocation86_spill] sm:$0xff] }
 0x280   : > { %9088 = vst [vmem:[#allocation94_spill] sm:$0xff] %v7954_v62  ;;  %5230 = vmatprep.mubr.f32.mxu1 %v9089_v4  ;;  %v7963_v16 = vpop.f32.mrb[89].mxu0  ;;  %v9092_v62 = vld [vmem:[#allocation83_spill] sm:$0xff] }
 0x281   : > { %9090 = vst [vmem:[#allocation7_spill] sm:$0xff] %v7963_v16  ;;  %v2357_v48 = vpop.f32.mrb[30].mxu1  ;;  %vm9093_vm4 = vnez %v9092_v62  ;;  %5571 = vmatprep.subr.bf16.mxu1 %v5570_v28  ;;  %v9095_v4 = vld [vmem:[#allocation87_spill] sm:$0xff]  ;;  %v3820_v16 = vld [vmem:[%s8529_s7 + $0x30] sm:$0xff] }
 0x282   : > { %v7966_v20 = vadd.f32 %v7703_v50, %v2357_v48  ;;  %v2359_v3 = vpop.f32.mrb[31].mxu1  ;;  %5573 = vmatpush3.bf16.msra.mxu1 %v5570_v28  ;;  %v3821_v50 = vld [vmem:[%s8529_s7 + $0x38] sm:$0xff] }
 0x283   : > { %5231 = vmatmul.mubr.msk.f32.gmra.mrb[136].mxu1 %vm9093_vm4, %v9091_v60  ;;  %v7971_v8 = vpop.f32.mrb[90].mxu0  ;;  %v5574_v15 = vpack.c.bf16 %v3821_v50, %v3820_v16  ;;  %v9097_v60 = vld [vmem:[#allocation90_spill] sm:$0xff] }
 0x284   : > { %9094 = vst [vmem:[#allocation96_spill] sm:$0xff] %v7971_v8  ;;  %5233 = vmatprep.mubr.f32.mxu1 %v9095_v4  ;;  %v7980_v34 = vpop.f32.mrb[91].mxu0  ;;  %v9098_v8 = vld [vmem:[#allocation88_spill] sm:$0xff]  ;;  %v9101_v4 = vld [vmem:[#allocation91_spill] sm:$0xff] }
 0x285   : > { %9096 = vst [vmem:[#allocation95_spill] sm:$0xff] %v7980_v34  ;;  %v2362_v48 = vpop.f32.mrb[32].mxu1  ;;  %vm9099_vm13 = vnez %v9098_v8  ;;  %5575 = vmatprep.subr.bf16.mxu1 %v5574_v15  ;;  %v3822_v34 = vld [vmem:[%s8529_s7 + $0x40] sm:$0xff] }
 0x286   : > { %v7983_v62 = vadd.f32 %v7718_v47, %v2362_v48  ;;  %v2364_v3 = vpop.f32.mrb[33].mxu1  ;;  %5577 = vmatpush3.bf16.msra.mxu1 %v5574_v15  ;;  %v3823_v47 = vld [vmem:[%s8529_s7 + $0x48] sm:$0xff] }
 0x287   : > { %5234 = vmatmul.mubr.msk.f32.gmra.mrb[138].mxu1 %vm9099_vm13, %v9097_v60  ;;  %v7988_v28 = vpop.f32.mrb[92].mxu0  ;;  %v5578_v50 = vpack.c.bf16 %v3823_v47, %v3822_v34  ;;  %v9103_v60 = vld [vmem:[#allocation89_spill] sm:$0xff] }
 0x288   : > { %9100 = vst [vmem:[#allocation97_spill] sm:$0xff] %v7988_v28  ;;  %5236 = vmatprep.mubr.f32.mxu1 %v9101_v4  ;;  %v7997_v16 = vpop.f32.mrb[93].mxu0  ;;  %v9104_v28 = vld [vmem:[#allocation93_spill] sm:$0xff]  ;;  %v3824_v4 = vld [vmem:[%s8529_s7 + $0x50] sm:$0xff] }
 0x289   : > { %9102 = vst [vmem:[#allocation8_spill] sm:$0xff] %v7997_v16  ;;  %v2367_v48 = vpop.f32.mrb[34].mxu1  ;;  %vm9105_vm1 = vnez %v9104_v28  ;;  %5579 = vmatprep.subr.bf16.mxu1 %v5578_v50 }
 0x28a   : > { %v8000_v8 = vadd.f32 %v7715_v31, %v2367_v48  ;;  %v2369_v3 = vpop.f32.mrb[35].mxu1  ;;  %5581 = vmatpush3.bf16.msra.mxu1 %v5578_v50  ;;  %v3825_v31 = vld [vmem:[%s8529_s7 + $0x58] sm:$0xff] }
 0x28b   : > { %5237 = vmatmul.mubr.msk.f32.gmra.mrb[140].mxu1 %vm9105_vm1, %v9103_v60  ;;  %v8005_v15 = vpop.f32.mrb[94].mxu0  ;;  %v5582_v47 = vpack.c.bf16 %v3825_v31, %v3824_v4  ;;  %v3826_v60 = vld [vmem:[%s8529_s7 + $0x60] sm:$0xff] }
 0x28c   : > { %9106 = vst [vmem:[#allocation99_spill] sm:$0xff] %v8005_v15  ;;  %5239 = vmatprep.mubr.f32.mxu1 %v8996_v61  ;;  %v8014_v34 = vpop.f32.mrb[95].mxu0  ;;  %v3827_v15 = vld [vmem:[%s8529_s7 + $0x68] sm:$0xff] }
 0x28d   : > { %9107 = vst [vmem:[#allocation98_spill] sm:$0xff] %v8014_v34  ;;  %v2372_v48 = vpop.f32.mrb[36].mxu1  ;;  %5583 = vmatprep.subr.bf16.mxu1 %v5582_v47  ;;  %v5586_v31 = vpack.c.bf16 %v3827_v15, %v3826_v60 }
 0x28e   : > { %v8017_v28 = vadd.f32 %v7728_v11, %v2372_v48  ;;  %v2374_v3 = vpop.f32.mrb[37].mxu1  ;;  %5585 = vmatpush3.bf16.msra.mxu1 %v5582_v47  ;;  %v3828_v47 = vld [vmem:[%s8529_s7 + $0x70] sm:$0xff] }
 0x28f   : > { %5240 = vmatmul.mubr.f32.gmra.mrb[142].mxu1 %v8996_v61  ;;  %5587 = vmatprep.subr.bf16.mxu1 %v5586_v31  ;;  %v3829_v3 = vld [vmem:[%s8529_s7 + $0x78] sm:$0xff] }
 0x290   : > { %v8020_v50 = vpop.f32.mrb[96].mxu0 }
 0x291   : > { %9108 = vst [vmem:[#allocation100_spill] sm:$0xff] %v8020_v50  ;;  %v3329_v4 = vpop.f32.mrb[97].mxu0 }
 0x292   : > { %v2377_v34 = vpop.f32.mrb[38].mxu1  ;;  %5589 = vmatpush3.bf16.msra.mxu1 %v5586_v31  ;;  %v5590_v4 = vpack.c.bf16 %v3829_v3, %v3828_v47 }
 0x293   : > { %v8029_v11 = vadd.f32 %v7723_v1, %v2377_v34  ;;  %v2379_v48 = vpop.f32.mrb[39].mxu1 }
 0x294   : > { %v8031_v61 = vpop.f32.mrb[98].mxu0  ;;  %5591 = vmatprep.subr.bf16.mxu1 %v5590_v4 }
 0x295   : > { %9109 = vst [vmem:[#allocation102_spill] sm:$0xff] %v8029_v11  ;;  %9110 = vst [vmem:[#allocation101_spill] sm:$0xff] %v8031_v61  ;;  %v3334_v16 = vpop.f32.mrb[99].mxu0 }
 0x296   : > { %v2382_v15 = vpop.f32.mrb[40].mxu1  ;;  %5593 = vmatpush3.bf16.msra.mxu1 %v5590_v4 }
 0x297   : > { %v8040_v60 = vadd.f32 %v7736_v33, %v2382_v15  ;;  %v2384_v1 = vpop.f32.mrb[41].mxu1 }
 0x298   : > { %v8042_v34 = vpop.f32.mrb[100].mxu0 }
 0x299   : > { %9111 = vst [vmem:[#allocation103_spill] sm:$0xff] %v8040_v60  ;;  %v3339_v31 = vpop.f32.mrb[101].mxu0 }
 0x29a   : > { %v2387_v48 = vpop.f32.mrb[42].mxu1 }
 0x29b   : > { %v8045_v19 = vadd.f32 %v7733_v38, %v2387_v48  ;;  %v2389_v11 = vpop.f32.mrb[43].mxu1 }
 0x29c   : > { %v8047_v50 = vpop.f32.mrb[102].mxu0 }
 0x29d   : > { %9112 = vst [vmem:[#allocation104_spill] sm:$0xff] %v8045_v19  ;;  %v3344_v61 = vpop.f32.mrb[103].mxu0 }
 0x29e   : > { %v2392_v16 = vpop.f32.mrb[44].mxu1 }
 0x29f   : > { %v8050_v47 = vadd.f32 %v7746_v12, %v2392_v16  ;;  %v2394_v33 = vpop.f32.mrb[45].mxu1 }
 0x2a0   : > { %v8052_v3 = vpop.f32.mrb[104].mxu0 }
 0x2a1   : > { %9113 = vst [vmem:[#allocation6_spill] sm:$0xff] %v8050_v47  ;;  %v3349_v15 = vpop.f32.mrb[105].mxu0 }
 0x2a2   : > { %v2397_v1 = vpop.f32.mrb[46].mxu1 }
 0x2a3   : > { %v8055_v4 = vadd.f32 %v7741_v18, %v2397_v1  ;;  %v2399_v31 = vpop.f32.mrb[47].mxu1 }
 0x2a4   : > { %v8057_v60 = vpop.f32.mrb[106].mxu0 }
 0x2a5   : > { %9114 = vst [vmem:[#allocation16_spill] sm:$0xff] %v8055_v4  ;;  %v3354_v38 = vpop.f32.mrb[107].mxu0 }
 0x2a6   : > { %v2402_v11 = vpop.f32.mrb[48].mxu1 }
 0x2a7   : > { %v8060_v48 = vadd.f32 %v7756_v53, %v2402_v11  ;;  %v2404_v61 = vpop.f32.mrb[49].mxu1 }
 0x2a8   : > { %v8062_v19 = vpop.f32.mrb[108].mxu0 }
 0x2a9   : > { %9115 = vst [vmem:[#allocation20_spill] sm:$0xff] %v8060_v48  ;;  %v3359_v12 = vpop.f32.mrb[109].mxu0 }
 0x2aa   : > { %v2407_v16 = vpop.f32.mrb[50].mxu1 }
 0x2ab   : > { %v8065_v33 = vadd.f32 %v7753_v22, %v2407_v16  ;;  %v2409_v15 = vpop.f32.mrb[51].mxu1 }
 0x2ac   : > { %v8067_v47 = vpop.f32.mrb[110].mxu0 }
 0x2ad   : > { %9116 = vst [vmem:[#allocation17_spill] sm:$0xff] %v8065_v33  ;;  %v3364_v18 = vpop.f32.mrb[111].mxu0 }
 0x2ae   : > { %v2412_v1 = vpop.f32.mrb[52].mxu1 }
 0x2af   : > { %v8070_v31 = vadd.f32 %v7768_v41, %v2412_v1  ;;  %v2414_v38 = vpop.f32.mrb[53].mxu1 }
 0x2b0   : > { %v8072_v4 = vpop.f32.mrb[112].mxu0 }
 0x2b1   : > { %9117 = vst [vmem:[#allocation21_spill] sm:$0xff] %v8070_v31  ;;  %v3369_v53 = vpop.f32.mrb[113].mxu0 }
 0x2b2   : > { %v2417_v11 = vpop.f32.mrb[54].mxu1 }
 0x2b3   : > { %v8075_v61 = vadd.f32 %v7763_v5, %v2417_v11  ;;  %v2419_v12 = vpop.f32.mrb[55].mxu1 }
 0x2b4   : > { %v8077_v48 = vpop.f32.mrb[114].mxu0 }
 0x2b5   : > { %9118 = vst [vmem:[#allocation26_spill] sm:$0xff] %v8075_v61  ;;  %v3374_v22 = vpop.f32.mrb[115].mxu0 }
 0x2b6   : > { %v2422_v16 = vpop.f32.mrb[56].mxu1 }
 0x2b7   : > { %v8080_v15 = vadd.f32 %v7782_v39, %v2422_v16  ;;  %v2424_v18 = vpop.f32.mrb[57].mxu1 }
 0x2b8   : > { %v8082_v33 = vpop.f32.mrb[116].mxu0 }
 0x2b9   : > { %9119 = vst [vmem:[#allocation23_spill] sm:$0xff] %v8080_v15  ;;  %v3379_v41 = vpop.f32.mrb[117].mxu0 }
 0x2ba   : > { %v2427_v1 = vpop.f32.mrb[58].mxu1 }
 0x2bb   : > { %v8085_v38 = vadd.f32 %v7779_v37, %v2427_v1  ;;  %v2429_v53 = vpop.f32.mrb[59].mxu1 }
 0x2bc   : > { %v8087_v31 = vpop.f32.mrb[118].mxu0 }
 0x2bd   : > { %9120 = vst [vmem:[#allocation27_spill] sm:$0xff] %v8085_v38  ;;  %v3384_v5 = vpop.f32.mrb[119].mxu0 }
 0x2be   : > { %v2432_v11 = vpop.f32.mrb[60].mxu1 }
 0x2bf   : > { %v8090_v12 = vadd.f32 %v7797_v29, %v2432_v11  ;;  %v2434_v22 = vpop.f32.mrb[61].mxu1 }
 0x2c0   : > { %v8092_v61 = vpop.f32.mrb[120].mxu0 }
 0x2c1   : > { %9121 = vst [vmem:[#allocation31_spill] sm:$0xff] %v8090_v12  ;;  %v3389_v39 = vpop.f32.mrb[121].mxu0 }
 0x2c2   : > { %v2437_v16 = vpop.f32.mrb[62].mxu1 }
 0x2c3   : > { %v8095_v18 = vadd.f32 %v7794_v36, %v2437_v16  ;;  %v2439_v41 = vpop.f32.mrb[63].mxu1 }
 0x2c4   : > { %v8097_v15 = vpop.f32.mrb[122].mxu0 }
 0x2c5   : > { %v3394_v37 = vpop.f32.mrb[123].mxu0 }
 0x2c6   : > { %v2732_v1 = vpop.f32.mrb[64].mxu1 }
 0x2c7   : > { %v2733_v53 = vadd.f32 %v2732_v1, %v7776_v7  ;;  %v2734_v5 = vpop.f32.mrb[65].mxu1 }
 0x2c8   : > { %v8100_v38 = vpop.f32.mrb[124].mxu0 }
 0x2c9   : > { %v8103_v29 = vadd.f32 %v7813_v40, %v2733_v53  ;;  %v3399_v11 = vpop.f32.mrb[125].mxu0 }
 0x2ca   : > { %v2737_v22 = vpop.f32.mrb[66].mxu1 }
 0x2cb   : > { %v2738_v39 = vadd.f32 %v2737_v22, %v7789_v45  ;;  %v2739_v12 = vpop.f32.mrb[67].mxu1 }
 0x2cc   : > { %v8106_v36 = vpop.f32.mrb[126].mxu0 }
 0x2cd   : > { %v8109_v16 = vadd.f32 %v7808_v43, %v2738_v39  ;;  %v3404_v41 = vpop.f32.mrb[127].mxu0 }
 0x2ce   : > { %v2742_v37 = vpop.f32.mrb[68].mxu1 }
 0x2cf   : > { %v2743_v7 = vadd.f32 %v2742_v37, %v7804_v46  ;;  %v2744_v1 = vpop.f32.mrb[69].mxu1 }
 0x2d0   : > { %v8112_v5 = vpop.f32.mrb[128].mxu0 }
 0x2d1   : > { %v8115_v40 = vadd.f32 %v7825_v9, %v2743_v7  ;;  %v3409_v53 = vpop.f32.mrb[129].mxu0 }
 0x2d2   : > { %v2747_v11 = vpop.f32.mrb[70].mxu1 }
 0x2d3   : > { %v2748_v45 = vadd.f32 %v2747_v11, %v7817_v56  ;;  %v2749_v12 = vpop.f32.mrb[71].mxu1 }
 0x2d4   : > { %v8118_v22 = vpop.f32.mrb[130].mxu0 }
 0x2d5   : > { %v8121_v43 = vadd.f32 %v7822_v21, %v2748_v45  ;;  %v3414_v39 = vpop.f32.mrb[131].mxu0 }
 0x2d6   : > { %v2752_v41 = vpop.f32.mrb[72].mxu1 }
 0x2d7   : > { %v2753_v46 = vadd.f32 %v2752_v41, %v7832_v14  ;;  %v2754_v37 = vpop.f32.mrb[73].mxu1 }
 0x2d8   : > { %v8124_v1 = vpop.f32.mrb[132].mxu0 }
 0x2d9   : > { %v8127_v9 = vadd.f32 %v7838_v0, %v2753_v46  ;;  %v3419_v7 = vpop.f32.mrb[133].mxu0 }
 0x2da   : > { %v2757_v53 = vpop.f32.mrb[74].mxu1 }
 0x2db   : > { %v2758_v56 = vadd.f32 %v2757_v53, %v7844_v17  ;;  %v2759_v11 = vpop.f32.mrb[75].mxu1 }
 0x2dc   : > { %v8130_v12 = vpop.f32.mrb[134].mxu0 }
 0x2dd   : > { %v8133_v21 = vadd.f32 %v7835_v13, %v2758_v56  ;;  %v3424_v45 = vpop.f32.mrb[135].mxu0 }
 0x2de   : > { %v2762_v39 = vpop.f32.mrb[76].mxu1 }
 0x2df   : > { %v2763_v14 = vadd.f32 %v2762_v39, %v7855_v25  ;;  %v2764_v41 = vpop.f32.mrb[77].mxu1 }
 0x2e0   : > { %v8136_v37 = vpop.f32.mrb[136].mxu0 }
 0x2e1   : > { %v8139_v0 = vadd.f32 %v7852_v10, %v2763_v14  ;;  %v3429_v46 = vpop.f32.mrb[137].mxu0 }
 0x2e2   : > { %v2767_v7 = vpop.f32.mrb[78].mxu1 }
 0x2e3   : > { %v2768_v17 = vadd.f32 %v2767_v7, %v7864_v59  ;;  %v2769_v53 = vpop.f32.mrb[79].mxu1 }
 0x2e4   : > { %v8142_v11 = vpop.f32.mrb[138].mxu0 }
 0x2e5   : > { %v8145_v13 = vadd.f32 %v7849_v63, %v2768_v17  ;;  %v3434_v56 = vpop.f32.mrb[139].mxu0 }
 0x2e6   : > { %v2772_v45 = vpop.f32.mrb[80].mxu1 }
 0x2e7   : > { %v2773_v25 = vadd.f32 %v2772_v45, %v7875_v27  ;;  %v2774_v39 = vpop.f32.mrb[81].mxu1 }
 0x2e8   : > { %v8148_v41 = vpop.f32.mrb[140].mxu0 }
 0x2e9   : > { %v8151_v10 = vadd.f32 %v7861_v2, %v2773_v25  ;;  %v3439_v14 = vpop.f32.mrb[141].mxu0 }
 0x2ea   : > { %v2777_v46 = vpop.f32.mrb[82].mxu1 }
 0x2eb   : > { %v2778_v59 = vadd.f32 %v2777_v46, %v7884_v52  ;;  %v2779_v7 = vpop.f32.mrb[83].mxu1 }
 0x2ec   : > { %v8154_v53 = vpop.f32.mrb[142].mxu0 }
 0x2ed   : > { %v8157_v63 = vadd.f32 %v7858_v24, %v2778_v59  ;;  %v3444_v17 = vpop.f32.mrb[143].mxu0 }
 0x2ee   : > { %v2782_v56 = vpop.f32.mrb[84].mxu1 }
 0x2ef   : > { %v2783_v27 = vadd.f32 %v2782_v56, %v7895_v35  ;;  %v2784_v45 = vpop.f32.mrb[85].mxu1 }
 0x2f0   : > { %v8160_v39 = vpop.f32.mrb[144].mxu0 }
 0x2f1   : > { %v8163_v2 = vadd.f32 %v7872_v23, %v2783_v27  ;;  %v3449_v25 = vpop.f32.mrb[145].mxu0 }
 0x2f2   : > { %v2787_v14 = vpop.f32.mrb[86].mxu1 }
 0x2f3   : > { %v2788_v52 = vadd.f32 %v2787_v14, %v7904_v51  ;;  %v2789_v46 = vpop.f32.mrb[87].mxu1 }
 0x2f4   : > { %v8166_v7 = vpop.f32.mrb[146].mxu0 }
 0x2f5   : > { %v8169_v24 = vadd.f32 %v7869_v49, %v2788_v52  ;;  %v3454_v59 = vpop.f32.mrb[147].mxu0 }
 0x2f6   : > { %v2792_v17 = vpop.f32.mrb[88].mxu1 }
 0x2f7   : > { %v2793_v35 = vadd.f32 %v2792_v17, %v7915_v54  ;;  %v2794_v56 = vpop.f32.mrb[89].mxu1 }
 0x2f8   : > { %v8172_v45 = vpop.f32.mrb[148].mxu0 }
 0x2f9   : > { %v8175_v23 = vadd.f32 %v7881_v57, %v2793_v35  ;;  %v3459_v27 = vpop.f32.mrb[149].mxu0 }
 0x2fa   : > { %v2797_v25 = vpop.f32.mrb[90].mxu1 }
 0x2fb   : > { %v2798_v51 = vadd.f32 %v2797_v25, %v7932_v42  ;;  %v2799_v14 = vpop.f32.mrb[91].mxu1 }
 0x2fc   : > { %v8178_v46 = vpop.f32.mrb[150].mxu0 }
 0x2fd   : > { %v8181_v49 = vadd.f32 %v7878_v32, %v2798_v51  ;;  %v3464_v52 = vpop.f32.mrb[151].mxu0 }
 0x2fe   : > { %v2802_v59 = vpop.f32.mrb[92].mxu1 }
 0x2ff   : > { %v2803_v54 = vadd.f32 %v2802_v59, %v7949_v44  ;;  %v2804_v17 = vpop.f32.mrb[93].mxu1 }
 0x300   : > { %v8184_v56 = vpop.f32.mrb[152].mxu0 }
 0x301   : > { %9122 = vst [vmem:[#allocation28_spill] sm:$0xff] %v8184_v56  ;;  %v8187_v57 = vadd.f32 %v7892_v55, %v2803_v54  ;;  %v3469_v35 = vpop.f32.mrb[153].mxu0 }
 0x302   : > { %v2807_v27 = vpop.f32.mrb[94].mxu1 }
 0x303   : > { %v2808_v42 = vadd.f32 %v2807_v27, %v7966_v20  ;;  %v2809_v25 = vpop.f32.mrb[95].mxu1 }
 0x304   : > { %v8190_v14 = vpop.f32.mrb[154].mxu0 }
 0x305   : > { %9123 = vst [vmem:[#allocation32_spill] sm:$0xff] %v8190_v14  ;;  %v8193_v32 = vadd.f32 %v7889_v30, %v2808_v42  ;;  %v3474_v51 = vpop.f32.mrb[155].mxu0 }
 0x306   : > { %v2812_v52 = vpop.f32.mrb[96].mxu1 }
 0x307   : > { %v2813_v44 = vadd.f32 %v2812_v52, %v7983_v62  ;;  %v2814_v59 = vpop.f32.mrb[97].mxu1 }
 0x308   : > { %v8196_v17 = vpop.f32.mrb[156].mxu0 }
 0x309   : > { %9124 = vst [vmem:[#allocation37_spill] sm:$0xff] %v8196_v17  ;;  %v8199_v55 = vadd.f32 %v7901_v58, %v2813_v44  ;;  %v3479_v54 = vpop.f32.mrb[157].mxu0  ;;  %v9126_v58 = vld [vmem:[#allocation101_spill] sm:$0xff] }
 0x30a   : > { %v2817_v35 = vpop.f32.mrb[98].mxu1 }
 0x30b   : > { %v2818_v20 = vadd.f32 %v2817_v35, %v8000_v8  ;;  %v2819_v27 = vpop.f32.mrb[99].mxu1  ;;  %v8215_v8 = vld [vmem:[%s8528_s6] ss:$0 sm:$0xff]  ;;  %v9127_v35 = vld [vmem:[#allocation100_spill] sm:$0xff] }
 0x30c   : > { %v8202_v25 = vpop.f32.mrb[158].mxu0 }
 0x30d   : > { %9125 = vst [vmem:[#allocation34_spill] sm:$0xff] %v8202_v25  ;;  %v8205_v30 = vadd.f32 %v7898_v6, %v2818_v20  ;;  %v3484_v42 = vpop.f32.mrb[159].mxu0 }
 0x30e   : > { %v2822_v51 = vpop.f32.mrb[100].mxu1  ;;  %v9128_v42 = vld [vmem:[#allocation102_spill] sm:$0xff] }
 0x30f   : > { %v2823_v62 = vadd.f32 %v2822_v51, %v8017_v28  ;;  %v2824_v52 = vpop.f32.mrb[101].mxu1 }
 0x310   : > { %v5196_v59 = vpop.f32.mrb[160].mxu0 }
 0x311   : > { %v8209_v17 = vadd.f32 %v7912_v26, %v2823_v62  ;;  %v3558_v44 = vadd.f32 %v5196_v59, %v9126_v58  ;;  %v3552_v54 = vpop.f32.mrb[161].mxu0  ;;  %v9129_v59 = vld [vmem:[#allocation44_spill] sm:$0xff] }
 0x312   : > { %v3553_v6 = vadd.f32 %v3552_v54, %v9127_v35  ;;  %v2827_v20 = vpop.f32.mrb[102].mxu1 }
 0x313   : > { %v3712_v27 = vadd.f32 %v3558_v44, %v8109_v16  ;;  %v2828_v28 = vadd.f32 %v2827_v20, %v9128_v42  ;;  %v2829_v51 = vpop.f32.mrb[103].mxu1  ;;  %v9130_v44 = vld [vmem:[#allocation103_spill] sm:$0xff] }
 0x314   : > { %v3711_v52 = vadd.f32 %v3553_v6, %v8103_v29  ;;  %v5199_v26 = vpop.f32.mrb[162].mxu0 }
 0x315   : > { %v3751_v62 = vadd.f32 %v8215_v8, %v3712_v27  ;;  %v8223_v58 = vadd.f32 %v9129_v59, %v2828_v28  ;;  %v3568_v25 = vadd.f32 %v5199_v26, %v8047_v50  ;;  %v3562_v56 = vpop.f32.mrb[163].mxu0  ;;  %v9131_v28 = vld [vmem:[#allocation66_spill] sm:$0xff] }
 0x316   : > { %v3563_v14 = vadd.f32 %v3562_v56, %v8042_v34  ;;  %v2832_v54 = vpop.f32.mrb[104].mxu1  ;;  %v3750_v35 = vadd.f32 %v8215_v8, %v3711_v52 }
 0x317   : > { %v3714_v16 = vadd.f32 %v3568_v25, %v8121_v43  ;;  %v2833_v20 = vadd.f32 %v2832_v54, %v9130_v44  ;;  %v2834_v42 = vpop.f32.mrb[105].mxu1  ;;  %v3783_v51 = vmax.f32 %v3751_v62, 0.0 }
 0x318   : > { %v3713_v29 = vadd.f32 %v3563_v14, %v8115_v40  ;;  %v5202_v6 = vpop.f32.mrb[164].mxu0  ;;  %v3782_v27 = vmax.f32 %v3750_v35, 0.0  ;;  %v9132_v40 = vld [vmem:[#allocation104_spill] sm:$0xff] }
 0x319   : > { %v8232_v59 = vadd.f32 %v9131_v28, %v2833_v20  ;;  %v3578_v50 = vadd.f32 %v5202_v6, %v8057_v60  ;;  %v3572_v26 = vpop.f32.mrb[165].mxu0  ;;  %v3753_v34 = vadd.f32 %v8215_v8, %v3714_v16  ;;  %v9133_v60 = vld [vmem:[#allocation55_spill] sm:$0xff] }
 0x31a   : > { %v3573_v56 = vadd.f32 %v3572_v26, %v8052_v3  ;;  %5274 = vmatprep.mubr.f32.mxu1 %v3782_v27  ;;  %v2837_v43 = vpop.f32.mrb[106].mxu1  ;;  %v3752_v25 = vadd.f32 %v8215_v8, %v3713_v29 }
 0x31b   : > { %v3716_v52 = vadd.f32 %v3578_v50, %v8133_v21  ;;  %v2838_v14 = vadd.f32 %v2837_v43, %v9132_v40  ;;  %5275 = vmatmul.mubr.f32.vlgmr.msra.gmra.mrb[144].mxu1 %v3783_v51  ;;  %v2839_v62 = vpop.f32.mrb[107].mxu1  ;;  %v3785_v42 = vmax.f32 %v3753_v34, 0.0  ;;  %v9135_v43 = vld [vmem:[#allocation92_spill] sm:$0xff] }
 0x31c   : > { %v3715_v54 = vadd.f32 %v3573_v56, %v8127_v9  ;;  %v5205_v35 = vpop.f32.mrb[166].mxu0  ;;  %v3784_v44 = vmax.f32 %v3752_v25, 0.0  ;;  %v9134_v9 = vld [vmem:[#allocation6_spill] sm:$0xff] }
 0x31d   : > { %v8242_v20 = vadd.f32 %v9133_v60, %v2838_v14  ;;  %v3588_v16 = vadd.f32 %v5205_v35, %v8067_v47  ;;  %v3582_v3 = vpop.f32.mrb[167].mxu0  ;;  %v3755_v6 = vadd.f32 %v8215_v8, %v3716_v52 }
 0x31e   : > { %v3583_v29 = vadd.f32 %v3582_v3, %v8062_v19  ;;  %5277 = vmatprep.mubr.f32.mxu1 %v3784_v44  ;;  %v2842_v21 = vpop.f32.mrb[108].mxu1  ;;  %v3754_v27 = vadd.f32 %v8215_v8, %v3715_v54  ;;  %v9137_v3 = vld [vmem:[#allocation77_spill] sm:$0xff] }
 0x31f   : > { %v3718_v51 = vadd.f32 %v3588_v16, %v8145_v13  ;;  %v2843_v28 = vadd.f32 %v2842_v21, %v9134_v9  ;;  %5278 = vmatmul.mubr.f32.gmra.mrb[146].mxu1 %v3785_v42  ;;  %v2844_v50 = vpop.f32.mrb[109].mxu1  ;;  %v3787_v52 = vmax.f32 %v3755_v6, 0.0 }
 0x320   : > { %v3717_v26 = vadd.f32 %v3583_v29, %v8139_v0  ;;  %v5208_v56 = vpop.f32.mrb[168].mxu0  ;;  %v3786_v47 = vmax.f32 %v3754_v27, 0.0  ;;  %v9136_v0 = vld [vmem:[#allocation16_spill] sm:$0xff] }
 0x321   : > { %v8252_v34 = vadd.f32 %v9135_v43, %v2843_v28  ;;  %v3598_v25 = vadd.f32 %v5208_v56, %v8077_v48  ;;  %v3592_v19 = vpop.f32.mrb[169].mxu0  ;;  %v3757_v40 = vadd.f32 %v8215_v8, %v3718_v51 }
 0x322   : > { %v3593_v14 = vadd.f32 %v3592_v19, %v8072_v4  ;;  %5280 = vmatprep.mubr.f32.mxu1 %v3786_v47  ;;  %v2847_v13 = vpop.f32.mrb[110].mxu1  ;;  %v3756_v62 = vadd.f32 %v8215_v8, %v3717_v26  ;;  %v9139_v47 = vld [vmem:[#allocation7_spill] sm:$0xff] }
 0x323   : > { %v3720_v54 = vadd.f32 %v3598_v25, %v8157_v63  ;;  %v2848_v35 = vadd.f32 %v2847_v13, %v9136_v0  ;;  %5281 = vmatmul.mubr.f32.gmra.mrb[148].mxu1 %v3787_v52  ;;  %v2849_v44 = vpop.f32.mrb[111].mxu1  ;;  %v3789_v29 = vmax.f32 %v3757_v40, 0.0 }
 0x324   : > { %v3719_v60 = vadd.f32 %v3593_v14, %v8151_v10  ;;  %v5211_v16 = vpop.f32.mrb[170].mxu0  ;;  %v3788_v48 = vmax.f32 %v3756_v62, 0.0  ;;  %v9138_v10 = vld [vmem:[#allocation20_spill] sm:$0xff]  ;;  %v9141_v44 = vld [vmem:[#allocation94_spill] sm:$0xff] }
 0x325   : > { %v8262_v42 = vadd.f32 %v9137_v3, %v2848_v35  ;;  %v3608_v6 = vadd.f32 %v5211_v16, %v8087_v31  ;;  %v3602_v4 = vpop.f32.mrb[171].mxu0  ;;  %v3759_v21 = vadd.f32 %v8215_v8, %v3720_v54 }
 0x326   : > { %v3603_v27 = vadd.f32 %v3602_v4, %v8082_v33  ;;  %5283 = vmatprep.mubr.f32.mxu1 %v3788_v48  ;;  %v2852_v63 = vpop.f32.mrb[112].mxu1  ;;  %v3758_v51 = vadd.f32 %v8215_v8, %v3719_v60 }
 0x327   : > { %v3722_v9 = vadd.f32 %v3608_v6, %v8169_v24  ;;  %v2853_v28 = vadd.f32 %v2852_v63, %v9138_v10  ;;  %5284 = vmatmul.mubr.f32.gmra.mrb[150].mxu1 %v3789_v29  ;;  %v2854_v50 = vpop.f32.mrb[113].mxu1  ;;  %v3791_v19 = vmax.f32 %v3759_v21, 0.0 }
 0x328   : > { %v3721_v26 = vadd.f32 %v3603_v27, %v8163_v2  ;;  %v5214_v56 = vpop.f32.mrb[172].mxu0  ;;  %v3790_v31 = vmax.f32 %v3758_v51, 0.0  ;;  %v9140_v2 = vld [vmem:[#allocation17_spill] sm:$0xff] }
 0x329   : > { %v8272_v43 = vadd.f32 %v9139_v47, %v2853_v28  ;;  %v3618_v25 = vadd.f32 %v5214_v56, %v8097_v15  ;;  %v3612_v33 = vpop.f32.mrb[173].mxu0  ;;  %v3761_v52 = vadd.f32 %v8215_v8, %v3722_v9  ;;  %v9145_v47 = vld [vmem:[#allocation96_spill] sm:$0xff] }
 0x32a   : > { %v3613_v40 = vadd.f32 %v3612_v33, %v8092_v61  ;;  %5286 = vmatprep.mubr.f32.mxu1 %v3790_v31  ;;  %v2857_v24 = vpop.f32.mrb[114].mxu1  ;;  %v3760_v14 = vadd.f32 %v8215_v8, %v3721_v26  ;;  %v9144_v26 = vld [vmem:[#allocation26_spill] sm:$0xff] }
 0x32b   : > { %v3724_v13 = vadd.f32 %v3618_v25, %v8181_v49  ;;  %v2858_v62 = vadd.f32 %v2857_v24, %v9140_v2  ;;  %5287 = vmatmul.mubr.f32.gmra.mrb[152].mxu1 %v3791_v19  ;;  %v2859_v54 = vpop.f32.mrb[115].mxu1  ;;  %v3793_v48 = vmax.f32 %v3761_v52, 0.0  ;;  %v9146_v19 = vld [vmem:[#allocation23_spill] sm:$0xff]  ;;  %v9147_v24 = vld [vmem:[#allocation8_spill] sm:$0xff] }
 0x32c   : > { %v3723_v0 = vadd.f32 %v3613_v40, %v8175_v23  ;;  %v5217_v35 = vpop.f32.mrb[174].mxu0  ;;  %v3792_v15 = vmax.f32 %v3760_v14, 0.0  ;;  %v9142_v23 = vld [vmem:[#allocation21_spill] sm:$0xff]  ;;  %v9148_v2 = vld [vmem:[#allocation27_spill] sm:$0xff] }
 0x32d   : > { %v8282_v60 = vadd.f32 %v9141_v44, %v2858_v62  ;;  %v3628_v16 = vadd.f32 %v5217_v35, %v8106_v36  ;;  %v3622_v61 = vpop.f32.mrb[175].mxu0  ;;  %v3763_v3 = vadd.f32 %v8215_v8, %v3724_v13  ;;  %v9143_v36 = vld [vmem:[#allocation95_spill] sm:$0xff] }
 0x32e   : > { %v3623_v6 = vadd.f32 %v3622_v61, %v8100_v38  ;;  %5289 = vmatprep.mubr.f32.mxu1 %v3792_v15  ;;  %v2862_v49 = vpop.f32.mrb[116].mxu1  ;;  %v3762_v4 = vadd.f32 %v8215_v8, %v3723_v0  ;;  %v9149_v0 = vld [vmem:[#allocation97_spill] sm:$0xff]  ;;  %v9150_v44 = vld [vmem:[#allocation31_spill] sm:$0xff] }
 0x32f   : > { %v3726_v29 = vadd.f32 %v3628_v16, %v8193_v32  ;;  %v2863_v21 = vadd.f32 %v2862_v49, %v9142_v23  ;;  %5290 = vmatmul.mubr.f32.gmra.mrb[154].mxu1 %v3793_v48  ;;  %v2864_v27 = vpop.f32.mrb[117].mxu1  ;;  %v3795_v10 = vmax.f32 %v3763_v3, 0.0  ;;  %v9151_v48 = vld [vmem:[#allocation98_spill] sm:$0xff] }
 0x330   : > { %v3725_v63 = vadd.f32 %v3623_v6, %v8187_v57  ;;  %v3794_v51 = vmax.f32 %v3762_v4, 0.0 }
 0x331   : > { %v8292_v9 = vadd.f32 %v9143_v36, %v2863_v21  ;;  %v3765_v28 = vadd.f32 %v8215_v8, %v3726_v29  ;;  %v9152_v29 = vld [vmem:[#allocation99_spill] sm:$0xff] }
 0x332   : > { %5292 = vmatprep.mubr.f32.mxu1 %v3794_v51  ;;  %v2867_v38 = vpop.f32.mrb[118].mxu1  ;;  %v3764_v50 = vadd.f32 %v8215_v8, %v3725_v63 }
 0x333   : > { %v2868_v56 = vadd.f32 %v2867_v38, %v9144_v26  ;;  %5293 = vmatmul.mubr.f32.gmra.mrb[156].mxu1 %v3795_v10  ;;  %v2869_v32 = vpop.f32.mrb[119].mxu1  ;;  %v3797_v57 = vmax.f32 %v3765_v28, 0.0 }
 0x334   : > { %v3796_v31 = vmax.f32 %v3764_v50, 0.0 }
 0x335   : > { %v8298_v25 = vadd.f32 %v9145_v47, %v2868_v56 }
 0x336   : > { %5295 = vmatprep.mubr.f32.mxu1 %v3796_v31  ;;  %v2872_v33 = vpop.f32.mrb[120].mxu1 }
 0x337   : > { %v2873_v52 = vadd.f32 %v2872_v33, %v9146_v19  ;;  %5296 = vmatmul.mubr.f32.gmra.mrb[158].mxu1 %v3797_v57  ;;  %v2874_v40 = vpop.f32.mrb[121].mxu1 }
 0x339   : > { %v8302_v14 = vadd.f32 %v9147_v24, %v2873_v52 }
 0x33a   : > { %v2877_v13 = vpop.f32.mrb[122].mxu1 }
 0x33b   : > { %v2878_v62 = vadd.f32 %v2877_v13, %v9148_v2  ;;  %v2879_v54 = vpop.f32.mrb[123].mxu1 }
 0x33d   : > { %v8306_v35 = vadd.f32 %v9149_v0, %v2878_v62 }
 0x33e   : > { %v2882_v15 = vpop.f32.mrb[124].mxu1 }
 0x33f   : > { %v2883_v16 = vadd.f32 %v2882_v15, %v9150_v44  ;;  %v2884_v61 = vpop.f32.mrb[125].mxu1 }
 0x341   : > { %v8310_v3 = vadd.f32 %v9151_v48, %v2883_v16 }
 0x342   : > { %v2887_v6 = vpop.f32.mrb[126].mxu1 }
 0x343   : > { %v2888_v49 = vadd.f32 %v2887_v6, %v8095_v18  ;;  %v2889_v4 = vpop.f32.mrb[127].mxu1 }
 0x345   : > { %v8314_v23 = vadd.f32 %v9152_v29, %v2888_v49 }
 0x346   : > { %v5220_v21 = vpop.f32.mrb[128].mxu1 }
 0x347   : > { %v3638_v27 = vadd.f32 %v5220_v21, %v8118_v22  ;;  %v3632_v63 = vpop.f32.mrb[129].mxu1 }
 0x348   : > { %v3633_v51 = vadd.f32 %v3632_v63, %v8112_v5 }
 0x349   : > { %v3728_v36 = vadd.f32 %v3638_v27, %v8205_v30  ;;  %v9153_v27 = vld [vmem:[#allocation32_spill] sm:$0xff] }
 0x34a   : > { %v3727_v10 = vadd.f32 %v3633_v51, %v8199_v55  ;;  %v5223_v28 = vpop.f32.mrb[130].mxu1 }
 0x34b   : > { %v3648_v38 = vadd.f32 %v5223_v28, %v8130_v12  ;;  %v3642_v50 = vpop.f32.mrb[131].mxu1  ;;  %v3767_v18 = vadd.f32 %v8215_v8, %v3728_v36 }
 0x34c   : > { %v3643_v26 = vadd.f32 %v3642_v50, %v8124_v1  ;;  %v3766_v56 = vadd.f32 %v8215_v8, %v3727_v10  ;;  %v9154_v10 = vld [vmem:[#allocation28_spill] sm:$0xff] }
 0x34d   : > { %v3730_v32 = vadd.f32 %v3648_v38, %v8223_v58  ;;  %v3799_v55 = vmax.f32 %v3767_v18, 0.0  ;;  %v9155_v18 = vld [vmem:[#allocation34_spill] sm:$0xff] }
 0x34e   : > { %v3729_v22 = vadd.f32 %v3643_v26, %v8209_v17  ;;  %v5226_v31 = vpop.f32.mrb[132].mxu1  ;;  %v3798_v5 = vmax.f32 %v3766_v56, 0.0 }
 0x34f   : > { %v3658_v30 = vadd.f32 %v5226_v31, %v8142_v11  ;;  %v3652_v47 = vpop.f32.mrb[133].mxu1  ;;  %v3769_v57 = vadd.f32 %v8215_v8, %v3730_v32  ;;  %v9156_v31 = vld [vmem:[#allocation37_spill] sm:$0xff] }
 0x350   : > { %v3653_v12 = vadd.f32 %v3652_v47, %v8136_v37  ;;  %5298 = vmatprep.mubr.f32.mxu1 %v3798_v5  ;;  %v3768_v33 = vadd.f32 %v8215_v8, %v3729_v22 }
 0x351   : > { %v3732_v1 = vadd.f32 %v3658_v30, %v8242_v20  ;;  %5299 = vmatmul.mubr.f32.gmra.mrb[160].mxu1 %v3799_v55  ;;  %v3801_v11 = vmax.f32 %v3769_v57, 0.0 }
 0x352   : > { %v3731_v58 = vadd.f32 %v3653_v12, %v8232_v59  ;;  %v5229_v19 = vpop.f32.mrb[134].mxu1  ;;  %v3800_v17 = vmax.f32 %v3768_v33, 0.0 }
 0x353   : > { %v3668_v52 = vadd.f32 %v5229_v19, %v8154_v53  ;;  %v3662_v40 = vpop.f32.mrb[135].mxu1  ;;  %v3771_v24 = vadd.f32 %v8215_v8, %v3732_v1 }
 0x354   : > { %v3663_v13 = vadd.f32 %v3662_v40, %v8148_v41  ;;  %5301 = vmatprep.mubr.f32.mxu1 %v3800_v17  ;;  %v3770_v37 = vadd.f32 %v8215_v8, %v3731_v58 }
 0x355   : > { %v3734_v2 = vadd.f32 %v3668_v52, %v8262_v42  ;;  %5302 = vmatmul.mubr.f32.gmra.mrb[162].mxu1 %v3801_v11  ;;  %v3803_v53 = vmax.f32 %v3771_v24, 0.0  ;;  %v9157_v11 = vld [vmem:[#allocation9_spill] sm:$0xff] }
 0x356   : > { %v3733_v20 = vadd.f32 %v3663_v13, %v8252_v34  ;;  %v5232_v62 = vpop.f32.mrb[136].mxu1  ;;  %v3802_v59 = vmax.f32 %v3770_v37, 0.0 }
 0x357   : > { %v3678_v54 = vadd.f32 %v5232_v62, %v8166_v7  ;;  %v3672_v0 = vpop.f32.mrb[137].mxu1  ;;  %v3773_v15 = vadd.f32 %v8215_v8, %v3734_v2  ;;  %v9158_v2 = vld [vmem:[#allocation10_spill] sm:$0xff] }
 0x358   : > { %v3673_v44 = vadd.f32 %v3672_v0, %v8160_v39  ;;  %5304 = vmatprep.mubr.f32.mxu1 %v3802_v59  ;;  %v3772_v41 = vadd.f32 %v8215_v8, %v3733_v20 }
 0x359   : > { %v3736_v16 = vadd.f32 %v3678_v54, %v8282_v60  ;;  %5305 = vmatmul.mubr.f32.gmra.mrb[164].mxu1 %v3803_v53  ;;  %v3805_v7 = vmax.f32 %v3773_v15, 0.0  ;;  %v9159_v53 = vld [vmem:[#allocation11_spill] sm:$0xff] }
 0x35a   : > { %v3735_v42 = vadd.f32 %v3673_v44, %v8272_v43  ;;  %v5235_v61 = vpop.f32.mrb[138].mxu1  ;;  %v3804_v34 = vmax.f32 %v3772_v41, 0.0 }
 0x35b   : > { %v3688_v48 = vadd.f32 %v5235_v61, %v8178_v46  ;;  %v3682_v6 = vpop.f32.mrb[139].mxu1  ;;  %v3775_v49 = vadd.f32 %v8215_v8, %v3736_v16  ;;  %v9160_v16 = vld [vmem:[#allocation12_spill] sm:$0xff] }
 0x35c   : > { %v3683_v4 = vadd.f32 %v3682_v6, %v8172_v45  ;;  %5307 = vmatprep.mubr.f32.mxu1 %v3804_v34  ;;  %v3774_v39 = vadd.f32 %v8215_v8, %v3735_v42 }
 0x35d   : > { %v3738_v29 = vadd.f32 %v3688_v48, %v8298_v25  ;;  %5308 = vmatmul.mubr.f32.gmra.mrb[166].mxu1 %v3805_v7  ;;  %v3807_v46 = vmax.f32 %v3775_v49, 0.0  ;;  %v9161_v7 = vld [vmem:[#allocation14_spill] sm:$0xff] }
 0x35e   : > { %v3737_v60 = vadd.f32 %v3683_v4, %v8292_v9  ;;  %v5238_v21 = vpop.f32.mrb[140].mxu1  ;;  %v3806_v43 = vmax.f32 %v3774_v39, 0.0 }
 0x35f   : > { %v3698_v63 = vadd.f32 %v5238_v21, %v9153_v27  ;;  %v3692_v51 = vpop.f32.mrb[141].mxu1  ;;  %v3777_v36 = vadd.f32 %v8215_v8, %v3738_v29  ;;  %v9162_v29 = vld [vmem:[#allocation15_spill] sm:$0xff] }
 0x360   : > { %v3693_v28 = vadd.f32 %v3692_v51, %v9154_v10  ;;  %5310 = vmatprep.mubr.f32.mxu1 %v3806_v43  ;;  %v3776_v45 = vadd.f32 %v8215_v8, %v3737_v60  ;;  %v9163_v51 = vld [vmem:[#allocation18_spill] sm:$0xff] }
 0x361   : > { %v3740_v38 = vadd.f32 %v3698_v63, %v8306_v35  ;;  %5311 = vmatmul.mubr.f32.gmra.mrb[168].mxu1 %v3807_v46  ;;  %v3809_v32 = vmax.f32 %v3777_v36, 0.0 }
 0x362   : > { %v3739_v25 = vadd.f32 %v3693_v28, %v8302_v14  ;;  %v5241_v50 = vpop.f32.mrb[142].mxu1  ;;  %v3808_v9 = vmax.f32 %v3776_v45, 0.0  ;;  %v9164_v28 = vld [vmem:[#allocation19_spill] sm:$0xff] }
 0x363   : > { %v3708_v26 = vadd.f32 %v5241_v50, %v9155_v18  ;;  %v3702_v56 = vpop.f32.mrb[143].mxu1  ;;  %v3779_v22 = vadd.f32 %v8215_v8, %v3740_v38  ;;  %v9165_v18 = vld [vmem:[#allocation24_spill] sm:$0xff] }
 0x364   : > { %v3703_v5 = vadd.f32 %v3702_v56, %v9156_v31  ;;  %5313 = vmatprep.mubr.f32.mxu1 %v3808_v9  ;;  %v3778_v30 = vadd.f32 %v8215_v8, %v3739_v25 }
 0x365   : > { %v3742_v47 = vadd.f32 %v3708_v26, %v8314_v23  ;;  %5314 = vmatmul.mubr.f32.gmra.mrb[170].mxu1 %v3809_v32  ;;  %v3811_v55 = vmax.f32 %v3779_v22, 0.0  ;;  %v8368_v23 = vld [vmem:[%s8530_s8] ss:$0 sm:$0xff]  ;;  %v9166_v22 = vld [vmem:[#allocation25_spill] sm:$0xff] }
 0x366   : > { %v3741_v14 = vadd.f32 %v3703_v5, %v8310_v3  ;;  %v3810_v35 = vmax.f32 %v3778_v30, 0.0 }
 0x367   : > { %v3781_v57 = vadd.f32 %v8215_v8, %v3742_v47 }
 0x368   : > { %5316 = vmatprep.mubr.f32.mxu1 %v3810_v35  ;;  %v3780_v12 = vadd.f32 %v8215_v8, %v3741_v14  ;;  %v9167_v35 = vld [vmem:[#allocation29_spill] sm:$0xff] }
 0x369   : > { %5317 = vmatmul.mubr.f32.gmra.mrb[172].mxu1 %v3811_v55  ;;  %v3813_v1 = vmax.f32 %v3781_v57, 0.0 }
 0x36a   : > { %v3812_v33 = vmax.f32 %v3780_v12, 0.0 }
 0x36c   : > { %5319 = vmatprep.mubr.f32.mxu1 %v3812_v33  ;;  %v9168_v33 = vld [vmem:[#allocation30_spill] sm:$0xff] }
 0x36d   : > { %5320 = vmatmul.mubr.f32.gmra.mrb[174].mxu1 %v3813_v1 }
 0x3ee   : > { %v5276_v58 = vpop.f32.mrb[144].mxu1 }
 0x3ef   : > { %v3909_v3 = vadd.f32 %v5276_v58, %v8368_v23  ;;  %v3903_v19 = vpop.f32.mrb[145].mxu1 }
 0x3f0   : > { %v3904_v17 = vadd.f32 %v8368_v23, %v3903_v19 }
 0x3f1   : > { %v4063_v8 = vmax.f32 %v3909_v3, 0.0 }
 0x3f2   : > { %v4062_v52 = vmax.f32 %v3904_v17, 0.0  ;;  %v5279_v40 = vpop.f32.mrb[146].mxu1 }
 0x3f3   : > { %v4127_v24 = vadd.f32 %v4063_v8, %v9157_v11  ;;  %v3919_v13 = vadd.f32 %v5279_v40, %v8368_v23  ;;  %v3913_v37 = vpop.f32.mrb[147].mxu1  ;;  %v9169_v8 = vld [vmem:[#allocation35_spill] sm:$0xff] }
 0x3f4   : > { %v4126_v20 = vadd.f32 %v4062_v52, %v9158_v2  ;;  %v3914_v62 = vadd.f32 %v8368_v23, %v3913_v37 }
 0x3f5   : > { %4159 = vst [vmem:[%s8378_s25 + $0x8] sm:$0xff] %v4127_v24  ;;  %v4065_v59 = vmax.f32 %v3919_v13, 0.0  ;;  %v9170_v24 = vld [vmem:[#allocation36_spill] sm:$0xff] }
 0x3f6   : > { %4158 = vst [vmem:[%s8378_s25] sm:$0xff] %v4126_v20  ;;  %v4064_v54 = vmax.f32 %v3914_v62, 0.0  ;;  %v5282_v0 = vpop.f32.mrb[148].mxu1  ;;  %v9171_v62 = vld [vmem:[#allocation40_spill] sm:$0xff] }
 0x3f7   : > { %v4129_v15 = vadd.f32 %v4065_v59, %v9159_v53  ;;  %v3929_v44 = vadd.f32 %v5282_v0, %v8368_v23  ;;  %v3923_v41 = vpop.f32.mrb[149].mxu1 }
 0x3f8   : > { %v4128_v42 = vadd.f32 %v4064_v54, %v9160_v16  ;;  %v3924_v61 = vadd.f32 %v8368_v23, %v3923_v41  ;;  %v9172_v54 = vld [vmem:[#allocation41_spill] sm:$0xff] }
 0x3f9   : > { %4161 = vst [vmem:[%s8378_s25 + $0x18] sm:$0xff] %v4129_v15  ;;  %v4067_v34 = vmax.f32 %v3929_v44, 0.0 }
 0x3fa   : > { %4160 = vst [vmem:[%s8378_s25 + $0x10] sm:$0xff] %v4128_v42  ;;  %v4066_v48 = vmax.f32 %v3924_v61, 0.0  ;;  %v5285_v6 = vpop.f32.mrb[150].mxu1 }
 0x3fb   : > { %v4131_v49 = vadd.f32 %v4067_v34, %v9161_v7  ;;  %v3939_v4 = vadd.f32 %v5285_v6, %v8368_v23  ;;  %v3933_v39 = vpop.f32.mrb[151].mxu1  ;;  %v9173_v34 = vld [vmem:[#allocation46_spill] sm:$0xff] }
 0x3fc   : > { %v4130_v60 = vadd.f32 %v4066_v48, %v9162_v29  ;;  %v3934_v21 = vadd.f32 %v8368_v23, %v3933_v39 }
 0x3fd   : > { %4163 = vst [vmem:[%s8378_s25 + $0x28] sm:$0xff] %v4131_v49  ;;  %v4069_v43 = vmax.f32 %v3939_v4, 0.0  ;;  %v9174_v49 = vld [vmem:[#allocation47_spill] sm:$0xff] }
 0x3fe   : > { %4162 = vst [vmem:[%s8378_s25 + $0x20] sm:$0xff] %v4130_v60  ;;  %v4068_v27 = vmax.f32 %v3934_v21, 0.0  ;;  %v5288_v63 = vpop.f32.mrb[152].mxu1 }
 0x3ff   : > { %v4133_v46 = vadd.f32 %v4069_v43, %v9163_v51  ;;  %v3949_v36 = vadd.f32 %v5288_v63, %v8368_v23  ;;  %v3943_v10 = vpop.f32.mrb[153].mxu1  ;;  %v9175_v43 = vld [vmem:[#allocation51_spill] sm:$0xff] }
 0x400   : > { %v4132_v45 = vadd.f32 %v4068_v27, %v9164_v28  ;;  %v3944_v38 = vadd.f32 %v8368_v23, %v3943_v10 }
 0x401   : > { %4165 = vst [vmem:[%s8378_s25 + $0x38] sm:$0xff] %v4133_v46  ;;  %v4071_v25 = vmax.f32 %v3949_v36, 0.0  ;;  %v9176_v46 = vld [vmem:[#allocation52_spill] sm:$0xff] }
 0x402   : > { %4164 = vst [vmem:[%s8378_s25 + $0x30] sm:$0xff] %v4132_v45  ;;  %v4070_v50 = vmax.f32 %v3944_v38, 0.0  ;;  %v5291_v9 = vpop.f32.mrb[154].mxu1 }
 0x403   : > { %v4135_v26 = vadd.f32 %v4071_v25, %v9165_v18  ;;  %v3959_v56 = vadd.f32 %v5291_v9, %v8368_v23  ;;  %v3953_v32 = vpop.f32.mrb[155].mxu1  ;;  %v9177_v25 = vld [vmem:[#allocation57_spill] sm:$0xff] }
 0x404   : > { %v4134_v31 = vadd.f32 %v4070_v50, %v9166_v22  ;;  %v3954_v5 = vadd.f32 %v8368_v23, %v3953_v32 }
 0x405   : > { %4167 = vst [vmem:[%s8378_s25 + $0x48] sm:$0xff] %v4135_v26  ;;  %v4073_v30 = vmax.f32 %v3959_v56, 0.0  ;;  %v9178_v26 = vld [vmem:[#allocation58_spill] sm:$0xff] }
 0x406   : > { %4166 = vst [vmem:[%s8378_s25 + $0x40] sm:$0xff] %v4134_v31  ;;  %v4072_v47 = vmax.f32 %v3954_v5, 0.0  ;;  %v5294_v14 = vpop.f32.mrb[156].mxu1 }
 0x407   : > { %v4137_v55 = vadd.f32 %v4073_v30, %v9167_v35  ;;  %v3969_v57 = vadd.f32 %v5294_v14, %v8368_v23  ;;  %v3963_v12 = vpop.f32.mrb[157].mxu1  ;;  %v9179_v30 = vld [vmem:[#allocation62_spill] sm:$0xff] }
 0x408   : > { %v4136_v1 = vadd.f32 %v4072_v47, %v9168_v33  ;;  %v3964_v58 = vadd.f32 %v8368_v23, %v3963_v12 }
 0x409   : > { %4169 = vst [vmem:[%s8378_s25 + $0x58] sm:$0xff] %v4137_v55  ;;  %v4075_v3 = vmax.f32 %v3969_v57, 0.0  ;;  %v9180_v55 = vld [vmem:[#allocation63_spill] sm:$0xff] }
 0x40a   : > { %4168 = vst [vmem:[%s8378_s25 + $0x50] sm:$0xff] %v4136_v1  ;;  %v4074_v19 = vmax.f32 %v3964_v58, 0.0  ;;  %v5297_v17 = vpop.f32.mrb[158].mxu1 }
 0x40b   : > { %v4139_v52 = vadd.f32 %v4075_v3, %v9169_v8  ;;  %v3979_v40 = vadd.f32 %v5297_v17, %v8368_v23  ;;  %v3973_v11 = vpop.f32.mrb[159].mxu1  ;;  %v9181_v3 = vld [vmem:[#allocation68_spill] sm:$0xff] }
 0x40c   : > { %v4138_v13 = vadd.f32 %v4074_v19, %v9170_v24  ;;  %v3974_v37 = vadd.f32 %v8368_v23, %v3973_v11 }
 0x40d   : > { %4171 = vst [vmem:[%s8378_s25 + $0x68] sm:$0xff] %v4139_v52  ;;  %v4077_v2 = vmax.f32 %v3979_v40, 0.0  ;;  %v9182_v52 = vld [vmem:[#allocation69_spill] sm:$0xff] }
 0x40e   : > { %4170 = vst [vmem:[%s8378_s25 + $0x60] sm:$0xff] %v4138_v13  ;;  %v4076_v20 = vmax.f32 %v3974_v37, 0.0 }
 0x40f   : > { %v4141_v59 = vadd.f32 %v4077_v2, %v9171_v62  ;;  %v9183_v2 = vld [vmem:[#allocation73_spill] sm:$0xff] }
 0x410   : > { %v4140_v0 = vadd.f32 %v4076_v20, %v9172_v54  ;;  %v9184_v54 = vld [vmem:[#allocation74_spill] sm:$0xff] }
 0x411   : > { %4173 = vst [vmem:[%s8378_s25 + $0x78] sm:$0xff] %v4141_v59 }
 0x412   : > { %4172 = vst [vmem:[%s8378_s25 + $0x70] sm:$0xff] %v4140_v0 }
 0x424   : > { %v5300_v53 = vpop.f32.mrb[160].mxu1 }
 0x425   : > { %v3989_v15 = vadd.f32 %v5300_v53, %v8368_v23  ;;  %v3983_v44 = vpop.f32.mrb[161].mxu1 }
 0x426   : > { %v3984_v41 = vadd.f32 %v8368_v23, %v3983_v44 }
 0x427   : > { %v4079_v16 = vmax.f32 %v3989_v15, 0.0 }
 0x428   : > { %v4078_v42 = vmax.f32 %v3984_v41, 0.0  ;;  %v5303_v61 = vpop.f32.mrb[162].mxu1 }
 0x429   : > { %v4143_v48 = vadd.f32 %v4079_v16, %v9173_v34  ;;  %v3999_v6 = vadd.f32 %v5303_v61, %v8368_v23  ;;  %v3993_v7 = vpop.f32.mrb[163].mxu1  ;;  %v9185_v16 = vld [vmem:[#allocation79_spill] sm:$0xff] }
 0x42a   : > { %v4142_v4 = vadd.f32 %v4078_v42, %v9174_v49  ;;  %v3994_v39 = vadd.f32 %v8368_v23, %v3993_v7 }
 0x42b   : > { %4175 = vst [vmem:[%s8378_s25 + $0x88] sm:$0xff] %v4143_v48  ;;  %v4081_v29 = vmax.f32 %v3999_v6, 0.0  ;;  %v9186_v48 = vld [vmem:[#allocation80_spill] sm:$0xff] }
 0x42c   : > { %4174 = vst [vmem:[%s8378_s25 + $0x80] sm:$0xff] %v4142_v4  ;;  %v4080_v60 = vmax.f32 %v3994_v39, 0.0  ;;  %v5306_v21 = vpop.f32.mrb[164].mxu1  ;;  %v9187_v39 = vld [vmem:[#allocation84_spill] sm:$0xff] }
 0x42d   : > { %v4145_v27 = vadd.f32 %v4081_v29, %v9175_v43  ;;  %v4009_v63 = vadd.f32 %v5306_v21, %v8368_v23  ;;  %v4003_v51 = vpop.f32.mrb[165].mxu1 }
 0x42e   : > { %v4144_v36 = vadd.f32 %v4080_v60, %v9176_v46  ;;  %v4004_v10 = vadd.f32 %v8368_v23, %v4003_v51  ;;  %v9188_v60 = vld [vmem:[#allocation85_spill] sm:$0xff] }
 0x42f   : > { %4177 = vst [vmem:[%s8378_s25 + $0x98] sm:$0xff] %v4145_v27  ;;  %v4083_v28 = vmax.f32 %v4009_v63, 0.0 }
 0x430   : > { %4176 = vst [vmem:[%s8378_s25 + $0x90] sm:$0xff] %v4144_v36  ;;  %v4082_v45 = vmax.f32 %v4004_v10, 0.0  ;;  %v5309_v38 = vpop.f32.mrb[166].mxu1 }
 0x431   : > { %v4147_v50 = vadd.f32 %v4083_v28, %v9177_v25  ;;  %v4019_v9 = vadd.f32 %v5309_v38, %v8368_v23  ;;  %v4013_v18 = vpop.f32.mrb[167].mxu1 }
 0x432   : > { %v4146_v56 = vadd.f32 %v4082_v45, %v9178_v26  ;;  %v4014_v32 = vadd.f32 %v8368_v23, %v4013_v18 }
 0x433   : > { %4179 = vst [vmem:[%s8378_s25 + $0xa8] sm:$0xff] %v4147_v50  ;;  %v4085_v22 = vmax.f32 %v4019_v9, 0.0 }
 0x434   : > { %4178 = vst [vmem:[%s8378_s25 + $0xa0] sm:$0xff] %v4146_v56  ;;  %v4084_v31 = vmax.f32 %v4014_v32, 0.0  ;;  %v5312_v5 = vpop.f32.mrb[168].mxu1 }
 0x435   : > { %v4149_v47 = vadd.f32 %v4085_v22, %v9179_v30  ;;  %v4029_v14 = vadd.f32 %v5312_v5, %v8368_v23  ;;  %v4023_v35 = vpop.f32.mrb[169].mxu1 }
 0x436   : > { %v4148_v57 = vadd.f32 %v4084_v31, %v9180_v55  ;;  %v4024_v12 = vadd.f32 %v8368_v23, %v4023_v35 }
 0x437   : > { %4181 = vst [vmem:[%s8378_s25 + $0xb8] sm:$0xff] %v4149_v47  ;;  %v4087_v33 = vmax.f32 %v4029_v14, 0.0 }
 0x438   : > { %4180 = vst [vmem:[%s8378_s25 + $0xb0] sm:$0xff] %v4148_v57  ;;  %v4086_v1 = vmax.f32 %v4024_v12, 0.0  ;;  %v5315_v58 = vpop.f32.mrb[170].mxu1 }
 0x439   : > { %v4151_v19 = vadd.f32 %v4087_v33, %v9181_v3  ;;  %v4039_v17 = vadd.f32 %v5315_v58, %v8368_v23  ;;  %v4033_v8 = vpop.f32.mrb[171].mxu1 }
 0x43a   : > { %v4150_v40 = vadd.f32 %v4086_v1, %v9182_v52  ;;  %v4034_v11 = vadd.f32 %v8368_v23, %v4033_v8 }
 0x43b   : > { %4183 = vst [vmem:[%s8378_s25 + $0xc8] sm:$0xff] %v4151_v19  ;;  %v4089_v24 = vmax.f32 %v4039_v17, 0.0 }
 0x43c   : > { %4182 = vst [vmem:[%s8378_s25 + $0xc0] sm:$0xff] %v4150_v40  ;;  %v4088_v13 = vmax.f32 %v4034_v11, 0.0  ;;  %v5318_v37 = vpop.f32.mrb[172].mxu1 }
 0x43d   : > { %v4153_v20 = vadd.f32 %v4089_v24, %v9183_v2  ;;  %v4049_v62 = vadd.f32 %v5318_v37, %v8368_v23  ;;  %v4043_v59 = vpop.f32.mrb[173].mxu1 }
 0x43e   : > { %v4152_v0 = vadd.f32 %v4088_v13, %v9184_v54  ;;  %v4044_v53 = vadd.f32 %v8368_v23, %v4043_v59 }
 0x43f   : > { %4185 = vst [vmem:[%s8378_s25 + $0xd8] sm:$0xff] %v4153_v20  ;;  %v4091_v15 = vmax.f32 %v4049_v62, 0.0 }
 0x440   : > { %4184 = vst [vmem:[%s8378_s25 + $0xd0] sm:$0xff] %v4152_v0  ;;  %v4090_v44 = vmax.f32 %v4044_v53, 0.0  ;;  %v5321_v41 = vpop.f32.mrb[174].mxu1 }
 0x441   : > { %v4155_v42 = vadd.f32 %v4091_v15, %v9185_v16  ;;  %v4059_v61 = vadd.f32 %v5321_v41, %v8368_v23  ;;  %v4053_v34 = vpop.f32.mrb[175].mxu1 }
 0x442   : > { %v4154_v6 = vadd.f32 %v4090_v44, %v9186_v48  ;;  %v4054_v7 = vadd.f32 %v8368_v23, %v4053_v34 }
 0x443   : > { %4187 = vst [vmem:[%s8378_s25 + $0xe8] sm:$0xff] %v4155_v42  ;;  %v4093_v49 = vmax.f32 %v4059_v61, 0.0 }
 0x444   : > { %4186 = vst [vmem:[%s8378_s25 + $0xe0] sm:$0xff] %v4154_v6  ;;  %v4092_v4 = vmax.f32 %v4054_v7, 0.0 }
 0x445   : > { %v4157_v29 = vadd.f32 %v4093_v49, %v9187_v39 }
 0x446   : > { %v4156_v23 = vadd.f32 %v4092_v4, %v9188_v60 }
 0x447   : > { %4189 = vst [vmem:[%s8378_s25 + $0xf8] sm:$0xff] %v4157_v29 }
 0x448   : > { %4188 = vst [vmem:[%s8378_s25 + $0xf0] sm:$0xff] %v4156_v23 }
 0x449   : > { %5730 = shalt.err (!%p5727_p3)
}
 0x44a   : > { %s5731_s22 = scalar_lea.hbm %s8472_s16, 4096  ;;  %s5735_s29 = scalar_lea.hbm %s8531_s9, 8192 }
 0x44b   : > { %p5732_p4 = scmp.ne.s32.totalorder %s8472_s16, %s5731_s22  ;;  %p5736_p9 = scmp.lt.u32.totalorder %s8472_s16, %s8531_s9 }
 0x44c   : > { %p5737_p10 = scmp.lt.u32.totalorder %s5735_s29, %s5731_s22  ;;  %p5739_p12 = scmp.lt.u32.totalorder %s5731_s22, %s8472_s16 }
 0x44d   : > { %p5733_p7 = pnand %p5732_p4, %p5874_p5 }
 0x44e   : > { %p5738_p11 = por %p5737_p10, %p5736_p9 }
 0x44f   : > { %p5734_p8 = pneg %p5733_p7 }
 0x450   : > { %p5740_p13 = por %p5739_p12, %p5738_p11 }
 0x452   : > { %p5741_p0 = pnand %p5740_p13, %p5734_p8 }
 0x454   : > { %5744 = shalt.err (!%p5741_p0)
}
 0x455   : > { %s5784_s17 = smov 128   ;;  %s5785_s21 = smov 8  }
 0x456   : > { %5642 = dma.vmem_to_hbm [thread:$0]  (%p5874_p5), %s8474_s26, 4096, %s8472_s16, %s8481_s13, %s5784_s17, %s5784_s17, %s5785_s21  }
 0x457 PF: > { %p5680_p1 = scmp.ge.s32.totalorder %s5779_s12, 2  ;;  %s4219_s23 = sand.u32 1, %s5767_s30  }
 0x458   : > { %s4220_s27 = scalar_lea.sflag [#allocation4], %s4219_s23 }
 0x459   : > { %p5645_p2 = pnand %p5680_p1, %p5878_p6 }
 0x45b   : > { %5762 = dma.done.wait (!%p5645_p2), %s4220_s27, 4096  }
 0x45c   : > { %5764 = vsyncadd (!%p5645_p2), %s4220_s27, 4294963200  ;;  %p19_p3 = scmp.ge.s32.totalorder %s5861_s15, 4   ;;  %s9189_s30 = smov %s5771_s10 }
 0x45d   : > { %s9190_s10 = smov %s5775_s11  ;;  %s9191_s11 = smov %s5872_s18 }
 0x45e   : > { %s9192_s12 = smov %s5861_s15  ;;  %21 = sbr.rel (!%p19_p3) target bundleno = 3 (0x3), region = 96 }
 0x465   :  { %4225 = vsyncpa [#allocation4], 1 }
 0x466   :  { %4227 = vsyncpa [#allocation4 + $0x1], 1 }

</bundles_post_ra>
